<compile_context>
chip_gen: v6e
topology: v6e:2x2x1
jax: 0.10.0
libtpu: 0.0.40
codegen_flags: <defaults>
</compile_context>

<pallas_src>
import functools

import jax
import jax.numpy as jnp
from jax.experimental import pallas as pl
from jax.experimental.pallas import tpu as pltpu

# bf16 operands for encoder matmuls (f32 accumulation on the MXU).
_MM_DTYPE = jnp.bfloat16


def _fused_kernel(x_ref, w_in_ref, b_in_ref, hmask_ref,
                  wqkv_ref, bqkv_ref, wo_ref, bo_ref,
                  g1_ref, be1_ref, w1_ref, b1_ref, w2_ref, b2_ref,
                  g2_ref, be2_ref, w_out_ref, b_out_ref,
                  o_ref, *, num_layers, eps):
    B, _, TN = x_ref.shape          # (B, C, tn) input tile, tn spatial positions
    D = w_in_ref.shape[0]

    # ---- conv_in (1x1 conv == matmul); result columns ordered [batch0 | batch1] ----
    a = jnp.concatenate(
        [jnp.dot(w_in_ref[...], x_ref[b], preferred_element_type=jnp.float32)
         for b in range(B)], axis=-1) + b_in_ref[...]                     # (D, B*TN)

    # Scaled block-diagonal head matrix: (hmask @ (q*k))[d] == scaled score of head(d),
    # i.e. scores come out already broadcast across each head's dims (no pool/expand).
    hmask = hmask_ref[...]                                                # (D, D) f32

    def layer_norm(y, g, b):        # LayerNorm over D == sublane axis, f32
        mu = jnp.mean(y, axis=0, keepdims=True)
        var = jnp.mean(jnp.square(y - mu), axis=0, keepdims=True)
        return (y - mu) * jax.lax.rsqrt(var + eps) * g + b

    for l in range(num_layers):
        # hoist per-layer weight reads / bf16 casts out of the attention loops
        wqkv = wqkv_ref[l].astype(_MM_DTYPE)
        bqkv = bqkv_ref[l]
        wo = wo_ref[l].astype(_MM_DTYPE)
        bo = bo_ref[l]
        w1 = w1_ref[l].astype(_MM_DTYPE)
        b1 = b1_ref[l]
        w2 = w2_ref[l].astype(_MM_DTYPE)
        b2 = b2_ref[l]
        g1, be1 = g1_ref[l], be1_ref[l]
        g2, be2 = g2_ref[l], be2_ref[l]

        # fused Q|K|V projection for all B*TN tokens in one MXU push
        qkv = jnp.dot(wqkv, a.astype(_MM_DTYPE),
                      preferred_element_type=jnp.float32) + bqkv          # (3D, B*TN)
        qs = [qkv[0 * D:1 * D, b * TN:(b + 1) * TN] for b in range(B)]    # (D, TN)
        ks = [qkv[1 * D:2 * D, b * TN:(b + 1) * TN] for b in range(B)]
        vs = [qkv[2 * D:3 * D, b * TN:(b + 1) * TN] for b in range(B)]

        # attention: sequence axis == B (tiny), fully unrolled; softmax over j
        ctx = []
        for i in range(B):
            s = [jnp.dot(hmask, qs[i] * ks[j], preferred_element_type=jnp.float32)
                 for j in range(B)]                                       # (D, TN)
            m = s[0]
            for j in range(1, B):
                m = jnp.maximum(m, s[j])
            e = [jnp.exp(sj - m) for sj in s]
            den = e[0]
            for j in range(1, B):
                den = den + e[j]
            inv = pl.reciprocal(den, approx=True)
            acc = (e[0] * inv) * vs[0]
            for j in range(1, B):
                acc = acc + (e[j] * inv) * vs[j]
            ctx.append(acc)
        ctx_all = jnp.concatenate(ctx, axis=-1)                           # (D, B*TN)

        attn = jnp.dot(wo, ctx_all.astype(_MM_DTYPE),
                       preferred_element_type=jnp.float32) + bo
        y = layer_norm(a + attn, g1, be1)                                 # post-norm 1

        h = jnp.dot(w1, y.astype(_MM_DTYPE),
                    preferred_element_type=jnp.float32) + b1              # (dff, B*TN)
        h = jnp.maximum(h, 0.0)
        ff = jnp.dot(w2, h.astype(_MM_DTYPE),
                     preferred_element_type=jnp.float32) + b2             # (D, B*TN)
        a = layer_norm(y + ff, g2, be2)                                   # post-norm 2

    # ---- conv_out (1x1); write the (B, C, tn) tile directly, H*W on the lane axis ----
    out = jnp.dot(w_out_ref[...], a,
                  preferred_element_type=jnp.float32) + b_out_ref[...]    # (C, B*TN)
    for b in range(B):
        o_ref[b] = out[:, b * TN:(b + 1) * TN].astype(o_ref.dtype)


def bottleneck_transformer(x, params, *, nhead=8, tn=128):
    B, C, H, W = x.shape
    HW = H * W
    D = params["conv_in_w"].shape[0]
    L = params["wqkv"].shape[0]
    dff = params["w1"].shape[1]
    hd = D // nhead

    # scaled block-diagonal head-reduction matrix (built once, outside the kernel)
    heads = jnp.arange(D) // hd
    hmask = (heads[:, None] == heads[None, :]).astype(jnp.float32) / float(hd) ** 0.5

    x3 = x.reshape(B, C, HW)        # free reshape: NCHW -> (B, C, HW), HW = lane axis

    def full(shape):
        nd = len(shape)
        return pl.BlockSpec(shape, lambda i, _nd=nd: (0,) * _nd)

    kernel = functools.partial(_fused_kernel, num_layers=L, eps=1e-5)
    out = pl.pallas_call(
        kernel,
        out_shape=jax.ShapeDtypeStruct((B, C, HW), x.dtype),
        grid_spec=pltpu.PrefetchScalarGridSpec(
            num_scalar_prefetch=0,
            grid=(pl.cdiv(HW, tn),),
            in_specs=[
                pl.BlockSpec((B, C, tn), lambda i: (0, 0, i)),   # x tile
                full((D, C)), full((D, 1)),                      # conv_in
                full((D, D)),                                    # hmask
                full((L, 3 * D, D)), full((L, 3 * D, 1)),        # in_proj (QKV)
                full((L, D, D)), full((L, D, 1)),                # out_proj
                full((L, D, 1)), full((L, D, 1)),                # LayerNorm1
                full((L, dff, D)), full((L, dff, 1)),            # linear1
                full((L, D, dff)), full((L, D, 1)),              # linear2
                full((L, D, 1)), full((L, D, 1)),                # LayerNorm2
                full((C, D)), full((C, 1)),                      # conv_out
            ],
            out_specs=pl.BlockSpec((B, C, tn), lambda i: (0, 0, i)),
        ),
        compiler_params=pltpu.CompilerParams(
            dimension_semantics=("parallel",)),
    )(x3, params["conv_in_w"], params["conv_in_b"], hmask,
      params["wqkv"], params["bqkv"], params["wo"], params["bo"],
      params["g1"], params["be1"], params["w1"], params["b1"],
      params["w2"], params["b2"], params["g2"], params["be2"],
      params["conv_out_w"], params["conv_out_b"])
    return out.reshape(B, C, H, W)


# ----------------------------------------------------------------------------
# Deterministic parameter initialization (PyTorch-native shapes, layer-stacked).
# ----------------------------------------------------------------------------
def init_params(key, in_ch, hidden_dim, nhead, num_layers, dim_feedforward=None):
    D = hidden_dim
    dff = hidden_dim if dim_feedforward is None else dim_feedforward
    k_conv, k_layers = jax.random.split(key)

    def dense(k, shape, scale=0.05):
        return scale * jax.random.normal(k, shape, jnp.float32)

    kc = jax.random.split(k_conv, 4)
    params = {
        "conv_in_w": dense(kc[0], (D, in_ch)),     # Conv2d(in_ch->D,1).weight squeezed
        "conv_in_b": dense(kc[1], (D, 1)),
        "conv_out_w": dense(kc[2], (in_ch, D)),    # Conv2d(D->in_ch,1).weight squeezed
        "conv_out_b": dense(kc[3], (in_ch, 1)),
    }
    names = ("wqkv", "bqkv", "wo", "bo", "g1", "be1",
             "w1", "b1", "w2", "b2", "g2", "be2")
    per_layer = {n: [] for n in names}
    for lk in jax.random.split(k_layers, num_layers):
        k = jax.random.split(lk, 8)
        per_layer["wqkv"].append(dense(k[0], (3 * D, D)))   # in_proj_weight
        per_layer["bqkv"].append(dense(k[1], (3 * D, 1)))   # in_proj_bias
        per_layer["wo"].append(dense(k[2], (D, D)))         # out_proj.weight
        per_layer["bo"].append(dense(k[3], (D, 1)))
        per_layer["w1"].append(dense(k[4], (dff, D)))       # linear1.weight
        per_layer["b1"].append(dense(k[5], (dff, 1)))
        per_layer["w2"].append(dense(k[6], (D, dff)))       # linear2.weight
        per_layer["b2"].append(dense(k[7], (D, 1)))
        per_layer["g1"].append(jnp.ones((D, 1), jnp.float32))
        per_layer["be1"].append(jnp.zeros((D, 1), jnp.float32))
        per_layer["g2"].append(jnp.ones((D, 1), jnp.float32))
        per_layer["be2"].append(jnp.zeros((D, 1), jnp.float32))
    params.update({n: jnp.stack(v) for n, v in per_layer.items()})
    return params


if __name__ == "__main__":
    B, C, H, W = 2, 4, 16, 16          # in_ch=4, input_size=(16, 16)
    hidden_dim, nhead, num_layers = 32, 8, 3

    key = jax.random.PRNGKey(0)
    k_x, k_p = jax.random.split(key)
    x = jax.random.normal(k_x, (B, C, H, W), jnp.float32)
    params = init_params(k_p, C, hidden_dim, nhead, num_layers)

    out = bottleneck_transformer(x, params, nhead=nhead)
    out = jax.block_until_ready(out)
    assert out.shape == (B, C, H, W) and out.dtype == jnp.float32
    print("KERNEL_OK")
</pallas_src>

<mosaic_0001>
module attributes {stable_mosaic.version = 11 : i64} {
  func.func @_fused_kernel(%arg0: i32, %arg1: memref<2x4x128xf32, #tpu.memory_space<vmem>>, %arg2: memref<32x4xf32, #tpu.memory_space<vmem>>, %arg3: memref<32x1xf32, #tpu.memory_space<vmem>>, %arg4: memref<32x32xf32, #tpu.memory_space<vmem>>, %arg5: memref<3x96x32xf32, #tpu.memory_space<vmem>>, %arg6: memref<3x96x1xf32, #tpu.memory_space<vmem>>, %arg7: memref<3x32x32xf32, #tpu.memory_space<vmem>>, %arg8: memref<3x32x1xf32, #tpu.memory_space<vmem>>, %arg9: memref<3x32x1xf32, #tpu.memory_space<vmem>>, %arg10: memref<3x32x1xf32, #tpu.memory_space<vmem>>, %arg11: memref<3x32x32xf32, #tpu.memory_space<vmem>>, %arg12: memref<3x32x1xf32, #tpu.memory_space<vmem>>, %arg13: memref<3x32x32xf32, #tpu.memory_space<vmem>>, %arg14: memref<3x32x1xf32, #tpu.memory_space<vmem>>, %arg15: memref<3x32x1xf32, #tpu.memory_space<vmem>>, %arg16: memref<3x32x1xf32, #tpu.memory_space<vmem>>, %arg17: memref<4x32xf32, #tpu.memory_space<vmem>>, %arg18: memref<4x1xf32, #tpu.memory_space<vmem>>, %arg19: memref<2x4x128xf32, #tpu.memory_space<vmem>>) attributes {dimension_semantics = [#tpu.dimension_semantics<parallel>], iteration_bounds = array<i64: 2>, scalar_prefetch = 0 : i64, scratch_operands = 0 : i64, tpu.core_type = #tpu.core_type<tc>, window_params = [{transform_indices = @transform_0, window_bounds = array<i64: 2, 4, 128>}, {pipeline_mode = #tpu.pipeline_mode<synchronous>, transform_indices = @transform_1, window_bounds = array<i64: 32, 4>}, {pipeline_mode = #tpu.pipeline_mode<synchronous>, transform_indices = @transform_2, window_bounds = array<i64: 32, 1>}, {pipeline_mode = #tpu.pipeline_mode<synchronous>, transform_indices = @transform_3, window_bounds = array<i64: 32, 32>}, {pipeline_mode = #tpu.pipeline_mode<synchronous>, transform_indices = @transform_4, window_bounds = array<i64: 3, 96, 32>}, {pipeline_mode = #tpu.pipeline_mode<synchronous>, transform_indices = @transform_5, window_bounds = array<i64: 3, 96, 1>}, {pipeline_mode = #tpu.pipeline_mode<synchronous>, transform_indices = @transform_6, window_bounds = array<i64: 3, 32, 32>}, {pipeline_mode = #tpu.pipeline_mode<synchronous>, transform_indices = @transform_7, window_bounds = array<i64: 3, 32, 1>}, {pipeline_mode = #tpu.pipeline_mode<synchronous>, transform_indices = @transform_8, window_bounds = array<i64: 3, 32, 1>}, {pipeline_mode = #tpu.pipeline_mode<synchronous>, transform_indices = @transform_9, window_bounds = array<i64: 3, 32, 1>}, {pipeline_mode = #tpu.pipeline_mode<synchronous>, transform_indices = @transform_10, window_bounds = array<i64: 3, 32, 32>}, {pipeline_mode = #tpu.pipeline_mode<synchronous>, transform_indices = @transform_11, window_bounds = array<i64: 3, 32, 1>}, {pipeline_mode = #tpu.pipeline_mode<synchronous>, transform_indices = @transform_12, window_bounds = array<i64: 3, 32, 32>}, {pipeline_mode = #tpu.pipeline_mode<synchronous>, transform_indices = @transform_13, window_bounds = array<i64: 3, 32, 1>}, {pipeline_mode = #tpu.pipeline_mode<synchronous>, transform_indices = @transform_14, window_bounds = array<i64: 3, 32, 1>}, {pipeline_mode = #tpu.pipeline_mode<synchronous>, transform_indices = @transform_15, window_bounds = array<i64: 3, 32, 1>}, {pipeline_mode = #tpu.pipeline_mode<synchronous>, transform_indices = @transform_16, window_bounds = array<i64: 4, 32>}, {pipeline_mode = #tpu.pipeline_mode<synchronous>, transform_indices = @transform_17, window_bounds = array<i64: 4, 1>}, {transform_indices = @transform_18, window_bounds = array<i64: 2, 4, 128>}]} {
    %c0 = arith.constant 0 : index
    %c0_0 = arith.constant 0 : index
    %0 = vector.load %arg2[%c0, %c0_0] : memref<32x4xf32, #tpu.memory_space<vmem>>, vector<32x4xf32>
    %c0_1 = arith.constant 0 : index
    %c0_2 = arith.constant 0 : index
    %c0_3 = arith.constant 0 : index
    %1 = vector.load %arg1[%c0_1, %c0_2, %c0_3] : memref<2x4x128xf32, #tpu.memory_space<vmem>>, vector<1x4x128xf32>
    %2 = vector.shape_cast %1 : vector<1x4x128xf32> to vector<4x128xf32>
    %cst = arith.constant dense<0.000000e+00> : vector<32x128xf32>
    %3 = tpu.matmul %0, %2, %cst {dimension_numbers = #tpu.dot_dimension_numbers<[1], [0], [0], [1], [0, 0, 1, 1], [], []>} : vector<32x4xf32>, vector<4x128xf32>, vector<32x128xf32> -> vector<32x128xf32>
    %c0_4 = arith.constant 0 : index
    %c0_5 = arith.constant 0 : index
    %4 = vector.load %arg2[%c0_4, %c0_5] : memref<32x4xf32, #tpu.memory_space<vmem>>, vector<32x4xf32>
    %c1 = arith.constant 1 : index
    %c0_6 = arith.constant 0 : index
    %c0_7 = arith.constant 0 : index
    %5 = vector.load %arg1[%c1, %c0_6, %c0_7] : memref<2x4x128xf32, #tpu.memory_space<vmem>>, vector<1x4x128xf32>
    %6 = vector.shape_cast %5 : vector<1x4x128xf32> to vector<4x128xf32>
    %cst_8 = arith.constant dense<0.000000e+00> : vector<32x128xf32>
    %7 = tpu.matmul %4, %6, %cst_8 {dimension_numbers = #tpu.dot_dimension_numbers<[1], [0], [0], [1], [0, 0, 1, 1], [], []>} : vector<32x4xf32>, vector<4x128xf32>, vector<32x128xf32> -> vector<32x128xf32>
    %8 = tpu.concatenate %3, %7 in 1 : vector<32x128xf32>, vector<32x128xf32> -> vector<32x256xf32>
    %c0_9 = arith.constant 0 : index
    %c0_10 = arith.constant 0 : index
    %9 = vector.load %arg3[%c0_9, %c0_10] : memref<32x1xf32, #tpu.memory_space<vmem>>, vector<32x1xf32>
    %10 = vector.broadcast %9 : vector<32x1xf32> to vector<32x256xf32>
    %11 = arith.addf %8, %10 : vector<32x256xf32>
    %c0_11 = arith.constant 0 : index
    %c0_12 = arith.constant 0 : index
    %12 = vector.load %arg4[%c0_11, %c0_12] : memref<32x32xf32, #tpu.memory_space<vmem>>, vector<32x32xf32>
    %c0_13 = arith.constant 0 : index
    %c0_14 = arith.constant 0 : index
    %c0_15 = arith.constant 0 : index
    %13 = vector.load %arg5[%c0_13, %c0_14, %c0_15] : memref<3x96x32xf32, #tpu.memory_space<vmem>>, vector<1x96x32xf32>
    %14 = vector.shape_cast %13 : vector<1x96x32xf32> to vector<96x32xf32>
    %15 = arith.truncf %14 : vector<96x32xf32> to vector<96x32xbf16>
    %c0_16 = arith.constant 0 : index
    %c0_17 = arith.constant 0 : index
    %c0_18 = arith.constant 0 : index
    %16 = vector.load %arg6[%c0_16, %c0_17, %c0_18] : memref<3x96x1xf32, #tpu.memory_space<vmem>>, vector<1x96x1xf32>
    %17 = vector.shape_cast %16 : vector<1x96x1xf32> to vector<96x1xf32>
    %c0_19 = arith.constant 0 : index
    %c0_20 = arith.constant 0 : index
    %c0_21 = arith.constant 0 : index
    %18 = vector.load %arg7[%c0_19, %c0_20, %c0_21] : memref<3x32x32xf32, #tpu.memory_space<vmem>>, vector<1x32x32xf32>
    %19 = vector.shape_cast %18 : vector<1x32x32xf32> to vector<32x32xf32>
    %20 = arith.truncf %19 : vector<32x32xf32> to vector<32x32xbf16>
    %c0_22 = arith.constant 0 : index
    %c0_23 = arith.constant 0 : index
    %c0_24 = arith.constant 0 : index
    %21 = vector.load %arg8[%c0_22, %c0_23, %c0_24] : memref<3x32x1xf32, #tpu.memory_space<vmem>>, vector<1x32x1xf32>
    %22 = vector.shape_cast %21 : vector<1x32x1xf32> to vector<32x1xf32>
    %c0_25 = arith.constant 0 : index
    %c0_26 = arith.constant 0 : index
    %c0_27 = arith.constant 0 : index
    %23 = vector.load %arg11[%c0_25, %c0_26, %c0_27] : memref<3x32x32xf32, #tpu.memory_space<vmem>>, vector<1x32x32xf32>
    %24 = vector.shape_cast %23 : vector<1x32x32xf32> to vector<32x32xf32>
    %25 = arith.truncf %24 : vector<32x32xf32> to vector<32x32xbf16>
    %c0_28 = arith.constant 0 : index
    %c0_29 = arith.constant 0 : index
    %c0_30 = arith.constant 0 : index
    %26 = vector.load %arg12[%c0_28, %c0_29, %c0_30] : memref<3x32x1xf32, #tpu.memory_space<vmem>>, vector<1x32x1xf32>
    %27 = vector.shape_cast %26 : vector<1x32x1xf32> to vector<32x1xf32>
    %c0_31 = arith.constant 0 : index
    %c0_32 = arith.constant 0 : index
    %c0_33 = arith.constant 0 : index
    %28 = vector.load %arg13[%c0_31, %c0_32, %c0_33] : memref<3x32x32xf32, #tpu.memory_space<vmem>>, vector<1x32x32xf32>
    %29 = vector.shape_cast %28 : vector<1x32x32xf32> to vector<32x32xf32>
    %30 = arith.truncf %29 : vector<32x32xf32> to vector<32x32xbf16>
    %c0_34 = arith.constant 0 : index
    %c0_35 = arith.constant 0 : index
    %c0_36 = arith.constant 0 : index
    %31 = vector.load %arg14[%c0_34, %c0_35, %c0_36] : memref<3x32x1xf32, #tpu.memory_space<vmem>>, vector<1x32x1xf32>
    %32 = vector.shape_cast %31 : vector<1x32x1xf32> to vector<32x1xf32>
    %c0_37 = arith.constant 0 : index
    %c0_38 = arith.constant 0 : index
    %c0_39 = arith.constant 0 : index
    %33 = vector.load %arg9[%c0_37, %c0_38, %c0_39] : memref<3x32x1xf32, #tpu.memory_space<vmem>>, vector<1x32x1xf32>
    %34 = vector.shape_cast %33 : vector<1x32x1xf32> to vector<32x1xf32>
    %c0_40 = arith.constant 0 : index
    %c0_41 = arith.constant 0 : index
    %c0_42 = arith.constant 0 : index
    %35 = vector.load %arg10[%c0_40, %c0_41, %c0_42] : memref<3x32x1xf32, #tpu.memory_space<vmem>>, vector<1x32x1xf32>
    %36 = vector.shape_cast %35 : vector<1x32x1xf32> to vector<32x1xf32>
    %c0_43 = arith.constant 0 : index
    %c0_44 = arith.constant 0 : index
    %c0_45 = arith.constant 0 : index
    %37 = vector.load %arg15[%c0_43, %c0_44, %c0_45] : memref<3x32x1xf32, #tpu.memory_space<vmem>>, vector<1x32x1xf32>
    %38 = vector.shape_cast %37 : vector<1x32x1xf32> to vector<32x1xf32>
    %c0_46 = arith.constant 0 : index
    %c0_47 = arith.constant 0 : index
    %c0_48 = arith.constant 0 : index
    %39 = vector.load %arg16[%c0_46, %c0_47, %c0_48] : memref<3x32x1xf32, #tpu.memory_space<vmem>>, vector<1x32x1xf32>
    %40 = vector.shape_cast %39 : vector<1x32x1xf32> to vector<32x1xf32>
    %41 = arith.truncf %11 : vector<32x256xf32> to vector<32x256xbf16>
    %cst_49 = arith.constant dense<0.000000e+00> : vector<96x256xf32>
    %42 = tpu.matmul %15, %41, %cst_49 {dimension_numbers = #tpu.dot_dimension_numbers<[1], [0], [0], [1], [0, 0, 1, 1], [], []>} : vector<96x32xbf16>, vector<32x256xbf16>, vector<96x256xf32> -> vector<96x256xf32>
    %43 = vector.broadcast %17 : vector<96x1xf32> to vector<96x256xf32>
    %44 = arith.addf %42, %43 : vector<96x256xf32>
    %45 = vector.extract_strided_slice %44 {offsets = [0, 0], sizes = [32, 128], strides = [1, 1]} : vector<96x256xf32> to vector<32x128xf32>
    %46 = vector.extract_strided_slice %44 {offsets = [0, 128], sizes = [32, 128], strides = [1, 1]} : vector<96x256xf32> to vector<32x128xf32>
    %47 = vector.extract_strided_slice %44 {offsets = [32, 0], sizes = [32, 128], strides = [1, 1]} : vector<96x256xf32> to vector<32x128xf32>
    %48 = vector.extract_strided_slice %44 {offsets = [32, 128], sizes = [32, 128], strides = [1, 1]} : vector<96x256xf32> to vector<32x128xf32>
    %49 = vector.extract_strided_slice %44 {offsets = [64, 0], sizes = [32, 128], strides = [1, 1]} : vector<96x256xf32> to vector<32x128xf32>
    %50 = vector.extract_strided_slice %44 {offsets = [64, 128], sizes = [32, 128], strides = [1, 1]} : vector<96x256xf32> to vector<32x128xf32>
    %51 = arith.mulf %45, %47 : vector<32x128xf32>
    %cst_50 = arith.constant dense<0.000000e+00> : vector<32x128xf32>
    %52 = tpu.matmul %12, %51, %cst_50 {dimension_numbers = #tpu.dot_dimension_numbers<[1], [0], [0], [1], [0, 0, 1, 1], [], []>} : vector<32x32xf32>, vector<32x128xf32>, vector<32x128xf32> -> vector<32x128xf32>
    %53 = arith.mulf %45, %48 : vector<32x128xf32>
    %cst_51 = arith.constant dense<0.000000e+00> : vector<32x128xf32>
    %54 = tpu.matmul %12, %53, %cst_51 {dimension_numbers = #tpu.dot_dimension_numbers<[1], [0], [0], [1], [0, 0, 1, 1], [], []>} : vector<32x32xf32>, vector<32x128xf32>, vector<32x128xf32> -> vector<32x128xf32>
    %55 = arith.maximumf %52, %54 : vector<32x128xf32>
    %56 = arith.subf %52, %55 : vector<32x128xf32>
    %57 = math.exp %56 : vector<32x128xf32>
    %58 = arith.subf %54, %55 : vector<32x128xf32>
    %59 = math.exp %58 : vector<32x128xf32>
    %60 = arith.addf %57, %59 : vector<32x128xf32>
    %61 = tpu.reciprocal %60 {approx = true} : vector<32x128xf32> -> vector<32x128xf32>
    %62 = arith.mulf %57, %61 : vector<32x128xf32>
    %63 = arith.mulf %62, %49 : vector<32x128xf32>
    %64 = arith.mulf %59, %61 : vector<32x128xf32>
    %65 = arith.mulf %64, %50 : vector<32x128xf32>
    %66 = arith.addf %63, %65 : vector<32x128xf32>
    %67 = arith.mulf %46, %47 : vector<32x128xf32>
    %cst_52 = arith.constant dense<0.000000e+00> : vector<32x128xf32>
    %68 = tpu.matmul %12, %67, %cst_52 {dimension_numbers = #tpu.dot_dimension_numbers<[1], [0], [0], [1], [0, 0, 1, 1], [], []>} : vector<32x32xf32>, vector<32x128xf32>, vector<32x128xf32> -> vector<32x128xf32>
    %69 = arith.mulf %46, %48 : vector<32x128xf32>
    %cst_53 = arith.constant dense<0.000000e+00> : vector<32x128xf32>
    %70 = tpu.matmul %12, %69, %cst_53 {dimension_numbers = #tpu.dot_dimension_numbers<[1], [0], [0], [1], [0, 0, 1, 1], [], []>} : vector<32x32xf32>, vector<32x128xf32>, vector<32x128xf32> -> vector<32x128xf32>
    %71 = arith.maximumf %68, %70 : vector<32x128xf32>
    %72 = arith.subf %68, %71 : vector<32x128xf32>
    %73 = math.exp %72 : vector<32x128xf32>
    %74 = arith.subf %70, %71 : vector<32x128xf32>
    %75 = math.exp %74 : vector<32x128xf32>
    %76 = arith.addf %73, %75 : vector<32x128xf32>
    %77 = tpu.reciprocal %76 {approx = true} : vector<32x128xf32> -> vector<32x128xf32>
    %78 = arith.mulf %73, %77 : vector<32x128xf32>
    %79 = arith.mulf %78, %49 : vector<32x128xf32>
    %80 = arith.mulf %75, %77 : vector<32x128xf32>
    %81 = arith.mulf %80, %50 : vector<32x128xf32>
    %82 = arith.addf %79, %81 : vector<32x128xf32>
    %83 = tpu.concatenate %66, %82 in 1 : vector<32x128xf32>, vector<32x128xf32> -> vector<32x256xf32>
    %84 = arith.truncf %83 : vector<32x256xf32> to vector<32x256xbf16>
    %cst_54 = arith.constant dense<0.000000e+00> : vector<32x256xf32>
    %85 = tpu.matmul %20, %84, %cst_54 {dimension_numbers = #tpu.dot_dimension_numbers<[1], [0], [0], [1], [0, 0, 1, 1], [], []>} : vector<32x32xbf16>, vector<32x256xbf16>, vector<32x256xf32> -> vector<32x256xf32>
    %86 = vector.broadcast %22 : vector<32x1xf32> to vector<32x256xf32>
    %87 = arith.addf %85, %86 : vector<32x256xf32>
    %88 = arith.addf %11, %87 : vector<32x256xf32>
    %cst_55 = arith.constant dense<0.000000e+00> : vector<256xf32>
    %89 = vector.multi_reduction <add>, %88, %cst_55 [0] : vector<32x256xf32> to vector<256xf32>
    %90 = vector.shape_cast %89 : vector<256xf32> to vector<1x256xf32>
    %cst_56 = arith.constant 3.200000e+01 : f32
    %91 = vector.broadcast %cst_56 : f32 to vector<1x256xf32>
    %92 = arith.divf %90, %91 : vector<1x256xf32>
    %93 = vector.broadcast %92 : vector<1x256xf32> to vector<32x256xf32>
    %94 = arith.subf %88, %93 : vector<32x256xf32>
    %95 = arith.mulf %94, %94 : vector<32x256xf32>
    %cst_57 = arith.constant dense<0.000000e+00> : vector<256xf32>
    %96 = vector.multi_reduction <add>, %95, %cst_57 [0] : vector<32x256xf32> to vector<256xf32>
    %97 = vector.shape_cast %96 : vector<256xf32> to vector<1x256xf32>
    %cst_58 = arith.constant 3.200000e+01 : f32
    %98 = vector.broadcast %cst_58 : f32 to vector<1x256xf32>
    %99 = arith.divf %97, %98 : vector<1x256xf32>
    %100 = vector.broadcast %92 : vector<1x256xf32> to vector<32x256xf32>
    %101 = arith.subf %88, %100 : vector<32x256xf32>
    %cst_59 = arith.constant 9.99999974E-6 : f32
    %102 = vector.broadcast %cst_59 : f32 to vector<1x256xf32>
    %103 = arith.addf %99, %102 : vector<1x256xf32>
    %104 = math.rsqrt %103 : vector<1x256xf32>
    %105 = vector.broadcast %104 : vector<1x256xf32> to vector<32x256xf32>
    %106 = arith.mulf %101, %105 : vector<32x256xf32>
    %107 = vector.broadcast %34 : vector<32x1xf32> to vector<32x256xf32>
    %108 = arith.mulf %106, %107 : vector<32x256xf32>
    %109 = vector.broadcast %36 : vector<32x1xf32> to vector<32x256xf32>
    %110 = arith.addf %108, %109 : vector<32x256xf32>
    %111 = arith.truncf %110 : vector<32x256xf32> to vector<32x256xbf16>
    %cst_60 = arith.constant dense<0.000000e+00> : vector<32x256xf32>
    %112 = tpu.matmul %25, %111, %cst_60 {dimension_numbers = #tpu.dot_dimension_numbers<[1], [0], [0], [1], [0, 0, 1, 1], [], []>} : vector<32x32xbf16>, vector<32x256xbf16>, vector<32x256xf32> -> vector<32x256xf32>
    %113 = vector.broadcast %27 : vector<32x1xf32> to vector<32x256xf32>
    %114 = arith.addf %112, %113 : vector<32x256xf32>
    %cst_61 = arith.constant 0.000000e+00 : f32
    %115 = vector.broadcast %cst_61 : f32 to vector<32x256xf32>
    %116 = arith.maximumf %114, %115 : vector<32x256xf32>
    %117 = arith.truncf %116 : vector<32x256xf32> to vector<32x256xbf16>
    %cst_62 = arith.constant dense<0.000000e+00> : vector<32x256xf32>
    %118 = tpu.matmul %30, %117, %cst_62 {dimension_numbers = #tpu.dot_dimension_numbers<[1], [0], [0], [1], [0, 0, 1, 1], [], []>} : vector<32x32xbf16>, vector<32x256xbf16>, vector<32x256xf32> -> vector<32x256xf32>
    %119 = vector.broadcast %32 : vector<32x1xf32> to vector<32x256xf32>
    %120 = arith.addf %118, %119 : vector<32x256xf32>
    %121 = arith.addf %110, %120 : vector<32x256xf32>
    %cst_63 = arith.constant dense<0.000000e+00> : vector<256xf32>
    %122 = vector.multi_reduction <add>, %121, %cst_63 [0] : vector<32x256xf32> to vector<256xf32>
    %123 = vector.shape_cast %122 : vector<256xf32> to vector<1x256xf32>
    %cst_64 = arith.constant 3.200000e+01 : f32
    %124 = vector.broadcast %cst_64 : f32 to vector<1x256xf32>
    %125 = arith.divf %123, %124 : vector<1x256xf32>
    %126 = vector.broadcast %125 : vector<1x256xf32> to vector<32x256xf32>
    %127 = arith.subf %121, %126 : vector<32x256xf32>
    %128 = arith.mulf %127, %127 : vector<32x256xf32>
    %cst_65 = arith.constant dense<0.000000e+00> : vector<256xf32>
    %129 = vector.multi_reduction <add>, %128, %cst_65 [0] : vector<32x256xf32> to vector<256xf32>
    %130 = vector.shape_cast %129 : vector<256xf32> to vector<1x256xf32>
    %cst_66 = arith.constant 3.200000e+01 : f32
    %131 = vector.broadcast %cst_66 : f32 to vector<1x256xf32>
    %132 = arith.divf %130, %131 : vector<1x256xf32>
    %133 = vector.broadcast %125 : vector<1x256xf32> to vector<32x256xf32>
    %134 = arith.subf %121, %133 : vector<32x256xf32>
    %cst_67 = arith.constant 9.99999974E-6 : f32
    %135 = vector.broadcast %cst_67 : f32 to vector<1x256xf32>
    %136 = arith.addf %132, %135 : vector<1x256xf32>
    %137 = math.rsqrt %136 : vector<1x256xf32>
    %138 = vector.broadcast %137 : vector<1x256xf32> to vector<32x256xf32>
    %139 = arith.mulf %134, %138 : vector<32x256xf32>
    %140 = vector.broadcast %38 : vector<32x1xf32> to vector<32x256xf32>
    %141 = arith.mulf %139, %140 : vector<32x256xf32>
    %142 = vector.broadcast %40 : vector<32x1xf32> to vector<32x256xf32>
    %143 = arith.addf %141, %142 : vector<32x256xf32>
    %c1_68 = arith.constant 1 : index
    %c0_69 = arith.constant 0 : index
    %c0_70 = arith.constant 0 : index
    %144 = vector.load %arg5[%c1_68, %c0_69, %c0_70] : memref<3x96x32xf32, #tpu.memory_space<vmem>>, vector<1x96x32xf32>
    %145 = vector.shape_cast %144 : vector<1x96x32xf32> to vector<96x32xf32>
    %146 = arith.truncf %145 : vector<96x32xf32> to vector<96x32xbf16>
    %c1_71 = arith.constant 1 : index
    %c0_72 = arith.constant 0 : index
    %c0_73 = arith.constant 0 : index
    %147 = vector.load %arg6[%c1_71, %c0_72, %c0_73] : memref<3x96x1xf32, #tpu.memory_space<vmem>>, vector<1x96x1xf32>
    %148 = vector.shape_cast %147 : vector<1x96x1xf32> to vector<96x1xf32>
    %c1_74 = arith.constant 1 : index
    %c0_75 = arith.constant 0 : index
    %c0_76 = arith.constant 0 : index
    %149 = vector.load %arg7[%c1_74, %c0_75, %c0_76] : memref<3x32x32xf32, #tpu.memory_space<vmem>>, vector<1x32x32xf32>
    %150 = vector.shape_cast %149 : vector<1x32x32xf32> to vector<32x32xf32>
    %151 = arith.truncf %150 : vector<32x32xf32> to vector<32x32xbf16>
    %c1_77 = arith.constant 1 : index
    %c0_78 = arith.constant 0 : index
    %c0_79 = arith.constant 0 : index
    %152 = vector.load %arg8[%c1_77, %c0_78, %c0_79] : memref<3x32x1xf32, #tpu.memory_space<vmem>>, vector<1x32x1xf32>
    %153 = vector.shape_cast %152 : vector<1x32x1xf32> to vector<32x1xf32>
    %c1_80 = arith.constant 1 : index
    %c0_81 = arith.constant 0 : index
    %c0_82 = arith.constant 0 : index
    %154 = vector.load %arg11[%c1_80, %c0_81, %c0_82] : memref<3x32x32xf32, #tpu.memory_space<vmem>>, vector<1x32x32xf32>
    %155 = vector.shape_cast %154 : vector<1x32x32xf32> to vector<32x32xf32>
    %156 = arith.truncf %155 : vector<32x32xf32> to vector<32x32xbf16>
    %c1_83 = arith.constant 1 : index
    %c0_84 = arith.constant 0 : index
    %c0_85 = arith.constant 0 : index
    %157 = vector.load %arg12[%c1_83, %c0_84, %c0_85] : memref<3x32x1xf32, #tpu.memory_space<vmem>>, vector<1x32x1xf32>
    %158 = vector.shape_cast %157 : vector<1x32x1xf32> to vector<32x1xf32>
    %c1_86 = arith.constant 1 : index
    %c0_87 = arith.constant 0 : index
    %c0_88 = arith.constant 0 : index
    %159 = vector.load %arg13[%c1_86, %c0_87, %c0_88] : memref<3x32x32xf32, #tpu.memory_space<vmem>>, vector<1x32x32xf32>
    %160 = vector.shape_cast %159 : vector<1x32x32xf32> to vector<32x32xf32>
    %161 = arith.truncf %160 : vector<32x32xf32> to vector<32x32xbf16>
    %c1_89 = arith.constant 1 : index
    %c0_90 = arith.constant 0 : index
    %c0_91 = arith.constant 0 : index
    %162 = vector.load %arg14[%c1_89, %c0_90, %c0_91] : memref<3x32x1xf32, #tpu.memory_space<vmem>>, vector<1x32x1xf32>
    %163 = vector.shape_cast %162 : vector<1x32x1xf32> to vector<32x1xf32>
    %c1_92 = arith.constant 1 : index
    %c0_93 = arith.constant 0 : index
    %c0_94 = arith.constant 0 : index
    %164 = vector.load %arg9[%c1_92, %c0_93, %c0_94] : memref<3x32x1xf32, #tpu.memory_space<vmem>>, vector<1x32x1xf32>
    %165 = vector.shape_cast %164 : vector<1x32x1xf32> to vector<32x1xf32>
    %c1_95 = arith.constant 1 : index
    %c0_96 = arith.constant 0 : index
    %c0_97 = arith.constant 0 : index
    %166 = vector.load %arg10[%c1_95, %c0_96, %c0_97] : memref<3x32x1xf32, #tpu.memory_space<vmem>>, vector<1x32x1xf32>
    %167 = vector.shape_cast %166 : vector<1x32x1xf32> to vector<32x1xf32>
    %c1_98 = arith.constant 1 : index
    %c0_99 = arith.constant 0 : index
    %c0_100 = arith.constant 0 : index
    %168 = vector.load %arg15[%c1_98, %c0_99, %c0_100] : memref<3x32x1xf32, #tpu.memory_space<vmem>>, vector<1x32x1xf32>
    %169 = vector.shape_cast %168 : vector<1x32x1xf32> to vector<32x1xf32>
    %c1_101 = arith.constant 1 : index
    %c0_102 = arith.constant 0 : index
    %c0_103 = arith.constant 0 : index
    %170 = vector.load %arg16[%c1_101, %c0_102, %c0_103] : memref<3x32x1xf32, #tpu.memory_space<vmem>>, vector<1x32x1xf32>
    %171 = vector.shape_cast %170 : vector<1x32x1xf32> to vector<32x1xf32>
    %172 = arith.truncf %143 : vector<32x256xf32> to vector<32x256xbf16>
    %cst_104 = arith.constant dense<0.000000e+00> : vector<96x256xf32>
    %173 = tpu.matmul %146, %172, %cst_104 {dimension_numbers = #tpu.dot_dimension_numbers<[1], [0], [0], [1], [0, 0, 1, 1], [], []>} : vector<96x32xbf16>, vector<32x256xbf16>, vector<96x256xf32> -> vector<96x256xf32>
    %174 = vector.broadcast %148 : vector<96x1xf32> to vector<96x256xf32>
    %175 = arith.addf %173, %174 : vector<96x256xf32>
    %176 = vector.extract_strided_slice %175 {offsets = [0, 0], sizes = [32, 128], strides = [1, 1]} : vector<96x256xf32> to vector<32x128xf32>
    %177 = vector.extract_strided_slice %175 {offsets = [0, 128], sizes = [32, 128], strides = [1, 1]} : vector<96x256xf32> to vector<32x128xf32>
    %178 = vector.extract_strided_slice %175 {offsets = [32, 0], sizes = [32, 128], strides = [1, 1]} : vector<96x256xf32> to vector<32x128xf32>
    %179 = vector.extract_strided_slice %175 {offsets = [32, 128], sizes = [32, 128], strides = [1, 1]} : vector<96x256xf32> to vector<32x128xf32>
    %180 = vector.extract_strided_slice %175 {offsets = [64, 0], sizes = [32, 128], strides = [1, 1]} : vector<96x256xf32> to vector<32x128xf32>
    %181 = vector.extract_strided_slice %175 {offsets = [64, 128], sizes = [32, 128], strides = [1, 1]} : vector<96x256xf32> to vector<32x128xf32>
    %182 = arith.mulf %176, %178 : vector<32x128xf32>
    %cst_105 = arith.constant dense<0.000000e+00> : vector<32x128xf32>
    %183 = tpu.matmul %12, %182, %cst_105 {dimension_numbers = #tpu.dot_dimension_numbers<[1], [0], [0], [1], [0, 0, 1, 1], [], []>} : vector<32x32xf32>, vector<32x128xf32>, vector<32x128xf32> -> vector<32x128xf32>
    %184 = arith.mulf %176, %179 : vector<32x128xf32>
    %cst_106 = arith.constant dense<0.000000e+00> : vector<32x128xf32>
    %185 = tpu.matmul %12, %184, %cst_106 {dimension_numbers = #tpu.dot_dimension_numbers<[1], [0], [0], [1], [0, 0, 1, 1], [], []>} : vector<32x32xf32>, vector<32x128xf32>, vector<32x128xf32> -> vector<32x128xf32>
    %186 = arith.maximumf %183, %185 : vector<32x128xf32>
    %187 = arith.subf %183, %186 : vector<32x128xf32>
    %188 = math.exp %187 : vector<32x128xf32>
    %189 = arith.subf %185, %186 : vector<32x128xf32>
    %190 = math.exp %189 : vector<32x128xf32>
    %191 = arith.addf %188, %190 : vector<32x128xf32>
    %192 = tpu.reciprocal %191 {approx = true} : vector<32x128xf32> -> vector<32x128xf32>
    %193 = arith.mulf %188, %192 : vector<32x128xf32>
    %194 = arith.mulf %193, %180 : vector<32x128xf32>
    %195 = arith.mulf %190, %192 : vector<32x128xf32>
    %196 = arith.mulf %195, %181 : vector<32x128xf32>
    %197 = arith.addf %194, %196 : vector<32x128xf32>
    %198 = arith.mulf %177, %178 : vector<32x128xf32>
    %cst_107 = arith.constant dense<0.000000e+00> : vector<32x128xf32>
    %199 = tpu.matmul %12, %198, %cst_107 {dimension_numbers = #tpu.dot_dimension_numbers<[1], [0], [0], [1], [0, 0, 1, 1], [], []>} : vector<32x32xf32>, vector<32x128xf32>, vector<32x128xf32> -> vector<32x128xf32>
    %200 = arith.mulf %177, %179 : vector<32x128xf32>
    %cst_108 = arith.constant dense<0.000000e+00> : vector<32x128xf32>
    %201 = tpu.matmul %12, %200, %cst_108 {dimension_numbers = #tpu.dot_dimension_numbers<[1], [0], [0], [1], [0, 0, 1, 1], [], []>} : vector<32x32xf32>, vector<32x128xf32>, vector<32x128xf32> -> vector<32x128xf32>
    %202 = arith.maximumf %199, %201 : vector<32x128xf32>
    %203 = arith.subf %199, %202 : vector<32x128xf32>
    %204 = math.exp %203 : vector<32x128xf32>
    %205 = arith.subf %201, %202 : vector<32x128xf32>
    %206 = math.exp %205 : vector<32x128xf32>
    %207 = arith.addf %204, %206 : vector<32x128xf32>
    %208 = tpu.reciprocal %207 {approx = true} : vector<32x128xf32> -> vector<32x128xf32>
    %209 = arith.mulf %204, %208 : vector<32x128xf32>
    %210 = arith.mulf %209, %180 : vector<32x128xf32>
    %211 = arith.mulf %206, %208 : vector<32x128xf32>
    %212 = arith.mulf %211, %181 : vector<32x128xf32>
    %213 = arith.addf %210, %212 : vector<32x128xf32>
    %214 = tpu.concatenate %197, %213 in 1 : vector<32x128xf32>, vector<32x128xf32> -> vector<32x256xf32>
    %215 = arith.truncf %214 : vector<32x256xf32> to vector<32x256xbf16>
    %cst_109 = arith.constant dense<0.000000e+00> : vector<32x256xf32>
    %216 = tpu.matmul %151, %215, %cst_109 {dimension_numbers = #tpu.dot_dimension_numbers<[1], [0], [0], [1], [0, 0, 1, 1], [], []>} : vector<32x32xbf16>, vector<32x256xbf16>, vector<32x256xf32> -> vector<32x256xf32>
    %217 = vector.broadcast %153 : vector<32x1xf32> to vector<32x256xf32>
    %218 = arith.addf %216, %217 : vector<32x256xf32>
    %219 = arith.addf %143, %218 : vector<32x256xf32>
    %cst_110 = arith.constant dense<0.000000e+00> : vector<256xf32>
    %220 = vector.multi_reduction <add>, %219, %cst_110 [0] : vector<32x256xf32> to vector<256xf32>
    %221 = vector.shape_cast %220 : vector<256xf32> to vector<1x256xf32>
    %cst_111 = arith.constant 3.200000e+01 : f32
    %222 = vector.broadcast %cst_111 : f32 to vector<1x256xf32>
    %223 = arith.divf %221, %222 : vector<1x256xf32>
    %224 = vector.broadcast %223 : vector<1x256xf32> to vector<32x256xf32>
    %225 = arith.subf %219, %224 : vector<32x256xf32>
    %226 = arith.mulf %225, %225 : vector<32x256xf32>
    %cst_112 = arith.constant dense<0.000000e+00> : vector<256xf32>
    %227 = vector.multi_reduction <add>, %226, %cst_112 [0] : vector<32x256xf32> to vector<256xf32>
    %228 = vector.shape_cast %227 : vector<256xf32> to vector<1x256xf32>
    %cst_113 = arith.constant 3.200000e+01 : f32
    %229 = vector.broadcast %cst_113 : f32 to vector<1x256xf32>
    %230 = arith.divf %228, %229 : vector<1x256xf32>
    %231 = vector.broadcast %223 : vector<1x256xf32> to vector<32x256xf32>
    %232 = arith.subf %219, %231 : vector<32x256xf32>
    %cst_114 = arith.constant 9.99999974E-6 : f32
    %233 = vector.broadcast %cst_114 : f32 to vector<1x256xf32>
    %234 = arith.addf %230, %233 : vector<1x256xf32>
    %235 = math.rsqrt %234 : vector<1x256xf32>
    %236 = vector.broadcast %235 : vector<1x256xf32> to vector<32x256xf32>
    %237 = arith.mulf %232, %236 : vector<32x256xf32>
    %238 = vector.broadcast %165 : vector<32x1xf32> to vector<32x256xf32>
    %239 = arith.mulf %237, %238 : vector<32x256xf32>
    %240 = vector.broadcast %167 : vector<32x1xf32> to vector<32x256xf32>
    %241 = arith.addf %239, %240 : vector<32x256xf32>
    %242 = arith.truncf %241 : vector<32x256xf32> to vector<32x256xbf16>
    %cst_115 = arith.constant dense<0.000000e+00> : vector<32x256xf32>
    %243 = tpu.matmul %156, %242, %cst_115 {dimension_numbers = #tpu.dot_dimension_numbers<[1], [0], [0], [1], [0, 0, 1, 1], [], []>} : vector<32x32xbf16>, vector<32x256xbf16>, vector<32x256xf32> -> vector<32x256xf32>
    %244 = vector.broadcast %158 : vector<32x1xf32> to vector<32x256xf32>
    %245 = arith.addf %243, %244 : vector<32x256xf32>
    %cst_116 = arith.constant 0.000000e+00 : f32
    %246 = vector.broadcast %cst_116 : f32 to vector<32x256xf32>
    %247 = arith.maximumf %245, %246 : vector<32x256xf32>
    %248 = arith.truncf %247 : vector<32x256xf32> to vector<32x256xbf16>
    %cst_117 = arith.constant dense<0.000000e+00> : vector<32x256xf32>
    %249 = tpu.matmul %161, %248, %cst_117 {dimension_numbers = #tpu.dot_dimension_numbers<[1], [0], [0], [1], [0, 0, 1, 1], [], []>} : vector<32x32xbf16>, vector<32x256xbf16>, vector<32x256xf32> -> vector<32x256xf32>
    %250 = vector.broadcast %163 : vector<32x1xf32> to vector<32x256xf32>
    %251 = arith.addf %249, %250 : vector<32x256xf32>
    %252 = arith.addf %241, %251 : vector<32x256xf32>
    %cst_118 = arith.constant dense<0.000000e+00> : vector<256xf32>
    %253 = vector.multi_reduction <add>, %252, %cst_118 [0] : vector<32x256xf32> to vector<256xf32>
    %254 = vector.shape_cast %253 : vector<256xf32> to vector<1x256xf32>
    %cst_119 = arith.constant 3.200000e+01 : f32
    %255 = vector.broadcast %cst_119 : f32 to vector<1x256xf32>
    %256 = arith.divf %254, %255 : vector<1x256xf32>
    %257 = vector.broadcast %256 : vector<1x256xf32> to vector<32x256xf32>
    %258 = arith.subf %252, %257 : vector<32x256xf32>
    %259 = arith.mulf %258, %258 : vector<32x256xf32>
    %cst_120 = arith.constant dense<0.000000e+00> : vector<256xf32>
    %260 = vector.multi_reduction <add>, %259, %cst_120 [0] : vector<32x256xf32> to vector<256xf32>
    %261 = vector.shape_cast %260 : vector<256xf32> to vector<1x256xf32>
    %cst_121 = arith.constant 3.200000e+01 : f32
    %262 = vector.broadcast %cst_121 : f32 to vector<1x256xf32>
    %263 = arith.divf %261, %262 : vector<1x256xf32>
    %264 = vector.broadcast %256 : vector<1x256xf32> to vector<32x256xf32>
    %265 = arith.subf %252, %264 : vector<32x256xf32>
    %cst_122 = arith.constant 9.99999974E-6 : f32
    %266 = vector.broadcast %cst_122 : f32 to vector<1x256xf32>
    %267 = arith.addf %263, %266 : vector<1x256xf32>
    %268 = math.rsqrt %267 : vector<1x256xf32>
    %269 = vector.broadcast %268 : vector<1x256xf32> to vector<32x256xf32>
    %270 = arith.mulf %265, %269 : vector<32x256xf32>
    %271 = vector.broadcast %169 : vector<32x1xf32> to vector<32x256xf32>
    %272 = arith.mulf %270, %271 : vector<32x256xf32>
    %273 = vector.broadcast %171 : vector<32x1xf32> to vector<32x256xf32>
    %274 = arith.addf %272, %273 : vector<32x256xf32>
    %c2 = arith.constant 2 : index
    %c0_123 = arith.constant 0 : index
    %c0_124 = arith.constant 0 : index
    %275 = vector.load %arg5[%c2, %c0_123, %c0_124] : memref<3x96x32xf32, #tpu.memory_space<vmem>>, vector<1x96x32xf32>
    %276 = vector.shape_cast %275 : vector<1x96x32xf32> to vector<96x32xf32>
    %277 = arith.truncf %276 : vector<96x32xf32> to vector<96x32xbf16>
    %c2_125 = arith.constant 2 : index
    %c0_126 = arith.constant 0 : index
    %c0_127 = arith.constant 0 : index
    %278 = vector.load %arg6[%c2_125, %c0_126, %c0_127] : memref<3x96x1xf32, #tpu.memory_space<vmem>>, vector<1x96x1xf32>
    %279 = vector.shape_cast %278 : vector<1x96x1xf32> to vector<96x1xf32>
    %c2_128 = arith.constant 2 : index
    %c0_129 = arith.constant 0 : index
    %c0_130 = arith.constant 0 : index
    %280 = vector.load %arg7[%c2_128, %c0_129, %c0_130] : memref<3x32x32xf32, #tpu.memory_space<vmem>>, vector<1x32x32xf32>
    %281 = vector.shape_cast %280 : vector<1x32x32xf32> to vector<32x32xf32>
    %282 = arith.truncf %281 : vector<32x32xf32> to vector<32x32xbf16>
    %c2_131 = arith.constant 2 : index
    %c0_132 = arith.constant 0 : index
    %c0_133 = arith.constant 0 : index
    %283 = vector.load %arg8[%c2_131, %c0_132, %c0_133] : memref<3x32x1xf32, #tpu.memory_space<vmem>>, vector<1x32x1xf32>
    %284 = vector.shape_cast %283 : vector<1x32x1xf32> to vector<32x1xf32>
    %c2_134 = arith.constant 2 : index
    %c0_135 = arith.constant 0 : index
    %c0_136 = arith.constant 0 : index
    %285 = vector.load %arg11[%c2_134, %c0_135, %c0_136] : memref<3x32x32xf32, #tpu.memory_space<vmem>>, vector<1x32x32xf32>
    %286 = vector.shape_cast %285 : vector<1x32x32xf32> to vector<32x32xf32>
    %287 = arith.truncf %286 : vector<32x32xf32> to vector<32x32xbf16>
    %c2_137 = arith.constant 2 : index
    %c0_138 = arith.constant 0 : index
    %c0_139 = arith.constant 0 : index
    %288 = vector.load %arg12[%c2_137, %c0_138, %c0_139] : memref<3x32x1xf32, #tpu.memory_space<vmem>>, vector<1x32x1xf32>
    %289 = vector.shape_cast %288 : vector<1x32x1xf32> to vector<32x1xf32>
    %c2_140 = arith.constant 2 : index
    %c0_141 = arith.constant 0 : index
    %c0_142 = arith.constant 0 : index
    %290 = vector.load %arg13[%c2_140, %c0_141, %c0_142] : memref<3x32x32xf32, #tpu.memory_space<vmem>>, vector<1x32x32xf32>
    %291 = vector.shape_cast %290 : vector<1x32x32xf32> to vector<32x32xf32>
    %292 = arith.truncf %291 : vector<32x32xf32> to vector<32x32xbf16>
    %c2_143 = arith.constant 2 : index
    %c0_144 = arith.constant 0 : index
    %c0_145 = arith.constant 0 : index
    %293 = vector.load %arg14[%c2_143, %c0_144, %c0_145] : memref<3x32x1xf32, #tpu.memory_space<vmem>>, vector<1x32x1xf32>
    %294 = vector.shape_cast %293 : vector<1x32x1xf32> to vector<32x1xf32>
    %c2_146 = arith.constant 2 : index
    %c0_147 = arith.constant 0 : index
    %c0_148 = arith.constant 0 : index
    %295 = vector.load %arg9[%c2_146, %c0_147, %c0_148] : memref<3x32x1xf32, #tpu.memory_space<vmem>>, vector<1x32x1xf32>
    %296 = vector.shape_cast %295 : vector<1x32x1xf32> to vector<32x1xf32>
    %c2_149 = arith.constant 2 : index
    %c0_150 = arith.constant 0 : index
    %c0_151 = arith.constant 0 : index
    %297 = vector.load %arg10[%c2_149, %c0_150, %c0_151] : memref<3x32x1xf32, #tpu.memory_space<vmem>>, vector<1x32x1xf32>
    %298 = vector.shape_cast %297 : vector<1x32x1xf32> to vector<32x1xf32>
    %c2_152 = arith.constant 2 : index
    %c0_153 = arith.constant 0 : index
    %c0_154 = arith.constant 0 : index
    %299 = vector.load %arg15[%c2_152, %c0_153, %c0_154] : memref<3x32x1xf32, #tpu.memory_space<vmem>>, vector<1x32x1xf32>
    %300 = vector.shape_cast %299 : vector<1x32x1xf32> to vector<32x1xf32>
    %c2_155 = arith.constant 2 : index
    %c0_156 = arith.constant 0 : index
    %c0_157 = arith.constant 0 : index
    %301 = vector.load %arg16[%c2_155, %c0_156, %c0_157] : memref<3x32x1xf32, #tpu.memory_space<vmem>>, vector<1x32x1xf32>
    %302 = vector.shape_cast %301 : vector<1x32x1xf32> to vector<32x1xf32>
    %303 = arith.truncf %274 : vector<32x256xf32> to vector<32x256xbf16>
    %cst_158 = arith.constant dense<0.000000e+00> : vector<96x256xf32>
    %304 = tpu.matmul %277, %303, %cst_158 {dimension_numbers = #tpu.dot_dimension_numbers<[1], [0], [0], [1], [0, 0, 1, 1], [], []>} : vector<96x32xbf16>, vector<32x256xbf16>, vector<96x256xf32> -> vector<96x256xf32>
    %305 = vector.broadcast %279 : vector<96x1xf32> to vector<96x256xf32>
    %306 = arith.addf %304, %305 : vector<96x256xf32>
    %307 = vector.extract_strided_slice %306 {offsets = [0, 0], sizes = [32, 128], strides = [1, 1]} : vector<96x256xf32> to vector<32x128xf32>
    %308 = vector.extract_strided_slice %306 {offsets = [0, 128], sizes = [32, 128], strides = [1, 1]} : vector<96x256xf32> to vector<32x128xf32>
    %309 = vector.extract_strided_slice %306 {offsets = [32, 0], sizes = [32, 128], strides = [1, 1]} : vector<96x256xf32> to vector<32x128xf32>
    %310 = vector.extract_strided_slice %306 {offsets = [32, 128], sizes = [32, 128], strides = [1, 1]} : vector<96x256xf32> to vector<32x128xf32>
    %311 = vector.extract_strided_slice %306 {offsets = [64, 0], sizes = [32, 128], strides = [1, 1]} : vector<96x256xf32> to vector<32x128xf32>
    %312 = vector.extract_strided_slice %306 {offsets = [64, 128], sizes = [32, 128], strides = [1, 1]} : vector<96x256xf32> to vector<32x128xf32>
    %313 = arith.mulf %307, %309 : vector<32x128xf32>
    %cst_159 = arith.constant dense<0.000000e+00> : vector<32x128xf32>
    %314 = tpu.matmul %12, %313, %cst_159 {dimension_numbers = #tpu.dot_dimension_numbers<[1], [0], [0], [1], [0, 0, 1, 1], [], []>} : vector<32x32xf32>, vector<32x128xf32>, vector<32x128xf32> -> vector<32x128xf32>
    %315 = arith.mulf %307, %310 : vector<32x128xf32>
    %cst_160 = arith.constant dense<0.000000e+00> : vector<32x128xf32>
    %316 = tpu.matmul %12, %315, %cst_160 {dimension_numbers = #tpu.dot_dimension_numbers<[1], [0], [0], [1], [0, 0, 1, 1], [], []>} : vector<32x32xf32>, vector<32x128xf32>, vector<32x128xf32> -> vector<32x128xf32>
    %317 = arith.maximumf %314, %316 : vector<32x128xf32>
    %318 = arith.subf %314, %317 : vector<32x128xf32>
    %319 = math.exp %318 : vector<32x128xf32>
    %320 = arith.subf %316, %317 : vector<32x128xf32>
    %321 = math.exp %320 : vector<32x128xf32>
    %322 = arith.addf %319, %321 : vector<32x128xf32>
    %323 = tpu.reciprocal %322 {approx = true} : vector<32x128xf32> -> vector<32x128xf32>
    %324 = arith.mulf %319, %323 : vector<32x128xf32>
    %325 = arith.mulf %324, %311 : vector<32x128xf32>
    %326 = arith.mulf %321, %323 : vector<32x128xf32>
    %327 = arith.mulf %326, %312 : vector<32x128xf32>
    %328 = arith.addf %325, %327 : vector<32x128xf32>
    %329 = arith.mulf %308, %309 : vector<32x128xf32>
    %cst_161 = arith.constant dense<0.000000e+00> : vector<32x128xf32>
    %330 = tpu.matmul %12, %329, %cst_161 {dimension_numbers = #tpu.dot_dimension_numbers<[1], [0], [0], [1], [0, 0, 1, 1], [], []>} : vector<32x32xf32>, vector<32x128xf32>, vector<32x128xf32> -> vector<32x128xf32>
    %331 = arith.mulf %308, %310 : vector<32x128xf32>
    %cst_162 = arith.constant dense<0.000000e+00> : vector<32x128xf32>
    %332 = tpu.matmul %12, %331, %cst_162 {dimension_numbers = #tpu.dot_dimension_numbers<[1], [0], [0], [1], [0, 0, 1, 1], [], []>} : vector<32x32xf32>, vector<32x128xf32>, vector<32x128xf32> -> vector<32x128xf32>
    %333 = arith.maximumf %330, %332 : vector<32x128xf32>
    %334 = arith.subf %330, %333 : vector<32x128xf32>
    %335 = math.exp %334 : vector<32x128xf32>
    %336 = arith.subf %332, %333 : vector<32x128xf32>
    %337 = math.exp %336 : vector<32x128xf32>
    %338 = arith.addf %335, %337 : vector<32x128xf32>
    %339 = tpu.reciprocal %338 {approx = true} : vector<32x128xf32> -> vector<32x128xf32>
    %340 = arith.mulf %335, %339 : vector<32x128xf32>
    %341 = arith.mulf %340, %311 : vector<32x128xf32>
    %342 = arith.mulf %337, %339 : vector<32x128xf32>
    %343 = arith.mulf %342, %312 : vector<32x128xf32>
    %344 = arith.addf %341, %343 : vector<32x128xf32>
    %345 = tpu.concatenate %328, %344 in 1 : vector<32x128xf32>, vector<32x128xf32> -> vector<32x256xf32>
    %346 = arith.truncf %345 : vector<32x256xf32> to vector<32x256xbf16>
    %cst_163 = arith.constant dense<0.000000e+00> : vector<32x256xf32>
    %347 = tpu.matmul %282, %346, %cst_163 {dimension_numbers = #tpu.dot_dimension_numbers<[1], [0], [0], [1], [0, 0, 1, 1], [], []>} : vector<32x32xbf16>, vector<32x256xbf16>, vector<32x256xf32> -> vector<32x256xf32>
    %348 = vector.broadcast %284 : vector<32x1xf32> to vector<32x256xf32>
    %349 = arith.addf %347, %348 : vector<32x256xf32>
    %350 = arith.addf %274, %349 : vector<32x256xf32>
    %cst_164 = arith.constant dense<0.000000e+00> : vector<256xf32>
    %351 = vector.multi_reduction <add>, %350, %cst_164 [0] : vector<32x256xf32> to vector<256xf32>
    %352 = vector.shape_cast %351 : vector<256xf32> to vector<1x256xf32>
    %cst_165 = arith.constant 3.200000e+01 : f32
    %353 = vector.broadcast %cst_165 : f32 to vector<1x256xf32>
    %354 = arith.divf %352, %353 : vector<1x256xf32>
    %355 = vector.broadcast %354 : vector<1x256xf32> to vector<32x256xf32>
    %356 = arith.subf %350, %355 : vector<32x256xf32>
    %357 = arith.mulf %356, %356 : vector<32x256xf32>
    %cst_166 = arith.constant dense<0.000000e+00> : vector<256xf32>
    %358 = vector.multi_reduction <add>, %357, %cst_166 [0] : vector<32x256xf32> to vector<256xf32>
    %359 = vector.shape_cast %358 : vector<256xf32> to vector<1x256xf32>
    %cst_167 = arith.constant 3.200000e+01 : f32
    %360 = vector.broadcast %cst_167 : f32 to vector<1x256xf32>
    %361 = arith.divf %359, %360 : vector<1x256xf32>
    %362 = vector.broadcast %354 : vector<1x256xf32> to vector<32x256xf32>
    %363 = arith.subf %350, %362 : vector<32x256xf32>
    %cst_168 = arith.constant 9.99999974E-6 : f32
    %364 = vector.broadcast %cst_168 : f32 to vector<1x256xf32>
    %365 = arith.addf %361, %364 : vector<1x256xf32>
    %366 = math.rsqrt %365 : vector<1x256xf32>
    %367 = vector.broadcast %366 : vector<1x256xf32> to vector<32x256xf32>
    %368 = arith.mulf %363, %367 : vector<32x256xf32>
    %369 = vector.broadcast %296 : vector<32x1xf32> to vector<32x256xf32>
    %370 = arith.mulf %368, %369 : vector<32x256xf32>
    %371 = vector.broadcast %298 : vector<32x1xf32> to vector<32x256xf32>
    %372 = arith.addf %370, %371 : vector<32x256xf32>
    %373 = arith.truncf %372 : vector<32x256xf32> to vector<32x256xbf16>
    %cst_169 = arith.constant dense<0.000000e+00> : vector<32x256xf32>
    %374 = tpu.matmul %287, %373, %cst_169 {dimension_numbers = #tpu.dot_dimension_numbers<[1], [0], [0], [1], [0, 0, 1, 1], [], []>} : vector<32x32xbf16>, vector<32x256xbf16>, vector<32x256xf32> -> vector<32x256xf32>
    %375 = vector.broadcast %289 : vector<32x1xf32> to vector<32x256xf32>
    %376 = arith.addf %374, %375 : vector<32x256xf32>
    %cst_170 = arith.constant 0.000000e+00 : f32
    %377 = vector.broadcast %cst_170 : f32 to vector<32x256xf32>
    %378 = arith.maximumf %376, %377 : vector<32x256xf32>
    %379 = arith.truncf %378 : vector<32x256xf32> to vector<32x256xbf16>
    %cst_171 = arith.constant dense<0.000000e+00> : vector<32x256xf32>
    %380 = tpu.matmul %292, %379, %cst_171 {dimension_numbers = #tpu.dot_dimension_numbers<[1], [0], [0], [1], [0, 0, 1, 1], [], []>} : vector<32x32xbf16>, vector<32x256xbf16>, vector<32x256xf32> -> vector<32x256xf32>
    %381 = vector.broadcast %294 : vector<32x1xf32> to vector<32x256xf32>
    %382 = arith.addf %380, %381 : vector<32x256xf32>
    %383 = arith.addf %372, %382 : vector<32x256xf32>
    %cst_172 = arith.constant dense<0.000000e+00> : vector<256xf32>
    %384 = vector.multi_reduction <add>, %383, %cst_172 [0] : vector<32x256xf32> to vector<256xf32>
    %385 = vector.shape_cast %384 : vector<256xf32> to vector<1x256xf32>
    %cst_173 = arith.constant 3.200000e+01 : f32
    %386 = vector.broadcast %cst_173 : f32 to vector<1x256xf32>
    %387 = arith.divf %385, %386 : vector<1x256xf32>
    %388 = vector.broadcast %387 : vector<1x256xf32> to vector<32x256xf32>
    %389 = arith.subf %383, %388 : vector<32x256xf32>
    %390 = arith.mulf %389, %389 : vector<32x256xf32>
    %cst_174 = arith.constant dense<0.000000e+00> : vector<256xf32>
    %391 = vector.multi_reduction <add>, %390, %cst_174 [0] : vector<32x256xf32> to vector<256xf32>
    %392 = vector.shape_cast %391 : vector<256xf32> to vector<1x256xf32>
    %cst_175 = arith.constant 3.200000e+01 : f32
    %393 = vector.broadcast %cst_175 : f32 to vector<1x256xf32>
    %394 = arith.divf %392, %393 : vector<1x256xf32>
    %395 = vector.broadcast %387 : vector<1x256xf32> to vector<32x256xf32>
    %396 = arith.subf %383, %395 : vector<32x256xf32>
    %cst_176 = arith.constant 9.99999974E-6 : f32
    %397 = vector.broadcast %cst_176 : f32 to vector<1x256xf32>
    %398 = arith.addf %394, %397 : vector<1x256xf32>
    %399 = math.rsqrt %398 : vector<1x256xf32>
    %400 = vector.broadcast %399 : vector<1x256xf32> to vector<32x256xf32>
    %401 = arith.mulf %396, %400 : vector<32x256xf32>
    %402 = vector.broadcast %300 : vector<32x1xf32> to vector<32x256xf32>
    %403 = arith.mulf %401, %402 : vector<32x256xf32>
    %404 = vector.broadcast %302 : vector<32x1xf32> to vector<32x256xf32>
    %405 = arith.addf %403, %404 : vector<32x256xf32>
    %c0_177 = arith.constant 0 : index
    %c0_178 = arith.constant 0 : index
    %406 = vector.load %arg17[%c0_177, %c0_178] : memref<4x32xf32, #tpu.memory_space<vmem>>, vector<4x32xf32>
    %cst_179 = arith.constant dense<0.000000e+00> : vector<4x256xf32>
    %407 = tpu.matmul %406, %405, %cst_179 {dimension_numbers = #tpu.dot_dimension_numbers<[1], [0], [0], [1], [0, 0, 1, 1], [], []>} : vector<4x32xf32>, vector<32x256xf32>, vector<4x256xf32> -> vector<4x256xf32>
    %c0_180 = arith.constant 0 : index
    %c0_181 = arith.constant 0 : index
    %408 = vector.load %arg18[%c0_180, %c0_181] : memref<4x1xf32, #tpu.memory_space<vmem>>, vector<4x1xf32>
    %409 = vector.broadcast %408 : vector<4x1xf32> to vector<4x256xf32>
    %410 = arith.addf %407, %409 : vector<4x256xf32>
    %411 = vector.extract_strided_slice %410 {offsets = [0, 0], sizes = [4, 128], strides = [1, 1]} : vector<4x256xf32> to vector<4x128xf32>
    %c0_182 = arith.constant 0 : index
    %c0_183 = arith.constant 0 : index
    %c0_184 = arith.constant 0 : index
    %412 = vector.load %arg19[%c0_182, %c0_183, %c0_184] : memref<2x4x128xf32, #tpu.memory_space<vmem>>, vector<1x4x128xf32>
    %413 = vector.shape_cast %412 : vector<1x4x128xf32> to vector<4x128xf32>
    %414 = vector.shape_cast %411 : vector<4x128xf32> to vector<1x4x128xf32>
    tpu.vector_store %arg19[%c0_182, %c0_183, %c0_184], %414 {strides = array<i32>} : memref<2x4x128xf32, #tpu.memory_space<vmem>>, vector<1x4x128xf32>,
    %415 = vector.extract_strided_slice %410 {offsets = [0, 128], sizes = [4, 128], strides = [1, 1]} : vector<4x256xf32> to vector<4x128xf32>
    %c1_185 = arith.constant 1 : index
    %c0_186 = arith.constant 0 : index
    %c0_187 = arith.constant 0 : index
    %416 = vector.load %arg19[%c1_185, %c0_186, %c0_187] : memref<2x4x128xf32, #tpu.memory_space<vmem>>, vector<1x4x128xf32>
    %417 = vector.shape_cast %416 : vector<1x4x128xf32> to vector<4x128xf32>
    %418 = vector.shape_cast %415 : vector<4x128xf32> to vector<1x4x128xf32>
    tpu.vector_store %arg19[%c1_185, %c0_186, %c0_187], %418 {strides = array<i32>} : memref<2x4x128xf32, #tpu.memory_space<vmem>>, vector<1x4x128xf32>,
    return
  }
  func.func @transform_0(%arg0: i32) -> (i32, i32, i32) {
    %c0_i32 = arith.constant 0 : i32
    %c0_i32_0 = arith.constant 0 : i32
    %c0_i32_1 = arith.constant 0 : i32
    return %c0_i32, %c0_i32_0, %arg0 : i32, i32, i32
  }
  func.func @transform_1(%arg0: i32) -> (i32, i32) {
    %c0_i32 = arith.constant 0 : i32
    %c0_i32_0 = arith.constant 0 : i32
    %c0_i32_1 = arith.constant 0 : i32
    return %c0_i32, %c0_i32_0 : i32, i32
  }
  func.func @transform_2(%arg0: i32) -> (i32, i32) {
    %c0_i32 = arith.constant 0 : i32
    %c0_i32_0 = arith.constant 0 : i32
    %c0_i32_1 = arith.constant 0 : i32
    return %c0_i32, %c0_i32_0 : i32, i32
  }
  func.func @transform_3(%arg0: i32) -> (i32, i32) {
    %c0_i32 = arith.constant 0 : i32
    %c0_i32_0 = arith.constant 0 : i32
    %c0_i32_1 = arith.constant 0 : i32
    return %c0_i32, %c0_i32_0 : i32, i32
  }
  func.func @transform_4(%arg0: i32) -> (i32, i32, i32) {
    %c0_i32 = arith.constant 0 : i32
    %c0_i32_0 = arith.constant 0 : i32
    %c0_i32_1 = arith.constant 0 : i32
    %c0_i32_2 = arith.constant 0 : i32
    return %c0_i32, %c0_i32_0, %c0_i32_1 : i32, i32, i32
  }
  func.func @transform_5(%arg0: i32) -> (i32, i32, i32) {
    %c0_i32 = arith.constant 0 : i32
    %c0_i32_0 = arith.constant 0 : i32
    %c0_i32_1 = arith.constant 0 : i32
    %c0_i32_2 = arith.constant 0 : i32
    return %c0_i32, %c0_i32_0, %c0_i32_1 : i32, i32, i32
  }
  func.func @transform_6(%arg0: i32) -> (i32, i32, i32) {
    %c0_i32 = arith.constant 0 : i32
    %c0_i32_0 = arith.constant 0 : i32
    %c0_i32_1 = arith.constant 0 : i32
    %c0_i32_2 = arith.constant 0 : i32
    return %c0_i32, %c0_i32_0, %c0_i32_1 : i32, i32, i32
  }
  func.func @transform_7(%arg0: i32) -> (i32, i32, i32) {
    %c0_i32 = arith.constant 0 : i32
    %c0_i32_0 = arith.constant 0 : i32
    %c0_i32_1 = arith.constant 0 : i32
    %c0_i32_2 = arith.constant 0 : i32
    return %c0_i32, %c0_i32_0, %c0_i32_1 : i32, i32, i32
  }
  func.func @transform_8(%arg0: i32) -> (i32, i32, i32) {
    %c0_i32 = arith.constant 0 : i32
    %c0_i32_0 = arith.constant 0 : i32
    %c0_i32_1 = arith.constant 0 : i32
    %c0_i32_2 = arith.constant 0 : i32
    return %c0_i32, %c0_i32_0, %c0_i32_1 : i32, i32, i32
  }
  func.func @transform_9(%arg0: i32) -> (i32, i32, i32) {
    %c0_i32 = arith.constant 0 : i32
    %c0_i32_0 = arith.constant 0 : i32
    %c0_i32_1 = arith.constant 0 : i32
    %c0_i32_2 = arith.constant 0 : i32
    return %c0_i32, %c0_i32_0, %c0_i32_1 : i32, i32, i32
  }
  func.func @transform_10(%arg0: i32) -> (i32, i32, i32) {
    %c0_i32 = arith.constant 0 : i32
    %c0_i32_0 = arith.constant 0 : i32
    %c0_i32_1 = arith.constant 0 : i32
    %c0_i32_2 = arith.constant 0 : i32
    return %c0_i32, %c0_i32_0, %c0_i32_1 : i32, i32, i32
  }
  func.func @transform_11(%arg0: i32) -> (i32, i32, i32) {
    %c0_i32 = arith.constant 0 : i32
    %c0_i32_0 = arith.constant 0 : i32
    %c0_i32_1 = arith.constant 0 : i32
    %c0_i32_2 = arith.constant 0 : i32
    return %c0_i32, %c0_i32_0, %c0_i32_1 : i32, i32, i32
  }
  func.func @transform_12(%arg0: i32) -> (i32, i32, i32) {
    %c0_i32 = arith.constant 0 : i32
    %c0_i32_0 = arith.constant 0 : i32
    %c0_i32_1 = arith.constant 0 : i32
    %c0_i32_2 = arith.constant 0 : i32
    return %c0_i32, %c0_i32_0, %c0_i32_1 : i32, i32, i32
  }
  func.func @transform_13(%arg0: i32) -> (i32, i32, i32) {
    %c0_i32 = arith.constant 0 : i32
    %c0_i32_0 = arith.constant 0 : i32
    %c0_i32_1 = arith.constant 0 : i32
    %c0_i32_2 = arith.constant 0 : i32
    return %c0_i32, %c0_i32_0, %c0_i32_1 : i32, i32, i32
  }
  func.func @transform_14(%arg0: i32) -> (i32, i32, i32) {
    %c0_i32 = arith.constant 0 : i32
    %c0_i32_0 = arith.constant 0 : i32
    %c0_i32_1 = arith.constant 0 : i32
    %c0_i32_2 = arith.constant 0 : i32
    return %c0_i32, %c0_i32_0, %c0_i32_1 : i32, i32, i32
  }
  func.func @transform_15(%arg0: i32) -> (i32, i32, i32) {
    %c0_i32 = arith.constant 0 : i32
    %c0_i32_0 = arith.constant 0 : i32
    %c0_i32_1 = arith.constant 0 : i32
    %c0_i32_2 = arith.constant 0 : i32
    return %c0_i32, %c0_i32_0, %c0_i32_1 : i32, i32, i32
  }
  func.func @transform_16(%arg0: i32) -> (i32, i32) {
    %c0_i32 = arith.constant 0 : i32
    %c0_i32_0 = arith.constant 0 : i32
    %c0_i32_1 = arith.constant 0 : i32
    return %c0_i32, %c0_i32_0 : i32, i32
  }
  func.func @transform_17(%arg0: i32) -> (i32, i32) {
    %c0_i32 = arith.constant 0 : i32
    %c0_i32_0 = arith.constant 0 : i32
    %c0_i32_1 = arith.constant 0 : i32
    return %c0_i32, %c0_i32_0 : i32, i32
  }
  func.func @transform_18(%arg0: i32) -> (i32, i32, i32) {
    %c0_i32 = arith.constant 0 : i32
    %c0_i32_0 = arith.constant 0 : i32
    %c0_i32_1 = arith.constant 0 : i32
    return %c0_i32, %c0_i32_0, %arg0 : i32, i32, i32
  }
}

</mosaic_0001>

<bundles_post_ra>
// kernel: tpu_custom_call.1
= control target key start
LH: loop header
LB: loop body
LE: loop exit
PB: predicated region body
PF: predicated region fallthrough
CT: control target
= control target key end

     0   :  { %s6930_s0 = inlined_call_operand.vmem [shape: f32[2,4,256], index: 0, kind: input, shape index: {}]   ;;  %s6931_s1 = inlined_call_operand.vmem [shape: f32[32,4], index: 1, kind: input, shape index: {}]   ;;  %s6932_s2 = inlined_call_operand.vmem [shape: f32[32,1], index: 2, kind: input, shape index: {}]   ;;  %s6933_s3 = inlined_call_operand.vmem [shape: f32[32,32], index: 3, kind: input, shape index: {}]   ;;  %s6934_s4 = inlined_call_operand.vmem [shape: f32[3,96,32], index: 4, kind: input, shape index: {}]   ;;  %s6935_s5 = inlined_call_operand.vmem [shape: f32[3,96,1], index: 5, kind: input, shape index: {}]   ;;  %s6936_s6 = inlined_call_operand.vmem [shape: f32[3,32,32], index: 6, kind: input, shape index: {}]   ;;  %s6937_s7 = inlined_call_operand.vmem [shape: f32[3,32,1], index: 7, kind: input, shape index: {}]   ;;  %s6938_s8 = inlined_call_operand.vmem [shape: f32[3,32,1], index: 8, kind: input, shape index: {}]   ;;  %s6939_s9 = inlined_call_operand.vmem [shape: f32[3,32,1], index: 9, kind: input, shape index: {}]   ;;  %s6940_s10 = inlined_call_operand.vmem [shape: f32[3,32,32], index: 10, kind: input, shape index: {}]   ;;  %s6941_s11 = inlined_call_operand.vmem [shape: f32[3,32,1], index: 11, kind: input, shape index: {}]   ;;  %s6942_s12 = inlined_call_operand.vmem [shape: f32[3,32,32], index: 12, kind: input, shape index: {}]   ;;  %s6943_s13 = inlined_call_operand.vmem [shape: f32[3,32,1], index: 13, kind: input, shape index: {}]   ;;  %s6944_s14 = inlined_call_operand.vmem [shape: f32[3,32,1], index: 14, kind: input, shape index: {}]   ;;  %s6945_s15 = inlined_call_operand.vmem [shape: f32[3,32,1], index: 15, kind: input, shape index: {}]   ;;  %s6946_s16 = inlined_call_operand.vmem [shape: f32[4,32], index: 16, kind: input, shape index: {}]   ;;  %s6947_s17 = inlined_call_operand.vmem [shape: f32[4,1], index: 17, kind: input, shape index: {}]   ;;  %s6948_s18 = inlined_call_operand.hbm [shape: f32[2,4,256], index: 18, kind: output, shape index: {}]  }
   0x1   :  { %6965 = sst [smem:[#allocation14_spill]] %s6930_s0 }
   0x2   :  { %6966 = sst [smem:[#allocation15_spill]] %s6931_s1 }
   0x3   :  { %6967 = sst [smem:[#allocation16_spill]] %s6932_s2 }
   0x4   :  { %6968 = sst [smem:[#allocation17_spill]] %s6933_s3 }
   0x5   :  { %23 = vsyncpa [#allocation4], 0 }
   0x6   :  { %25 = vsyncpa [#allocation4 + $0x1], 0  ;;  %s5690_s27 = smov 0   ;;  %s5692_s28 = smov 0  }
   0x7   :  { %s5694_s29 = smov 0   ;;  %s5696_s30 = smov 0  }
   0x8 LB: > { %6969 = sst [smem:[#allocation6_spill]] %s5583_s29  ;;  %s6951_s0 = sadd.s32 4294967295, %s5587_s30   ;;  %s5587_s30 = sphi %s5696_s30, %s6991_s30   ;;  %s5583_s29 = sphi %s5694_s29, %s6993_s29   ;;  %s5579_s28 = sphi %s5692_s28, %s6995_s28   ;;  %s5575_s27 = sphi %s5690_s27, %s6994_s27  }
   0x9   : > { %s4778_s19 = sadd.s32 4294967294, %s5587_s30   ;;  %s5713_s1 = sadd.s32 1, %s5587_s30  }
   0xa   : > { %6970 = sst [smem:[#allocation7_spill]] %s5713_s1  ;;  %s38_s20 = sadd.s32 1, %s5583_s29 }
   0xb   : > { %s35_s21 = ssub.s32 %s5587_s30, %s5713_s1  ;;  %p45_p0 = scmp.ne.s32.totalorder %s5583_s29, %s5579_s28 }
   0xc   : > { %p36_p1 = scmp.eq.s32.totalorder %s35_s21, 0  ;;  %p46_p2 = scmp.eq.s32.totalorder %s5587_s30, 0 }
   0xd   : > { %p432_p3 = scmp.eq.s32.totalorder %s6951_s0, 1  ;;  %p437_p4 = scmp.ne.s32.totalorder %s5579_s28, %s5575_s27 }
   0xe   : > { %s5726_s22 = scalar_select %p36_p1, %s5583_s29, %s38_s20  }
   0xf   : > { %p47_p5 = por %p46_p2, %p45_p0  ;;  %p5728_p6 = por %p432_p3, %p45_p0 }
  0x10   : > { %6971 = sst [smem:[#allocation8_spill]] %s5726_s22  ;;  %p438_p7 = scmp.eq.s32.totalorder %s4778_s19, 1 }
  0x11   : > { %p4780_p9 = scmp.ge.s32.totalorder %s5587_s30, 2 }
  0x12   : > { %p5732_p8 = por %p438_p7, %p437_p4 }
  0x13   : > { %505 = sbr.rel (%p4780_p9) target bundleno = 35 (0x23), region = 84 }
  0x14   : > { %s6973_s23 = scalar_select %p5732_p8, 1, 0 }
  0x16   : > { %6974 = sst [smem:[#allocation9_spill]] %s6973_s23 }
  0x18   : > { %508 = sbr.rel (!%p47_p5) target bundleno = 35 (0x23), region = 88  ;;  %s510_s24 = sand.u32 (%p47_p5), 1, %s5583_s29  }
  0x19   : > { %s4782_s25 = sshll.u32 (%p47_p5), %s5587_s30, 2  ;;  %s4781_s26 = sshll.u32 (%p47_p5), %s510_s24, 3 }
  0x1a   : > { %s6975_s0 = sld [smem:[#allocation14_spill]] (%p47_p5)  ;;  %s512_s19 = scalar_lea.vmem (%p47_p5), [#allocation2], %s4781_s26 }
  0x20   : > { %s514_s22 = scalar_lea.vmem %s6975_s0, %s4782_s25 }
  0x21   : > { %v531_v0 = vld [vmem:[%s514_s22] sm:$0xf]  ;;  %v533_v1 = vld [vmem:[%s514_s22 + $0x8] sm:$0xf] }
  0x22   : > { %532 = vst [vmem:[%s512_s19] sm:$0xf] %v531_v0  ;;  %534 = vst [vmem:[%s512_s19 + $0x4] sm:$0xf] %v533_v1 }
  0x23 PF: > { %p4783_p10 = scmp.ge.s32.totalorder %s5587_s30, 1  ;;  %p561_p11 = scmp.lt.s32.totalorder %s5587_s30, 3 }
  0x25   : > { %p562_p12 = pnand %p4783_p10, %p561_p11 }
  0x27   : > { %565 = sbr.rel (%p562_p12) target bundleno = 4365 (0x110d), region = 129 }
  0x2c   : > { %s6976_s24 = sld [smem:[#allocation16_spill]]  ;;  %s6955_s22 = sand.u32 1, %s5579_s28   ;;  %v6959_v5 = vmov 0   ;;  %vm640_vm0 = vcmask 1043456   ;;  %vm627_vm1 = vcmask 31744   ;;  %v876_v12 = vld [vmem:[%s6935_s5 + $0x18] sm:$0xff] }
  0x2d   : > { %s6977_s21 = sld [smem:[#allocation15_spill]]  ;;  %5350 = vset.pattern.permute.xlu1 %v6959_v5  ;;  %5349 = vset.pattern.permute.xlu0 %v6959_v5  ;;  %s5760_s19 = sshll.u32 %s6955_s22, 3  ;;  %v880_v13 = vld [vmem:[%s6935_s5 + $0x38] sm:$0xff]  ;;  %v875_v15 = vld [vmem:[%s6935_s5 + $0x10] sm:$0xff]  ;;  %v874_v17 = vld [vmem:[%s6935_s5 + $0x8] sm:$0xff]  ;;  %vm995_vm2 = vcmask 261120  }
  0x2e   : > { %s570_s0 = scalar_lea.vmem [#allocation2], %s5760_s19  ;;  %v879_v16 = vld [vmem:[%s6935_s5 + $0x30] sm:$0xff]  ;;  %v878_v18 = vld [vmem:[%s6935_s5 + $0x28] sm:$0xff]  ;;  %v873_v19 = vld [vmem:[%s6935_s5] sm:$0xff]  ;;  %s6981_s3 = sld [smem:[#allocation17_spill]] }
  0x2f   : > { %v626_v7 = vld [vmem:[%s570_s0] sm:$0xf]  ;;  %v4791_v8 = vld [vmem:[%s570_s0 + $0x4] sm:$0xf]  ;;  %v883_v21 = vld [vmem:[%s6935_s5 + $0x50] sm:$0xff]  ;;  %s620_s29 = scalar_lea.vmem [#allocation3], %s5760_s19 }
  0x30   : > { %5121 = vmatprep.subr.msk.mxu0 %vm640_vm0, %v626_v7  ;;  %5129 = vmatprep.subr.msk.mxu1 %vm640_vm0, %v4791_v8  ;;  %v877_v20 = vld [vmem:[%s6935_s5 + $0x20] sm:$0xff]  ;;  %v884_v22 = vld [vmem:[%s6935_s5 + $0x58] sm:$0xff]  ;;  %v882_v24 = vld [vmem:[%s6935_s5 + $0x48] sm:$0xff]  ;;  %s4710_s1 = sshll.u32 %s620_s29, 4  ;;  %s6989_s19 = sand.u32 1, %s5579_s28   ;;  %s6880_s1 = int_to_ptr.vmem [resolvable:$true] %s4710_s1 }
  0x31   : > { %5122 = vmatpush3.msk.msra.mxu0 %vm640_vm0, %v626_v7  ;;  %5130 = vmatpush3.msk.msra.mxu1 %vm640_vm0, %v4791_v8  ;;  %v881_v23 = vld [vmem:[%s6935_s5 + $0x40] sm:$0xff]  ;;  %v892_v26 = vld [vmem:[%s6937_s7 + $0x8] sm:$0xff]  ;;  %v893_v27 = vld [vmem:[%s6937_s7 + $0x10] sm:$0xff]  ;;  %s6889_s26 = scalar_lea.sflag [#allocation4], %s6989_s19  ;;  %s5527_s22 = scalar_lea.vmem %s6880_s1, 128 }
  0x32   : > { %v821_v2 = vld [vmem:[%s6976_s24 + $0x10] sm:$0xff]  ;;  %v819_v3 = vld [vmem:[%s6976_s24] sm:$0xff]  ;;  %v822_v6 = vld [vmem:[%s6976_s24 + $0x18] sm:$0xff]  ;;  %p5528_p13 = scmp.ne.s32.totalorder %s6880_s1, %s5527_s22  ;;  %s5591_s20 = smov [#allocation3]  }
  0x33   : > { %v622_v4 = vld [vmem:[%s6977_s21] sm:$0xff]  ;;  %835 = vperm.xlu0 %5349, %v821_v2   ;;  %825 = vperm.xlu1 %5350, %v819_v3   ;;  %v820_v9 = vld [vmem:[%s6976_s24 + $0x8] sm:$0xff]  ;;  %v624_v11 = vld [vmem:[%s6977_s21 + $0x10] sm:$0xff]  ;;  %s6988_s24 = sadd.s32 4294967295, %s5587_s30  }
  0x34   : > { %5123 = vmatprep.mubr.msk.f32.mxu0 %vm627_vm1, %v622_v4  ;;  %5131 = vmatprep.mubr.msk.f32.mxu1 %vm627_vm1, %v622_v4  ;;  %v623_v10 = vld [vmem:[%s6977_s21 + $0x8] sm:$0xff]  ;;  %v625_v14 = vld [vmem:[%s6977_s21 + $0x18] sm:$0xff]  ;;  %v891_v25 = vld [vmem:[%s6937_s7] sm:$0xff]  ;;  %s5012_s0 = sshll.u32 %s6988_s24, 6  ;;  %p5529_p0 = pnand %p5528_p13, %p5728_p6 }
  0x35   : > { %5124 = vmatmul.mubr.msk.f32.vlgmr.msra.gmra.mxu0 %vm627_vm1, %v623_v10  ;;  %5132 = vmatmul.mubr.msk.f32.vlgmr.msra.gmra.mxu1 %vm627_vm1, %v623_v10  ;;  %v894_v28 = vld [vmem:[%s6937_s7 + $0x18] sm:$0xff]  ;;  %v917_v29 = vld [vmem:[%s6938_s8 + $0x10] sm:$0xff]  ;;  %v915_v33 = vld [vmem:[%s6938_s8] sm:$0xff]  ;;  %s6885_s25 = scalar_lea.hbm %s6948_s18, %s5012_s0  ;;  %s5531_s24 = sshll.u32 %s5591_s20, 4  ;;  %s5532_s24 = int_to_ptr.vmem [resolvable:$false] %s5531_s24 }
  0x36   : > { %5126 = vmatprep.mubr.msk.f32.mxu0 %vm627_vm1, %v624_v11  ;;  %5134 = vmatprep.mubr.msk.f32.mxu1 %vm627_vm1, %v624_v11  ;;  %v918_v30 = vld [vmem:[%s6938_s8 + $0x18] sm:$0xff]  ;;  %v921_v31 = vld [vmem:[%s6939_s9 + $0x10] sm:$0xff]  ;;  %v916_v34 = vld [vmem:[%s6938_s8 + $0x8] sm:$0xff]  ;;  %p5530_p1 = pneg %p5529_p0  ;;  %p5534_p2 = scmp.lt.s32.totalorder %s6880_s1, %s5532_s24 }
  0x37   : > { %840 = vperm.xlu0 %5349, %v822_v6   ;;  %830 = vperm.xlu1 %5350, %v820_v9   ;;  %v922_v32 = vld [vmem:[%s6939_s9 + $0x18] sm:$0xff]  ;;  %v919_v35 = vld [vmem:[%s6939_s9] sm:$0xff]  ;;  %v920_v36 = vld [vmem:[%s6939_s9 + $0x8] sm:$0xff] }
  0x38   : > { %v903_v37 = vld [vmem:[%s6941_s11 + $0x10] sm:$0xff]  ;;  %v904_v38 = vld [vmem:[%s6941_s11 + $0x18] sm:$0xff]  ;;  %v901_v39 = vld [vmem:[%s6941_s11] sm:$0xff] }
  0x39   : > { %5127 = vmatmul.mubr.msk.f32.gmra.mxu0 %vm627_vm1, %v625_v14  ;;  %5135 = vmatmul.mubr.msk.f32.gmra.mxu1 %vm627_vm1, %v625_v14  ;;  %v902_v40 = vld [vmem:[%s6941_s11 + $0x8] sm:$0xff]  ;;  %v911_v41 = vld [vmem:[%s6943_s13] sm:$0xff]  ;;  %v913_v43 = vld [vmem:[%s6943_s13 + $0x10] sm:$0xff] }
  0x3a   : > { %1046 = vmatprep.mubr.bf16.mxu0 %v6959_v5  ;;  %v912_v42 = vld [vmem:[%s6943_s13 + $0x8] sm:$0xff]  ;;  %v914_v44 = vld [vmem:[%s6943_s13 + $0x18] sm:$0xff]  ;;  %v925_v45 = vld [vmem:[%s6944_s14 + $0x10] sm:$0xff] }
  0x3b   : > { %952 = vperm.xlu0 %5349, %v876_v12   ;;  %972 = vperm.xlu1 %5350, %v880_v13   ;;  %v926_v46 = vld [vmem:[%s6944_s14 + $0x18] sm:$0xff]  ;;  %v929_v47 = vld [vmem:[%s6945_s15 + $0x10] sm:$0xff]  ;;  %v923_v49 = vld [vmem:[%s6944_s14] sm:$0xff] }
  0x3c   : > { %v930_v48 = vld [vmem:[%s6945_s15 + $0x18] sm:$0xff]  ;;  %v924_v50 = vld [vmem:[%s6944_s14 + $0x8] sm:$0xff]  ;;  %v927_v51 = vld [vmem:[%s6945_s15] sm:$0xff] }
  0x3d   : > { %v928_v52 = vld [vmem:[%s6945_s15 + $0x8] sm:$0xff]  ;;  %v4840_v53 = vld [vmem:[%s6935_s5 + $0x78] sm:$0xff]  ;;  %v4839_v55 = vld [vmem:[%s6935_s5 + $0x70] sm:$0xff] }
  0x3e   : > { %v4844_v54 = vld [vmem:[%s6935_s5 + $0x98] sm:$0xff]  ;;  %v4843_v56 = vld [vmem:[%s6935_s5 + $0x90] sm:$0xff]  ;;  %v4838_v57 = vld [vmem:[%s6935_s5 + $0x68] sm:$0xff] }
  0x3f   : > { %947 = vperm.xlu0 %5349, %v875_v15   ;;  %967 = vperm.xlu1 %5350, %v879_v16   ;;  %v4842_v58 = vld [vmem:[%s6935_s5 + $0x88] sm:$0xff]  ;;  %v4837_v59 = vld [vmem:[%s6935_s5 + $0x60] sm:$0xff]  ;;  %v4847_v61 = vld [vmem:[%s6935_s5 + $0xb0] sm:$0xff] }
  0x40   : > { %v4841_v60 = vld [vmem:[%s6935_s5 + $0x80] sm:$0xff]  ;;  %v4848_v62 = vld [vmem:[%s6935_s5 + $0xb8] sm:$0xff]  ;;  %v4846_v0 = vld [vmem:[%s6935_s5 + $0xa8] sm:$0xff] }
  0x41   : > { %v4845_v63 = vld [vmem:[%s6935_s5 + $0xa0] sm:$0xff]  ;;  %v4854_v2 = vld [vmem:[%s6937_s7 + $0x28] sm:$0xff]  ;;  %v4855_v3 = vld [vmem:[%s6937_s7 + $0x30] sm:$0xff] }
  0x42   : > { %v4853_v1 = vld [vmem:[%s6937_s7 + $0x20] sm:$0xff]  ;;  %v4856_v4 = vld [vmem:[%s6937_s7 + $0x38] sm:$0xff]  ;;  %v4875_v6 = vld [vmem:[%s6938_s8 + $0x30] sm:$0xff] }
  0x43   : > { %942 = vperm.xlu0 %5349, %v874_v17   ;;  %962 = vperm.xlu1 %5350, %v878_v18   ;;  %v4876_v7 = vld [vmem:[%s6938_s8 + $0x38] sm:$0xff]  ;;  %v4879_v8 = vld [vmem:[%s6939_s9 + $0x30] sm:$0xff]  ;;  %v4873_v10 = vld [vmem:[%s6938_s8 + $0x20] sm:$0xff] }
  0x44   : > { %v4880_v9 = vld [vmem:[%s6939_s9 + $0x38] sm:$0xff]  ;;  %v4874_v11 = vld [vmem:[%s6938_s8 + $0x28] sm:$0xff]  ;;  %v4877_v12 = vld [vmem:[%s6939_s9 + $0x20] sm:$0xff] }
  0x45   : > { %v4878_v13 = vld [vmem:[%s6939_s9 + $0x28] sm:$0xff]  ;;  %v4863_v14 = vld [vmem:[%s6941_s11 + $0x30] sm:$0xff]  ;;  %v4864_v15 = vld [vmem:[%s6941_s11 + $0x38] sm:$0xff] }
  0x46   : > { %v4861_v16 = vld [vmem:[%s6941_s11 + $0x20] sm:$0xff]  ;;  %v4862_v17 = vld [vmem:[%s6941_s11 + $0x28] sm:$0xff] }
  0x47   : > { %937 = vperm.xlu0 %5349, %v873_v19   ;;  %957 = vperm.xlu1 %5350, %v877_v20   ;;  %v4869_v18 = vld [vmem:[%s6943_s13 + $0x20] sm:$0xff]  ;;  %v4870_v19 = vld [vmem:[%s6943_s13 + $0x28] sm:$0xff]  ;;  %v4871_v20 = vld [vmem:[%s6943_s13 + $0x30] sm:$0xff] }
  0x4b   : > { %987 = vperm.xlu0 %5349, %v883_v21   ;;  %992 = vperm.xlu1 %5350, %v884_v22   ;;  %v4872_v21 = vld [vmem:[%s6943_s13 + $0x38] sm:$0xff]  ;;  %v4883_v22 = vld [vmem:[%s6944_s14 + $0x30] sm:$0xff] }
  0x4f   : > { %977 = vperm.xlu0 %5349, %v881_v23   ;;  %982 = vperm.xlu1 %5350, %v882_v24   ;;  %v4884_v23 = vld [vmem:[%s6944_s14 + $0x38] sm:$0xff]  ;;  %v4887_v24 = vld [vmem:[%s6945_s15 + $0x30] sm:$0xff] }
  0x53   : > { %1593 = vperm.xlu0 %5349, %v891_v25   ;;  %1598 = vperm.xlu1 %5350, %v892_v26   ;;  %v4888_v25 = vld [vmem:[%s6945_s15 + $0x38] sm:$0xff]  ;;  %v4881_v26 = vld [vmem:[%s6944_s14 + $0x20] sm:$0xff] }
  0x57   : > { %1603 = vperm.xlu0 %5349, %v893_v27   ;;  %1608 = vperm.xlu1 %5350, %v894_v28   ;;  %v4882_v27 = vld [vmem:[%s6944_s14 + $0x28] sm:$0xff]  ;;  %v4885_v28 = vld [vmem:[%s6945_s15 + $0x20] sm:$0xff] }
  0x5b   : > { %1759 = vperm.xlu0 %5349, %v917_v29   ;;  %1764 = vperm.xlu1 %5350, %v918_v30   ;;  %v4886_v29 = vld [vmem:[%s6945_s15 + $0x28] sm:$0xff]  ;;  %v4932_v30 = vld [vmem:[%s6935_s5 + $0xd8] sm:$0xff] }
  0x5f   : > { %1787 = vperm.xlu0 %5349, %v921_v31   ;;  %1792 = vperm.xlu1 %5350, %v922_v32   ;;  %v4936_v31 = vld [vmem:[%s6935_s5 + $0xf8] sm:$0xff]  ;;  %v4931_v32 = vld [vmem:[%s6935_s5 + $0xd0] sm:$0xff] }
  0x63   : > { %1749 = vperm.xlu0 %5349, %v915_v33   ;;  %1754 = vperm.xlu1 %5350, %v916_v34   ;;  %v4935_v33 = vld [vmem:[%s6935_s5 + $0xf0] sm:$0xff] }
  0x67   : > { %1777 = vperm.xlu0 %5349, %v919_v35   ;;  %1782 = vperm.xlu1 %5350, %v920_v36   ;;  %v4930_v36 = vld [vmem:[%s6935_s5 + $0xc8] sm:$0xff] }
  0x6b   : > { %1819 = vperm.xlu0 %5349, %v903_v37   ;;  %1824 = vperm.xlu1 %5350, %v904_v38   ;;  %v4934_v37 = vld [vmem:[%s6935_s5 + $0xe8] sm:$0xff] }
  0x6f   : > { %1809 = vperm.xlu0 %5349, %v901_v39   ;;  %1814 = vperm.xlu1 %5350, %v902_v40   ;;  %v4929_v39 = vld [vmem:[%s6935_s5 + $0xc0] sm:$0xff] }
  0x70   : > { %v4933_v40 = vld [vmem:[%s6935_s5 + $0xe0] sm:$0xff] }
  0x73   : > { %1900 = vperm.xlu0 %5349, %v911_v41   ;;  %1905 = vperm.xlu1 %5350, %v912_v42   ;;  %v4939_v42 = vld [vmem:[%s6935_s5 + $0x110] sm:$0xff] }
  0x77   : > { %1910 = vperm.xlu0 %5349, %v913_v43   ;;  %1915 = vperm.xlu1 %5350, %v914_v44   ;;  %v4940_v43 = vld [vmem:[%s6935_s5 + $0x118] sm:$0xff] }
  0x7b   : > { %2065 = vperm.xlu0 %5349, %v925_v45   ;;  %2070 = vperm.xlu1 %5350, %v926_v46   ;;  %v4937_v46 = vld [vmem:[%s6935_s5 + $0x100] sm:$0xff] }
  0x7f   : > { %2093 = vperm.xlu0 %5349, %v929_v47   ;;  %2098 = vperm.xlu1 %5350, %v930_v48   ;;  %v4938_v47 = vld [vmem:[%s6935_s5 + $0x108] sm:$0xff] }
  0x83   : > { %2055 = vperm.xlu0 %5349, %v923_v49   ;;  %2060 = vperm.xlu1 %5350, %v924_v50   ;;  %v4945_v49 = vld [vmem:[%s6937_s7 + $0x40] sm:$0xff]  ;;  %v4946_v50 = vld [vmem:[%s6937_s7 + $0x48] sm:$0xff] }
  0x87   : > { %2083 = vperm.xlu0 %5349, %v927_v51   ;;  %2088 = vperm.xlu1 %5350, %v928_v52   ;;  %v4947_v52 = vld [vmem:[%s6937_s7 + $0x50] sm:$0xff] }
  0x8b   : > { %2218 = vperm.xlu0 %5349, %v4840_v53   ;;  %2238 = vperm.xlu1 %5350, %v4844_v54   ;;  %v4948_v53 = vld [vmem:[%s6937_s7 + $0x58] sm:$0xff] }
  0x8f   : > { %2213 = vperm.xlu0 %5349, %v4839_v55   ;;  %2233 = vperm.xlu1 %5350, %v4843_v56  }
  0x93   : > { %2208 = vperm.xlu0 %5349, %v4838_v57   ;;  %2228 = vperm.xlu1 %5350, %v4842_v58   ;;  %v4967_v58 = vld [vmem:[%s6938_s8 + $0x50] sm:$0xff] }
  0x97   : > { %2203 = vperm.xlu0 %5349, %v4837_v59   ;;  %2223 = vperm.xlu1 %5350, %v4841_v60   ;;  %v4968_v59 = vld [vmem:[%s6938_s8 + $0x58] sm:$0xff] }
  0x9b   : > { %2253 = vperm.xlu0 %5349, %v4847_v61   ;;  %2258 = vperm.xlu1 %5350, %v4848_v62  }
  0x9f   : > { %2243 = vperm.xlu0 %5349, %v4845_v63   ;;  %2248 = vperm.xlu1 %5350, %v4846_v0  }
  0xa3   : > { %2846 = vperm.xlu0 %5349, %v4853_v1   ;;  %2851 = vperm.xlu1 %5350, %v4854_v2   ;;  %v4971_v1 = vld [vmem:[%s6939_s9 + $0x50] sm:$0xff]  ;;  %v4972_v2 = vld [vmem:[%s6939_s9 + $0x58] sm:$0xff] }
  0xa7   : > { %2856 = vperm.xlu0 %5349, %v4855_v3   ;;  %2861 = vperm.xlu1 %5350, %v4856_v4  }
  0xab   : > { %3011 = vperm.xlu0 %5349, %v4875_v6   ;;  %3016 = vperm.xlu1 %5350, %v4876_v7  }
  0xae   : > { %v836_v34 = vpop.permute.xlu0 %835  ;;  %v6039_v35 = vpop.permute.xlu1 %825 }
  0xaf   : > { %3039 = vperm.xlu0 %5349, %v4879_v8   ;;  %3044 = vperm.xlu1 %5350, %v4880_v9  }
  0xb2   : > { %v841_v38 = vpop.permute.xlu0 %840  ;;  %v831_v41 = vpop.permute.xlu1 %830 }
  0xb3   : > { %3001 = vperm.xlu0 %5349, %v4873_v10   ;;  %3006 = vperm.xlu1 %5350, %v4874_v11  }
  0xb6   : > { %v6059_v44 = vpop.permute.xlu0 %952  ;;  %v6061_v45 = vpop.permute.xlu1 %972 }
  0xb7   : > { %3029 = vperm.xlu0 %5349, %v4877_v12   ;;  %3034 = vperm.xlu1 %5350, %v4878_v13   ;;  %v4965_v12 = vld [vmem:[%s6938_s8 + $0x40] sm:$0xff] }
  0xba   : > { %v6069_v48 = vpop.permute.xlu0 %947  ;;  %v6077_v51 = vpop.permute.xlu1 %967 }
  0xbb   : > { %3071 = vperm.xlu0 %5349, %v4863_v14   ;;  %3076 = vperm.xlu1 %5350, %v4864_v15  }
  0xbe   : > { %v6085_v54 = vpop.permute.xlu0 %942  ;;  %v6087_v55 = vpop.permute.xlu1 %962 }
  0xbf   : > { %3061 = vperm.xlu0 %5349, %v4861_v16   ;;  %3066 = vperm.xlu1 %5350, %v4862_v17   ;;  %v4966_v17 = vld [vmem:[%s6938_s8 + $0x48] sm:$0xff] }
  0xc2   : > { %v6095_v62 = vpop.permute.xlu0 %937  ;;  %v6103_v3 = vpop.permute.xlu1 %957 }
  0xc3   : > { %3152 = vperm.xlu0 %5349, %v4869_v18   ;;  %3157 = vperm.xlu1 %5350, %v4870_v19  }
  0xc6   : > { %v6119_v13 = vpop.permute.xlu0 %987 }
  0xc7   : > { %3162 = vperm.xlu0 %5349, %v4871_v20   ;;  %3167 = vperm.xlu1 %5350, %v4872_v21   ;;  %v6137_v21 = vpop.permute.xlu1 %992 }
  0xcb   : > { %3317 = vperm.xlu0 %5349, %v4883_v22   ;;  %3322 = vperm.xlu1 %5350, %v4884_v23   ;;  %v4969_v22 = vld [vmem:[%s6939_s9 + $0x40] sm:$0xff] }
  0xcc   : > { %v855_v23 = vld [vmem:[%s6934_s4] sm:$0xff] }
  0xcf   : > { %3345 = vperm.xlu0 %5349, %v4887_v24   ;;  %3350 = vperm.xlu1 %5350, %v4888_v25   ;;  %v856_v24 = vld [vmem:[%s6934_s4 + $0x8] sm:$0xff] }
  0xd0   : > { %v4970_v25 = vld [vmem:[%s6939_s9 + $0x48] sm:$0xff] }
  0xd3   : > { %3307 = vperm.xlu0 %5349, %v4881_v26   ;;  %3312 = vperm.xlu1 %5350, %v4882_v27   ;;  %v6153_v27 = vpop.permute.xlu0 %977 }
  0xd7   : > { %3335 = vperm.xlu0 %5349, %v4885_v28   ;;  %3340 = vperm.xlu1 %5350, %v4886_v29   ;;  %v867_v28 = vpack.c.bf16 %v856_v24, %v855_v23  ;;  %v4955_v29 = vld [vmem:[%s6941_s11 + $0x50] sm:$0xff]  ;;  %v4614_v23 = vld [vmem:[%s6947_s17] sm:$0xf] }
  0xdb   : > { %3470 = vperm.xlu0 %5349, %v4932_v30   ;;  %3490 = vperm.xlu1 %5350, %v4936_v31   ;;  %v4956_v30 = vld [vmem:[%s6941_s11 + $0x58] sm:$0xff]  ;;  %v6161_v31 = vpop.permute.xlu1 %982 }
  0xdf   : > { %3465 = vperm.xlu0 %5349, %v4931_v32   ;;  %3485 = vperm.xlu1 %5350, %v4935_v33   ;;  %v4953_v32 = vld [vmem:[%s6941_s11 + $0x40] sm:$0xff]  ;;  %v857_v33 = vld [vmem:[%s6934_s4 + $0x10] sm:$0xff] }
  0xe3   : > { %3460 = vperm.xlu0 %5349, %v4930_v36   ;;  %3480 = vperm.xlu1 %5350, %v4934_v37   ;;  %v4954_v36 = vld [vmem:[%s6941_s11 + $0x48] sm:$0xff] }
  0xe7   : > { %3455 = vperm.xlu0 %5349, %v4929_v39   ;;  %3475 = vperm.xlu1 %5350, %v4933_v40   ;;  %v4961_v39 = vld [vmem:[%s6943_s13 + $0x40] sm:$0xff]  ;;  %v4962_v40 = vld [vmem:[%s6943_s13 + $0x48] sm:$0xff] }
  0xeb   : > { %3505 = vperm.xlu0 %5349, %v4939_v42   ;;  %3510 = vperm.xlu1 %5350, %v4940_v43   ;;  %v4963_v42 = vld [vmem:[%s6943_s13 + $0x50] sm:$0xff]  ;;  %v859_v43 = vld [vmem:[%s6934_s4 + $0x20] sm:$0xff] }
  0xef   : > { %3495 = vperm.xlu0 %5349, %v4937_v46   ;;  %3500 = vperm.xlu1 %5350, %v4938_v47   ;;  %v860_v46 = vld [vmem:[%s6934_s4 + $0x28] sm:$0xff]  ;;  %v4964_v47 = vld [vmem:[%s6943_s13 + $0x58] sm:$0xff] }
  0xf3   : > { %4098 = vperm.xlu0 %5349, %v4945_v49   ;;  %4103 = vperm.xlu1 %5350, %v4946_v50   ;;  %v869_v50 = vpack.c.bf16 %v860_v46, %v859_v43 }
  0xf5   : > { %v5125_v56 = vpop.f32.mrf.mxu0  ;;  %v5133_v57 = vpop.f32.mrf.mxu1 }
  0xf6   : > { %v6121_v14 = vadd.f32 %v5133_v57, %v831_v41  ;;  %v6130_v18 = vadd.f32 %v5125_v56, %v831_v41  ;;  %v4975_v56 = vld [vmem:[%s6944_s14 + $0x50] sm:$0xff] }
  0xf7   : > { %4108 = vperm.xlu0 %5349, %v4947_v52   ;;  %4113 = vperm.xlu1 %5350, %v4948_v53   ;;  %v710_v60 = vpop.f32.mrf.mxu0  ;;  %v800_v61 = vpop.f32.mrf.mxu1  ;;  %v4976_v52 = vld [vmem:[%s6944_s14 + $0x58] sm:$0xff] }
  0xf8   : > { %v6106_v4 = vadd.f32 %v6039_v35, %v800_v61  ;;  %v6133_v19 = vadd.f32 %v6039_v35, %v710_v60  ;;  %v6174_v35 = vpop.permute.xlu0 %1593  ;;  %v862_v60 = vld [vmem:[%s6934_s4 + $0x38] sm:$0xff]  ;;  %v4974_v61 = vld [vmem:[%s6944_s14 + $0x48] sm:$0xff] }
  0xf9   : > { %v5128_v63 = vpop.f32.mrf.mxu0  ;;  %v5136_v0 = vpop.f32.mrf.mxu1 }
  0xfa   : > { %v6108_v6 = vadd.f32 %v5128_v63, %v841_v38  ;;  %v6110_v9 = vadd.f32 %v5136_v0, %v841_v38  ;;  %v932_v20 = vpack.c.bf16 %v6121_v14, %v6106_v4  ;;  %v931_v26 = vpack.c.bf16 %v6130_v18, %v6133_v19  ;;  %v6179_v38 = vpop.permute.xlu1 %1598 }
  0xfb   : > { %4263 = vperm.xlu0 %5349, %v4967_v58   ;;  %4268 = vperm.xlu1 %5350, %v4968_v59   ;;  %v720_v7 = vpop.f32.mrf.mxu0  ;;  %v810_v8 = vpop.f32.mrf.mxu1  ;;  %v4980_v58 = vld [vmem:[%s6945_s15 + $0x58] sm:$0xff]  ;;  %v861_v59 = vld [vmem:[%s6934_s4 + $0x30] sm:$0xff] }
  0xfc   : > { %v6112_v10 = vadd.f32 %v836_v34, %v720_v7  ;;  %v6114_v11 = vadd.f32 %v836_v34, %v810_v8  ;;  %v858_v34 = vld [vmem:[%s6934_s4 + $0x18] sm:$0xff]  ;;  %v6187_v41 = vpop.permute.xlu0 %1603  ;;  %v870_v0 = vpack.c.bf16 %v862_v60, %v861_v59  ;;  %v4978_v8 = vld [vmem:[%s6945_s15 + $0x48] sm:$0xff] }
  0xfd   : > { %v868_v37 = vpack.c.bf16 %v858_v34, %v857_v33 }
  0xfe   : > { %v933_v15 = vpack.c.bf16 %v6108_v6, %v6112_v10  ;;  %v934_v16 = vpack.c.bf16 %v6110_v9, %v6114_v11  ;;  %v6203_v49 = vpop.permute.xlu1 %1608 }
  0xff   : > { %4291 = vperm.xlu0 %5349, %v4971_v1   ;;  %4296 = vperm.xlu1 %5350, %v4972_v2   ;;  %v4979_v1 = vld [vmem:[%s6945_s15 + $0x50] sm:$0xff]  ;;  %v4973_v2 = vld [vmem:[%s6944_s14 + $0x40] sm:$0xff] }
 0x100   : > { %1026 = vmatprep.subr.bf16.mxu0 %v934_v16  ;;  %v6208_v53 = vpop.permute.xlu0 %1759 }
 0x101   : > { %1027 = vmatpush1.bf16.msra.mxu0 %v933_v15  ;;  %v864_v15 = vld [vmem:[%s6934_s4 + $0x48] sm:$0xff] }
 0x102   : > { %1028 = vmatprep.subr.bf16.mxu0 %v932_v20  ;;  %v6214_v57 = vpop.permute.xlu1 %1764 }
 0x103   : > { %4253 = vperm.xlu0 %5349, %v4965_v12   ;;  %4258 = vperm.xlu1 %5350, %v4966_v17   ;;  %v863_v12 = vld [vmem:[%s6934_s4 + $0x40] sm:$0xff] }
 0x104   : > { %v6229_v63 = vpop.permute.xlu0 %1787  ;;  %v4977_v17 = vld [vmem:[%s6945_s15 + $0x40] sm:$0xff]  ;;  %v871_v20 = vpack.c.bf16 %v864_v15, %v863_v12 }
 0x105   : > { %1029 = vmatpush1.bf16.msra.mxu0 %v931_v26  ;;  %6978 = vst [vmem:[#allocation10_spill] sm:$0xff] %v6229_v63  ;;  %v866_v26 = vld [vmem:[%s6934_s4 + $0x58] sm:$0xff] }
 0x106   : > { %v6237_v7 = vpop.permute.xlu1 %1792 }
 0x107   : > { %4281 = vperm.xlu0 %5349, %v4969_v22   ;;  %4286 = vperm.xlu1 %5350, %v4970_v25   ;;  %6979 = vst [vmem:[#allocation11_spill] sm:$0xff] %v6237_v7  ;;  %v865_v25 = vld [vmem:[%s6934_s4 + $0x50] sm:$0xff] }
 0x108   : > { %4797 = vmatmul.mubr.msk.bf16.vlgmr.msra.gmra.mxu0 %vm995_vm2, %v867_v28  ;;  %v6250_v16 = vpop.permute.xlu0 %1749  ;;  %v872_v28 = vpack.c.bf16 %v866_v26, %v865_v25 }
 0x109   : > { %1056 = vmatprep.mubr.bf16.mxu0 %v6959_v5 }
 0x10a   : > { %v6255_v22 = vpop.permute.xlu1 %1754 }
 0x10b   : > { %4323 = vperm.xlu0 %5349, %v4955_v29   ;;  %4328 = vperm.xlu1 %5350, %v4956_v30   ;;  %v6275_v29 = vld [vmem:[%s6981_s3] sm:$0xff] }
 0x10c   : > { %v6260_v24 = vpop.permute.xlu0 %1777  ;;  %6982 = vst [vmem:[#allocation13_spill] sm:$0xff] %v6275_v29  ;;  %5145 = vmatprep.mubr.msk.f32.mxu1 %vm995_vm2, %v6275_v29 }
 0x10d   : > { %6980 = vst [vmem:[#allocation12_spill] sm:$0xff] %v6260_v24 }
 0x10f   : > { %4313 = vperm.xlu0 %5349, %v4953_v32   ;;  %4318 = vperm.xlu1 %5350, %v4954_v36  }
 0x110   : > { %4798 = vmatmul.mubr.msk.bf16.gmra.mxu0 %vm995_vm2, %v868_v37 }
 0x111   : > { %1066 = vmatprep.mubr.bf16.mxu0 %v6959_v5 }
 0x113   : > { %4404 = vperm.xlu0 %5349, %v4961_v39   ;;  %4409 = vperm.xlu1 %5350, %v4962_v40  }
 0x117   : > { %4414 = vperm.xlu0 %5349, %v4963_v42   ;;  %4419 = vperm.xlu1 %5350, %v4964_v47  }
 0x118   : > { %4799 = vmatmul.mubr.msk.bf16.gmra.mxu0 %vm995_vm2, %v869_v50 }
 0x119   : > { %1076 = vmatprep.mubr.bf16.mxu0 %v6959_v5 }
 0x11b   : > { %4574 = vperm.xlu0 %5349, %v4976_v52   ;;  %4569 = vperm.xlu1 %5350, %v4975_v56  }
 0x11f   : > { %4602 = vperm.xlu0 %5349, %v4980_v58   ;;  %4564 = vperm.xlu1 %5350, %v4974_v61  }
 0x120   : > { %4800 = vmatmul.mubr.msk.bf16.gmra.mxu0 %vm995_vm2, %v870_v0 }
 0x121   : > { %1086 = vmatprep.mubr.bf16.mxu0 %v6959_v5 }
 0x123   : > { %4597 = vperm.xlu0 %5349, %v4979_v1   ;;  %4559 = vperm.xlu1 %5350, %v4973_v2  }
 0x127   : > { %4592 = vperm.xlu0 %5349, %v4978_v8   ;;  %4587 = vperm.xlu1 %5350, %v4977_v17  }
 0x128   : > { %4801 = vmatmul.mubr.msk.bf16.gmra.mxu0 %vm995_vm2, %v871_v20 }
 0x129   : > { %1096 = vmatprep.mubr.bf16.mxu0 %v6959_v5 }
 0x12b   : > { %4617 = vperm.xlu0 %5349, %v4614_v23  }
 0x130   : > { %4802 = vmatmul.mubr.msk.bf16.gmra.mxu0 %vm995_vm2, %v872_v28  ;;  %v852_v28 = vld [vmem:[%s6981_s3 + $0x8] sm:$0xff] }
 0x131   : > { %1865 = vmatprep.mubr.bf16.mxu0 %v6959_v5 }
 0x1c8   : > { %v1048_v30 = vpop.f32.mrf.mxu0 }
 0x1c9   : > { %v1049_v17 = vadd.f32 %v1048_v30, %v6095_v62  ;;  %v853_v30 = vld [vmem:[%s6981_s3 + $0x10] sm:$0xff] }
 0x1ca   : > { %v6279_v32 = vpop.f32.mrf.mxu0 }
 0x1cc   : > { %v1052_v33 = vpop.f32.mrf.mxu0 }
 0x1cd   : > { %v1053_v8 = vadd.f32 %v1052_v33, %v6085_v54 }
 0x1ce   : > { %v1054_v34 = vpop.f32.mrf.mxu0 }
 0x1d0   : > { %v1058_v36 = vpop.f32.mrf.mxu0 }
 0x1d1   : > { %v1059_v61 = vadd.f32 %v1058_v36, %v6069_v48 }
 0x1d2   : > { %v1060_v37 = vpop.f32.mrf.mxu0 }
 0x1d4   : > { %v1062_v39 = vpop.f32.mrf.mxu0 }
 0x1d5   : > { %v1063_v58 = vadd.f32 %v1062_v39, %v6059_v44 }
 0x1d6   : > { %v1064_v40 = vpop.f32.mrf.mxu0 }
 0x1d8   : > { %v1068_v42 = vpop.f32.mrf.mxu0 }
 0x1d9   : > { %v1069_v12 = vadd.f32 %v1068_v42, %v6103_v3  ;;  %v1065_v42 = vadd.f32 %v1064_v40, %v6059_v44  ;;  %v1051_v44 = vadd.f32 %v6279_v32, %v6095_v62 }
 0x1da   : > { %v1070_v43 = vpop.f32.mrf.mxu0 }
 0x1db   : > { %v1107_v25 = vmul.f32 %v1069_v12, %v1049_v17 }
 0x1dc   : > { %v1072_v46 = vpop.f32.mrf.mxu0 }
 0x1dd   : > { %v1073_v0 = vadd.f32 %v1072_v46, %v6087_v55 }
 0x1de   : > { %v1074_v47 = vpop.f32.mrf.mxu0 }
 0x1df   : > { %v1108_v20 = vmul.f32 %v1073_v0, %v1053_v8  ;;  %v1075_v33 = vadd.f32 %v1074_v47, %v6087_v55  ;;  %v1055_v47 = vadd.f32 %v1054_v34, %v6085_v54 }
 0x1e0   : > { %v1078_v50 = vpop.f32.mrf.mxu0 }
 0x1e1   : > { %v1079_v59 = vadd.f32 %v1078_v50, %v6077_v51  ;;  %v1209_v55 = vmul.f32 %v1075_v33, %v1053_v8  ;;  %v1354_v40 = vmul.f32 %v1073_v0, %v1055_v47  ;;  %v1443_v62 = vmul.f32 %v1075_v33, %v1055_v47 }
 0x1e2   : > { %v1080_v52 = vpop.f32.mrf.mxu0 }
 0x1e3   : > { %v1109_v15 = vmul.f32 %v1079_v59, %v1059_v61  ;;  %v1081_v26 = vadd.f32 %v1080_v52, %v6077_v51  ;;  %v854_v51 = vld [vmem:[%s6981_s3 + $0x18] sm:$0xff]  ;;  %v1353_v52 = vmul.f32 %v1069_v12, %v1051_v44 }
 0x1e4   : > { %v1082_v56 = vpop.f32.mrf.mxu0 }
 0x1e5   : > { %v1083_v60 = vadd.f32 %v1082_v56, %v6061_v45  ;;  %v1210_v39 = vmul.f32 %v1081_v26, %v1059_v61 }
 0x1e6   : > { %v1084_v2 = vpop.f32.mrf.mxu0 }
 0x1e7   : > { %v1110_v1 = vmul.f32 %v1083_v60, %v1063_v58  ;;  %v1085_v23 = vadd.f32 %v1084_v2, %v6061_v45  ;;  %v1071_v45 = vadd.f32 %v1070_v43, %v6103_v3  ;;  %v1061_v3 = vadd.f32 %v1060_v37, %v6069_v48 }
 0x1e8   : > { %v1356_v43 = vmul.f32 %v1083_v60, %v1065_v42 }
 0x1e9   : > { %5137 = vmatprep.subr.mxu1 %v1110_v1  ;;  %v1211_v36 = vmul.f32 %v1085_v23, %v1063_v58  ;;  %v1208_v46 = vmul.f32 %v1071_v45, %v1049_v17  ;;  %v1355_v50 = vmul.f32 %v1079_v59, %v1061_v3  ;;  %v1445_v48 = vmul.f32 %v1085_v23, %v1065_v42 }
 0x1ea   : > { %5138 = vmatpush3.msra.mxu1 %v1110_v1  ;;  %v1444_v54 = vmul.f32 %v1081_v26, %v1061_v3  ;;  %v1442_v32 = vmul.f32 %v1071_v45, %v1051_v44 }
 0x1eb   : > { %5139 = vmatprep.subr.mxu1 %v1109_v15 }
 0x1ec   : > { %5140 = vmatpush3.msra.mxu1 %v1109_v15 }
 0x1ed   : > { %5141 = vmatprep.subr.mxu1 %v1108_v20 }
 0x1ee   : > { %5142 = vmatpush3.msra.mxu1 %v1108_v20 }
 0x1ef   : > { %5143 = vmatprep.subr.mxu1 %v1107_v25 }
 0x1f0   : > { %5144 = vmatpush3.msra.mxu1 %v1107_v25 }
 0x1f1   : > { %5146 = vmatmul.mubr.msk.f32.vlgmr.msra.gmra.mxu1 %vm995_vm2, %v852_v28  ;;  %5151 = vmatprep.subr.mxu1 %v1211_v36 }
 0x1f2   : > { %5152 = vmatpush3.msra.mxu1 %v1211_v36  ;;  %5148 = vmatprep.mubr.msk.f32.mxu1 %vm995_vm2, %v853_v30 }
 0x1f3   : > { %5153 = vmatprep.subr.mxu1 %v1210_v39 }
 0x1f4   : > { %5154 = vmatpush3.msra.mxu1 %v1210_v39 }
 0x1f5   : > { %5149 = vmatmul.mubr.msk.f32.gmra.mxu1 %vm995_vm2, %v854_v51  ;;  %5155 = vmatprep.subr.mxu1 %v1209_v55 }
 0x1f6   : > { %5156 = vmatpush3.msra.mxu1 %v1209_v55  ;;  %5159 = vmatprep.mubr.msk.f32.mxu1 %vm995_vm2, %v6275_v29 }
 0x1f7   : > { %5157 = vmatprep.subr.mxu1 %v1208_v46 }
 0x1f8   : > { %5158 = vmatpush3.msra.mxu1 %v1208_v46 }
 0x1f9   : > { %5160 = vmatmul.mubr.msk.f32.vlgmr.msra.gmra.mxu1 %vm995_vm2, %v852_v28  ;;  %5165 = vmatprep.subr.mxu1 %v1356_v43 }
 0x1fa   : > { %5166 = vmatpush3.msra.mxu1 %v1356_v43  ;;  %5162 = vmatprep.mubr.msk.f32.mxu1 %vm995_vm2, %v853_v30 }
 0x1fb   : > { %5167 = vmatprep.subr.mxu1 %v1355_v50 }
 0x1fc   : > { %5168 = vmatpush3.msra.mxu1 %v1355_v50 }
 0x1fd   : > { %5163 = vmatmul.mubr.msk.f32.gmra.mxu1 %vm995_vm2, %v854_v51  ;;  %5169 = vmatprep.subr.mxu1 %v1354_v40 }
 0x1fe   : > { %5170 = vmatpush3.msra.mxu1 %v1354_v40  ;;  %5173 = vmatprep.mubr.msk.f32.mxu1 %vm995_vm2, %v6275_v29 }
 0x1ff   : > { %5171 = vmatprep.subr.mxu1 %v1353_v52 }
 0x200   : > { %5172 = vmatpush3.msra.mxu1 %v1353_v52 }
 0x201   : > { %5174 = vmatmul.mubr.msk.f32.vlgmr.msra.gmra.mxu1 %vm995_vm2, %v852_v28  ;;  %5179 = vmatprep.subr.mxu1 %v1445_v48 }
 0x202   : > { %5180 = vmatpush3.msra.mxu1 %v1445_v48  ;;  %5176 = vmatprep.mubr.msk.f32.mxu1 %vm995_vm2, %v853_v30 }
 0x203   : > { %5181 = vmatprep.subr.mxu1 %v1444_v54 }
 0x204   : > { %5182 = vmatpush3.msra.mxu1 %v1444_v54 }
 0x205   : > { %5177 = vmatmul.mubr.msk.f32.gmra.mxu1 %vm995_vm2, %v854_v51  ;;  %5183 = vmatprep.subr.mxu1 %v1443_v62 }
 0x206   : > { %5184 = vmatpush3.msra.mxu1 %v1443_v62  ;;  %5187 = vmatprep.mubr.msk.f32.mxu1 %vm995_vm2, %v6275_v29 }
 0x207   : > { %5185 = vmatprep.subr.mxu1 %v1442_v32 }
 0x208   : > { %5186 = vmatpush3.msra.mxu1 %v1442_v32 }
 0x209   : > { %5188 = vmatmul.mubr.msk.f32.vlgmr.msra.gmra.mxu1 %vm995_vm2, %v852_v28 }
 0x20a   : > { %5190 = vmatprep.mubr.msk.f32.mxu1 %vm995_vm2, %v853_v30 }
 0x20d   : > { %5191 = vmatmul.mubr.msk.f32.gmra.mxu1 %vm995_vm2, %v854_v51 }
 0x20e   : > { %1649 = vmatprep.mubr.bf16.mxu1 %v6959_v5 }
 0x2b1   : > { %v5147_v34 = vpop.f32.mrf.mxu1 }
 0x2b3   : > { %v1189_v37 = vpop.f32.mrf.mxu1 }
 0x2b5   : > { %v5150_v56 = vpop.f32.mrf.mxu1 }
 0x2b7   : > { %v1199_v58 = vpop.f32.mrf.mxu1 }
 0x2b9   : > { %v5161_v59 = vpop.f32.mrf.mxu1 }
 0x2ba   : > { %v1298_v0 = vmax.f32 %v5147_v34, %v5161_v59 }
 0x2bb   : > { %v1278_v60 = vpop.f32.mrf.mxu1 }
 0x2bc   : > { %v1297_v1 = vmax.f32 %v1189_v37, %v1278_v60  ;;  %v1302_v12 = vsub.f32 %v5147_v34, %v1298_v0  ;;  %v1314_v48 = vsub.f32 %v5161_v59, %v1298_v0 }
 0x2bd   : > { %v5164_v61 = vpop.f32.mrf.mxu1 }
 0x2be   : > { %v1300_v15 = vmax.f32 %v5150_v56, %v5164_v61  ;;  %v1301_v17 = vsub.f32 %v1189_v37, %v1297_v1  ;;  %v1313_v25 = vsub.f32 %v1278_v60, %v1297_v1  ;;  %v1307_v28 = vmul.f32 1.442695, %v1302_v12 }
 0x2bf   : > { %v1288_v2 = vpop.f32.mrf.mxu1 }
 0x2c0   : > { %v1299_v20 = vmax.f32 %v1199_v58, %v1288_v2  ;;  %v1304_v33 = vsub.f32 %v5150_v56, %v1300_v15  ;;  %v1305_v36 = vmul.f32 1.442695, %v1301_v17  ;;  %v1317_v51 = vmul.f32 1.442695, %v1313_v25 }
 0x2c1   : > { %v5175_v8 = vpop.f32.mrf.mxu1  ;;  %v1316_v55 = vsub.f32 %v5164_v61, %v1300_v15  ;;  %5351 = vpow2.f32 %v1307_v28  ;;  %v1319_v15 = vmul.f32 1.442695, %v1314_v48 }
 0x2c2   : > { %v1303_v30 = vsub.f32 %v1199_v58, %v1299_v20  ;;  %v1315_v39 = vsub.f32 %v1288_v2, %v1299_v20  ;;  %v1311_v46 = vmul.f32 1.442695, %v1304_v33  ;;  %5353 = vpow2.f32 %v1305_v36 }
 0x2c3   : > { %v1423_v23 = vpop.f32.mrf.mxu1  ;;  %5355 = vpow2.f32 %v1317_v51  ;;  %v1323_v54 = vmul.f32 1.442695, %v1316_v55 }
 0x2c4   : > { %v1309_v43 = vmul.f32 1.442695, %v1303_v30  ;;  %v1321_v50 = vmul.f32 1.442695, %v1315_v39  ;;  %5357 = vpow2.f32 %v1311_v46 }
 0x2c5   : > { %v5178_v26 = vpop.f32.mrf.mxu1 }
 0x2c6   : > { %5359 = vpow2.f32 %v1309_v43 }
 0x2c7   : > { %v1433_v45 = vpop.f32.mrf.mxu1  ;;  %5361 = vpow2.f32 %v1321_v50 }
 0x2c8   : > { %5363 = vpow2.f32 %v1323_v54 }
 0x2c9   : > { %v5189_v42 = vpop.f32.mrf.mxu1 }
 0x2ca   : > { %v1532_v3 = vmax.f32 %v5175_v8, %v5189_v42 }
 0x2cb   : > { %v1512_v47 = vpop.f32.mrf.mxu1 }
 0x2cc   : > { %v1536_v44 = vsub.f32 %v5175_v8, %v1532_v3  ;;  %v1548_v40 = vsub.f32 %v5189_v42, %v1532_v3  ;;  %v1531_v52 = vmax.f32 %v1423_v23, %v1512_v47 }
 0x2cd   : > { %v5192_v62 = vpop.f32.mrf.mxu1 }
 0x2ce   : > { %v1541_v32 = vmul.f32 1.442695, %v1536_v44  ;;  %v1535_v34 = vsub.f32 %v1423_v23, %v1531_v52  ;;  %v1547_v37 = vsub.f32 %v1512_v47, %v1531_v52  ;;  %v1553_v56 = vmul.f32 1.442695, %v1548_v40  ;;  %v1088_v23 = vpop.f32.mrf.mxu0  ;;  %v6326_v28 = vpop.eup %5351 }
 0x2cf   : > { %v1534_v58 = vmax.f32 %v5178_v26, %v5192_v62  ;;  %v1522_v60 = vpop.f32.mrf.mxu1  ;;  %v5354_v36 = vpop.eup %5353 }
 0x2d0   : > { %v1539_v61 = vmul.f32 1.442695, %v1535_v34  ;;  %v1533_v1 = vmax.f32 %v1433_v45, %v1522_v60  ;;  %v1551_v2 = vmul.f32 1.442695, %v1547_v37  ;;  %5365 = vpow2.f32 %v1541_v32  ;;  %v1090_v30 = vpop.f32.mrf.mxu0 }
 0x2d1   : > { %v1538_v8 = vsub.f32 %v5178_v26, %v1534_v58  ;;  %v1550_v12 = vsub.f32 %v5192_v62, %v1534_v58  ;;  %5367 = vpow2.f32 %v1553_v56  ;;  %v5356_v26 = vpop.eup %5355 }
 0x2d2   : > { %v1537_v59 = vsub.f32 %v1433_v45, %v1533_v1  ;;  %v1549_v17 = vsub.f32 %v1522_v60, %v1533_v1  ;;  %5369 = vpow2.f32 %v1539_v61  ;;  %v5358_v39 = vpop.eup %5357  ;;  %v1092_v42 = vpop.f32.mrf.mxu0  ;;  %v1325_v3 = vadd.f32 %v5356_v26, %v5354_v36 }
 0x2d3   : > { %v1545_v0 = vmul.f32 1.442695, %v1538_v8  ;;  %5371 = vpow2.f32 %v1551_v2  ;;  %v1557_v20 = vmul.f32 1.442695, %v1550_v12  ;;  %v5360_v45 = vpop.eup %5359 }
 0x2d4   : > { %5373 = vpow2.f32 %v1319_v15  ;;  %v1543_v25 = vmul.f32 1.442695, %v1537_v59  ;;  %v1555_v33 = vmul.f32 1.442695, %v1549_v17  ;;  %v5362_v51 = vpop.eup %5361  ;;  %v1094_v40 = vpop.f32.mrf.mxu0 }
 0x2d5   : > { %5375 = vpow2.f32 %v1545_v0  ;;  %v5364_v55 = vpop.eup %5363  ;;  %v1327_v47 = vadd.f32 %v5362_v51, %v5360_v45 }
 0x2d6   : > { %5377 = vpow2.f32 %v1557_v20  ;;  %v1328_v52 = vadd.f32 %v5364_v55, %v5358_v39  ;;  %v1098_v37 = vpop.f32.mrf.mxu0  ;;  %v1089_v20 = vadd.f32 %v1088_v23, %v6153_v27 }
 0x2d7   : > { %5379 = vpow2.f32 %v1543_v25  ;;  %v1091_v25 = vadd.f32 %v1090_v30, %v6153_v27 }
 0x2d8   : > { %5381 = vpow2.f32 %v1555_v33  ;;  %v1100_v2 = vpop.f32.mrf.mxu0  ;;  %v1093_v33 = vadd.f32 %v1092_v42, %v6161_v31 }
 0x2d9   : > { %5383 = vrcp.f32 %v1325_v3  ;;  %v1095_v3 = vadd.f32 %v1094_v40, %v6161_v31 }
 0x2da   : > { %5385 = vrcp.f32 %v1327_v47  ;;  %v1102_v8 = vpop.f32.mrf.mxu0 }
 0x2db   : > { %v1103_v5 = vadd.f32 %v1102_v8, %v6137_v21 }
 0x2dc   : > { %v1104_v0 = vpop.f32.mrf.mxu0 }
 0x2dd   : > { %v5366_v46 = vpop.eup %5365  ;;  %v1105_v29 = vadd.f32 %v1104_v0, %v6137_v21 }
 0x2de   : > { %v5368_v43 = vpop.eup %5367 }
 0x2df   : > { %v5370_v50 = vpop.eup %5369  ;;  %v1560_v54 = vadd.f32 %v5368_v43, %v5366_v46 }
 0x2e0   : > { %v5372_v44 = vpop.eup %5371 }
 0x2e1   : > { %v5374_v48 = vpop.eup %5373  ;;  %v1559_v62 = vadd.f32 %v5372_v44, %v5370_v50 }
 0x2e2   : > { %v5376_v32 = vpop.eup %5375  ;;  %v1326_v56 = vadd.f32 %v5374_v48, %v6326_v28 }
 0x2e3   : > { %5387 = vrcp.f32 %v1559_v62  ;;  %v5378_v34 = vpop.eup %5377 }
 0x2e4   : > { %5389 = vrcp.f32 %v1328_v52  ;;  %v5380_v58 = vpop.eup %5379  ;;  %v1562_v60 = vadd.f32 %v5378_v34, %v5376_v32 }
 0x2e5   : > { %5391 = vrcp.f32 %v1560_v54  ;;  %v5382_v61 = vpop.eup %5381 }
 0x2e6   : > { %5393 = vrcp.f32 %v1562_v60  ;;  %v1561_v1 = vadd.f32 %v5382_v61, %v5380_v58  ;;  %v5384_v12 = vpop.eup %5383  ;;  %v1099_v60 = vadd.f32 %v1098_v37, %v6119_v13 }
 0x2e7   : > { %5395 = vrcp.f32 %v1326_v56  ;;  %v5386_v15 = vpop.eup %5385  ;;  %v1333_v30 = vmul.f32 %v5384_v12, %v5354_v36  ;;  %v1341_v42 = vmul.f32 %v5384_v12, %v5356_v26 }
 0x2e8   : > { %5397 = vrcp.f32 %v1561_v1  ;;  %v1335_v52 = vmul.f32 %v5386_v15, %v5360_v45  ;;  %v1343_v54 = vmul.f32 %v5386_v15, %v5362_v51  ;;  %v1101_v1 = vadd.f32 %v1100_v2, %v6119_v13 }
 0x2e9   : > { %v1345_v12 = vmul.f32 %v1341_v42, %v1091_v25 }
 0x2ea   : > { %v1347_v15 = vmul.f32 %v1343_v54, %v1101_v1 }
 0x2f0   : > { %v5388_v59 = vpop.eup %5387 }
 0x2f1   : > { %v5390_v17 = vpop.eup %5389  ;;  %v1567_v62 = vmul.f32 %v5388_v59, %v5370_v50  ;;  %v1575_v56 = vmul.f32 %v5388_v59, %v5372_v44  ;;  %v1339_v44 = vmul.f32 %v1335_v52, %v1099_v60 }
 0x2f2   : > { %v5392_v47 = vpop.eup %5391  ;;  %v1336_v24 = vmul.f32 %v5390_v17, %v5358_v39  ;;  %v1344_v27 = vmul.f32 %v5390_v17, %v5364_v55 }
 0x2f3   : > { %v5394_v23 = vpop.eup %5393  ;;  %v1568_v45 = vmul.f32 %v5392_v47, %v5366_v46  ;;  %v1576_v51 = vmul.f32 %v5392_v47, %v5368_v43  ;;  %v1571_v37 = vmul.f32 %v1567_v62, %v1089_v20  ;;  %v1579_v59 = vmul.f32 %v1575_v56, %v1091_v25 }
 0x2f4   : > { %v5396_v7 = vpop.eup %5395  ;;  %v1570_v31 = vmul.f32 %v5394_v23, %v5376_v32  ;;  %v1578_v40 = vmul.f32 %v5394_v23, %v5378_v34  ;;  %v1340_v21 = vmul.f32 %v1336_v24, %v1103_v5  ;;  %v1348_v0 = vmul.f32 %v1344_v27, %v1105_v29 }
 0x2f5   : > { %v5398_v50 = vpop.eup %5397  ;;  %v1334_v39 = vmul.f32 %v5396_v7, %v6326_v28  ;;  %v1342_v36 = vmul.f32 %v5396_v7, %v5374_v48  ;;  %v1572_v32 = vmul.f32 %v1568_v45, %v1093_v33  ;;  %v1580_v34 = vmul.f32 %v1576_v51, %v1095_v3  ;;  %v885_v28 = vld [vmem:[%s6936_s6] sm:$0xff] }
 0x2f6   : > { %v1569_v13 = vmul.f32 %v5398_v50, %v5380_v58  ;;  %v1574_v2 = vmul.f32 %v1570_v31, %v1103_v5  ;;  %v1577_v8 = vmul.f32 %v5398_v50, %v5382_v61  ;;  %v1582_v63 = vmul.f32 %v1578_v40, %v1105_v29 }
 0x2f7   : > { %v1351_v46 = vadd.f32 %v1347_v15, %v1339_v44  ;;  %v1337_v43 = vmul.f32 %v1333_v30, %v1089_v20  ;;  %v1583_v52 = vadd.f32 %v1579_v59, %v1571_v37  ;;  %v1352_v54 = vadd.f32 %v1348_v0, %v1340_v21 }
 0x2f8   : > { %v1573_v26 = vmul.f32 %v1569_v13, %v1099_v60  ;;  %v1581_v55 = vmul.f32 %v1577_v8, %v1101_v1  ;;  %v1586_v47 = vadd.f32 %v1582_v63, %v1574_v2  ;;  %v1338_v58 = vmul.f32 %v1334_v39, %v1093_v33  ;;  %v886_v63 = vld [vmem:[%s6936_s6 + $0x8] sm:$0xff]  ;;  %v887_v33 = vld [vmem:[%s6936_s6 + $0x10] sm:$0xff] }
 0x2f9   : > { %v1346_v62 = vmul.f32 %v1342_v36, %v1095_v3  ;;  %v1584_v56 = vadd.f32 %v1580_v34, %v1572_v32  ;;  %v1589_v5 = vpack.c.bf16 %v1352_v54, %v1351_v46  ;;  %v1349_v24 = vadd.f32 %v1345_v12, %v1337_v43  ;;  %v888_v3 = vld [vmem:[%s6936_s6 + $0x18] sm:$0xff] }
 0x2fa   : > { %v1585_v17 = vadd.f32 %v1581_v55, %v1573_v26  ;;  %v889_v20 = vpack.c.bf16 %v886_v63, %v885_v28  ;;  %v6983_v25 = vmov 0   ;;  %v890_v60 = vpack.c.bf16 %v888_v3, %v887_v33 }
 0x2fb   : > { %v1588_v29 = vpack.c.bf16 %v1584_v56, %v1583_v52  ;;  %v1350_v7 = vadd.f32 %v1346_v62, %v1338_v58 }
 0x2fc   : > { %v1590_v61 = vpack.c.bf16 %v1586_v47, %v1585_v17 }
 0x2fd   : > { %v1587_v48 = vpack.c.bf16 %v1350_v7, %v1349_v24 }
 0x2fe   : > { %1629 = vmatprep.subr.bf16.mxu1 %v1590_v61 }
 0x2ff   : > { %1630 = vmatpush1.bf16.msra.mxu1 %v1589_v5 }
 0x300   : > { %1631 = vmatprep.subr.bf16.mxu1 %v1588_v29 }
 0x303   : > { %1632 = vmatpush1.bf16.msra.mxu1 %v1587_v48 }
 0x306   : > { %4819 = vmatmul.mubr.msk.bf16.vlgmr.msra.gmra.mxu1 %vm995_vm2, %v889_v20 }
 0x307   : > { %1659 = vmatprep.mubr.bf16.mxu1 %v6983_v25 }
 0x30e   : > { %4820 = vmatmul.mubr.msk.bf16.gmra.mxu1 %vm995_vm2, %v890_v60 }
 0x30f   : > { %1956 = vmatprep.mubr.bf16.mxu1 %v6983_v25 }
 0x3c6   : > { %v1651_v1 = vpop.f32.mrf.mxu1 }
 0x3c7   : > { %v1652_v31 = vadd.f32 %v1651_v1, %v6174_v35 }
 0x3c8   : > { %v1653_v23 = vpop.f32.mrf.mxu1 }
 0x3c9   : > { %v1654_v51 = vadd.f32 %v1653_v23, %v6174_v35  ;;  %v1670_v37 = vadd.f32 %v1652_v31, %v6133_v19 }
 0x3ca   : > { %v1655_v27 = vpop.f32.mrf.mxu1 }
 0x3cb   : > { %v1656_v30 = vadd.f32 %v1655_v27, %v6179_v38  ;;  %v1671_v21 = vadd.f32 %v1654_v51, %v6106_v4 }
 0x3cc   : > { %v1657_v42 = vpop.f32.mrf.mxu1 }
 0x3cd   : > { %v1658_v40 = vadd.f32 %v1657_v42, %v6179_v38  ;;  %v1672_v50 = vadd.f32 %v1656_v30, %v6130_v18 }
 0x3ce   : > { %v1661_v45 = vpop.f32.mrf.mxu1 }
 0x3cf   : > { %v1662_v44 = vadd.f32 %v1661_v45, %v6187_v41  ;;  %v1673_v59 = vadd.f32 %v1658_v40, %v6121_v14  ;;  %v1678_v38 = vadd.f32 %v1672_v50, %v1670_v37 }
 0x3d0   : > { %v1663_v15 = vpop.f32.mrf.mxu1 }
 0x3d1   : > { %v1674_v13 = vadd.f32 %v1662_v44, %v6112_v10  ;;  %v1664_v2 = vadd.f32 %v1663_v15, %v6187_v41  ;;  %v1687_v39 = vadd.f32 %v1673_v59, %v1671_v21 }
 0x3d2   : > { %v1665_v8 = vpop.f32.mrf.mxu1 }
 0x3d3   : > { %v1675_v0 = vadd.f32 %v1664_v2, %v6114_v11  ;;  %v1666_v35 = vadd.f32 %v1665_v8, %v6203_v49  ;;  %v1679_v36 = vadd.f32 %v1678_v38, %v1674_v13 }
 0x3d4   : > { %v1667_v18 = vpop.f32.mrf.mxu1 }
 0x3d5   : > { %v1676_v26 = vadd.f32 %v1666_v35, %v6108_v6  ;;  %v1668_v19 = vadd.f32 %v1667_v18, %v6203_v49  ;;  %v1688_v14 = vadd.f32 %v1687_v39, %v1675_v0 }
 0x3d7   : > { %v1680_v55 = vadd.f32 %v1679_v36, %v1676_v26  ;;  %v1677_v10 = vadd.f32 %v1668_v19, %v6110_v9 }
 0x3d9   : > { %v1681_v41 = vrot.slane %v1680_v55, 4  ;;  %v1689_v32 = vadd.f32 %v1688_v14, %v1677_v10 }
 0x3db   : > { %v1682_v34 = vadd.f32 %v1681_v41, %v1680_v55  ;;  %v1690_v4 = vrot.slane %v1689_v32, 4 }
 0x3dd   : > { %v1683_v46 = vrot.slane %v1682_v34, 2  ;;  %v1691_v43 = vadd.f32 %v1690_v4, %v1689_v32 }
 0x3df   : > { %v1684_v11 = vadd.f32 %v1683_v46, %v1682_v34  ;;  %v1692_v12 = vrot.slane %v1691_v43, 2 }
 0x3e1   : > { %v1685_v17 = vrot.slane %v1684_v11, 1  ;;  %v1693_v47 = vadd.f32 %v1692_v12, %v1691_v43 }
 0x3e3   : > { %v1686_v52 = vadd.f32 %v1685_v17, %v1684_v11  ;;  %v1694_v54 = vrot.slane %v1693_v47, 1 }
 0x3e5   : > { %v1697_v58 = vmul.f32 0.03125, %v1686_v52  ;;  %v1695_v6 = vadd.f32 %v1694_v54, %v1693_v47  ;;  %v1783_v52 = vpop.permute.xlu1 %1782  ;;  %v6984_v54 = vld [vmem:[#allocation10_spill] sm:$0xff] }
 0x3e7   : > { %v1699_v62 = vsub.f32 %v1670_v37, %v1697_v58  ;;  %v1701_v49 = vsub.f32 %v1672_v50, %v1697_v58  ;;  %v1703_v61 = vsub.f32 %v1674_v13, %v1697_v58  ;;  %v1698_v56 = vmul.f32 0.03125, %v1695_v6  ;;  %v6985_v6 = vld [vmem:[#allocation11_spill] sm:$0xff] }
 0x3e8   : > { %v1705_v5 = vsub.f32 %v1676_v26, %v1697_v58 }
 0x3e9   : > { %v1707_v9 = vmul.f32 %v1699_v62, %v1699_v62  ;;  %v1709_v24 = vmul.f32 %v1701_v49, %v1701_v49  ;;  %v1700_v29 = vsub.f32 %v1671_v21, %v1698_v56  ;;  %v1702_v7 = vsub.f32 %v1673_v59, %v1698_v56 }
 0x3ea   : > { %v1704_v28 = vsub.f32 %v1675_v0, %v1698_v56  ;;  %v1711_v63 = vmul.f32 %v1703_v61, %v1703_v61  ;;  %v1706_v20 = vsub.f32 %v1677_v10, %v1698_v56  ;;  %v1713_v60 = vmul.f32 %v1705_v5, %v1705_v5 }
 0x3eb   : > { %v1715_v48 = vadd.f32 %v1709_v24, %v1707_v9  ;;  %v1708_v33 = vmul.f32 %v1700_v29, %v1700_v29  ;;  %v1710_v3 = vmul.f32 %v1702_v7, %v1702_v7 }
 0x3ec   : > { %v1712_v23 = vmul.f32 %v1704_v28, %v1704_v28  ;;  %v1714_v42 = vmul.f32 %v1706_v20, %v1706_v20 }
 0x3ed   : > { %v1716_v1 = vadd.f32 %v1715_v48, %v1711_v63  ;;  %v1724_v27 = vadd.f32 %v1710_v3, %v1708_v33  ;;  %v896_v63 = vld [vmem:[%s6940_s10 + $0x8] sm:$0xff]  ;;  %v897_v33 = vld [vmem:[%s6940_s10 + $0x10] sm:$0xff]  ;;  %v898_v3 = vld [vmem:[%s6940_s10 + $0x18] sm:$0xff] }
 0x3ef   : > { %v1717_v30 = vadd.f32 %v1716_v1, %v1713_v60  ;;  %v1725_v31 = vadd.f32 %v1724_v27, %v1712_v23  ;;  %v900_v60 = vpack.c.bf16 %v898_v3, %v897_v33 }
 0x3f1   : > { %v1718_v40 = vrot.slane %v1717_v30, 4  ;;  %v1726_v45 = vadd.f32 %v1725_v31, %v1714_v42  ;;  %v1820_v31 = vpop.permute.xlu0 %1819 }
 0x3f3   : > { %v1719_v51 = vadd.f32 %v1718_v40, %v1717_v30  ;;  %v1727_v50 = vrot.slane %v1726_v45, 4  ;;  %v1825_v30 = vpop.permute.xlu1 %1824 }
 0x3f5   : > { %v1720_v44 = vrot.slane %v1719_v51, 2  ;;  %v1728_v15 = vadd.f32 %v1727_v50, %v1726_v45 }
 0x3f7   : > { %v1721_v37 = vadd.f32 %v1720_v44, %v1719_v51  ;;  %v1729_v59 = vrot.slane %v1728_v15, 2  ;;  %v1815_v51 = vpop.permute.xlu1 %1814 }
 0x3f9   : > { %v1722_v13 = vrot.slane %v1721_v37, 1  ;;  %v1730_v2 = vadd.f32 %v1729_v59, %v1728_v15  ;;  %v1810_v59 = vpop.permute.xlu0 %1809 }
 0x3fb   : > { %v1723_v8 = vadd.f32 %v1722_v13, %v1721_v37  ;;  %v1731_v21 = vrot.slane %v1730_v2, 1 }
 0x3fd   : > { %v1733_v38 = vmul.f32 0.03125, %v1723_v8  ;;  %v1732_v0 = vadd.f32 %v1731_v21, %v1730_v2 }
 0x3ff   : > { %v1735_v35 = vadd.f32 1e-05, %v1733_v38  ;;  %v1734_v18 = vmul.f32 0.03125, %v1732_v0 }
 0x401   : > { %5399 = vrsqrt.f32 %v1735_v35  ;;  %v1736_v39 = vadd.f32 1e-05, %v1734_v18 }
 0x403   : > { %5401 = vrsqrt.f32 %v1736_v39 }
 0x40e   : > { %v5400_v36 = vpop.eup %5399 }
 0x40f   : > { %v1745_v26 = vmul.f32 %v5400_v36, %v1705_v5  ;;  %v1743_v19 = vmul.f32 %v5400_v36, %v1703_v61  ;;  %v1739_v41 = vmul.f32 %v5400_v36, %v1699_v62  ;;  %v1741_v32 = vmul.f32 %v5400_v36, %v1701_v49 }
 0x410   : > { %v5402_v14 = vpop.eup %5401 }
 0x411   : > { %v1773_v55 = vmul.f32 %v6214_v57, %v1745_v26  ;;  %v1771_v10 = vmul.f32 %v6208_v53, %v1743_v19  ;;  %v1746_v34 = vmul.f32 %v5402_v14, %v1706_v20  ;;  %v1744_v4 = vmul.f32 %v5402_v14, %v1704_v28  ;;  %v895_v28 = vld [vmem:[%s6940_s10] sm:$0xff] }
 0x412   : > { %v1740_v46 = vmul.f32 %v5402_v14, %v1700_v29  ;;  %v1742_v43 = vmul.f32 %v5402_v14, %v1702_v7  ;;  %v1767_v62 = vmul.f32 %v6250_v16, %v1739_v41  ;;  %v1769_v49 = vmul.f32 %v6255_v22, %v1741_v32 }
 0x413   : > { %v1772_v11 = vmul.f32 %v6208_v53, %v1744_v4  ;;  %v1774_v12 = vmul.f32 %v6214_v57, %v1746_v34  ;;  %v6377_v58 = vadd.f32 %v6984_v54, %v1771_v10  ;;  %v6380_v61 = vadd.f32 %v6985_v6, %v1773_v55  ;;  %v6986_v57 = vld [vmem:[#allocation12_spill] sm:$0xff]  ;;  %v905_v34 = vld [vmem:[%s6942_s12] sm:$0xff]  ;;  %v906_v4 = vld [vmem:[%s6942_s12 + $0x8] sm:$0xff] }
 0x414   : > { %v1768_v17 = vmul.f32 %v6250_v16, %v1740_v46  ;;  %v1770_v47 = vmul.f32 %v6255_v22, %v1742_v43  ;;  %v6400_v16 = vadd.f32 %v6986_v57, %v1767_v62  ;;  %v6402_v22 = vadd.f32 %v1783_v52, %v1769_v49  ;;  %v1906_v62 = vpop.permute.xlu1 %1905 }
 0x415   : > { %v6385_v56 = vadd.f32 %v6984_v54, %v1772_v11  ;;  %v6388_v53 = vadd.f32 %v6985_v6, %v1774_v12  ;;  %v1805_v29 = vpack.c.bf16 %v6380_v61, %v6377_v58  ;;  %v899_v20 = vpack.c.bf16 %v896_v63, %v895_v28  ;;  %v907_v11 = vld [vmem:[%s6942_s12 + $0x10] sm:$0xff]  ;;  %v908_v12 = vld [vmem:[%s6942_s12 + $0x18] sm:$0xff]  ;;  %v1901_v54 = vpop.permute.xlu0 %1900 }
 0x416   : > { %v6391_v5 = vadd.f32 %v6986_v57, %v1768_v17  ;;  %v6393_v9 = vadd.f32 %v1783_v52, %v1770_v47  ;;  %v1803_v48 = vpack.c.bf16 %v6402_v22, %v6400_v16  ;;  %v909_v43 = vpack.c.bf16 %v906_v4, %v905_v34  ;;  %v6987_v47 = vld [vmem:[#allocation13_spill] sm:$0xff] }
 0x417   : > { %v1806_v24 = vpack.c.bf16 %v6388_v53, %v6385_v56  ;;  %v910_v17 = vpack.c.bf16 %v908_v12, %v907_v11 }
 0x418   : > { %v1804_v7 = vpack.c.bf16 %v6393_v9, %v6391_v5 }
 0x419   : > { %1845 = vmatprep.subr.bf16.mxu0 %v1806_v24  ;;  %v1911_v28 = vpop.permute.xlu0 %1910 }
 0x41a   : > { %1846 = vmatpush1.bf16.msra.mxu0 %v1805_v29 }
 0x41b   : > { %1847 = vmatprep.subr.bf16.mxu0 %v1804_v7 }
 0x41e   : > { %1848 = vmatpush1.bf16.msra.mxu0 %v1803_v48 }
 0x421   : > { %4821 = vmatmul.mubr.msk.bf16.vlgmr.msra.gmra.mxu0 %vm995_vm2, %v899_v20 }
 0x422   : > { %1875 = vmatprep.mubr.bf16.mxu0 %v6983_v25 }
 0x429   : > { %4822 = vmatmul.mubr.msk.bf16.gmra.mxu0 %vm995_vm2, %v900_v60 }
 0x42a   : > { %2311 = vmatprep.mubr.bf16.mxu0 %v6983_v25 }
 0x4e1   : > { %v1867_v1 = vpop.f32.mrf.mxu0 }
 0x4e2   : > { %v1868_v36 = vadd.f32 %v1867_v1, %v1810_v59 }
 0x4e3   : > { %v1869_v23 = vpop.f32.mrf.mxu0 }
 0x4e4   : > { %v1870_v8 = vadd.f32 %v1869_v23, %v1810_v59  ;;  %v1886_v32 = vmax.f32 %v1868_v36, 0.0 }
 0x4e5   : > { %v1871_v27 = vpop.f32.mrf.mxu0 }
 0x4e6   : > { %v1872_v38 = vadd.f32 %v1871_v27, %v1815_v51  ;;  %v1887_v19 = vmax.f32 %v1870_v8, 0.0 }
 0x4e7   : > { %v1873_v42 = vpop.f32.mrf.mxu0 }
 0x4e8   : > { %v1874_v44 = vadd.f32 %v1873_v42, %v1815_v51  ;;  %v1888_v55 = vmax.f32 %v1872_v38, 0.0 }
 0x4e9   : > { %v1877_v40 = vpop.f32.mrf.mxu0 }
 0x4ea   : > { %v1878_v13 = vadd.f32 %v1877_v40, %v1820_v31  ;;  %v1889_v35 = vmax.f32 %v1874_v44, 0.0  ;;  %v1894_v46 = vpack.c.bf16 %v1888_v55, %v1886_v32 }
 0x4eb   : > { %v1879_v45 = vpop.f32.mrf.mxu0 }
 0x4ec   : > { %v1880_v15 = vadd.f32 %v1879_v45, %v1820_v31  ;;  %v1890_v26 = vmax.f32 %v1878_v13, 0.0  ;;  %v1895_v41 = vpack.c.bf16 %v1889_v35, %v1887_v19 }
 0x4ed   : > { %v1881_v50 = vpop.f32.mrf.mxu0 }
 0x4ee   : > { %v1882_v37 = vadd.f32 %v1881_v50, %v1825_v30  ;;  %v1891_v18 = vmax.f32 %v1880_v15, 0.0 }
 0x4ef   : > { %v1883_v2 = vpop.f32.mrf.mxu0 }
 0x4f0   : > { %v1884_v21 = vadd.f32 %v1883_v2, %v1825_v30  ;;  %v1892_v0 = vmax.f32 %v1882_v37, 0.0  ;;  %v1916_v30 = vpop.permute.xlu1 %1915 }
 0x4f2   : > { %v1893_v39 = vmax.f32 %v1884_v21, 0.0  ;;  %v1896_v10 = vpack.c.bf16 %v1892_v0, %v1890_v26 }
 0x4f4   : > { %v1897_v14 = vpack.c.bf16 %v1893_v39, %v1891_v18 }
 0x4f6   : > { %1936 = vmatprep.subr.bf16.mxu1 %v1897_v14 }
 0x4f7   : > { %1937 = vmatpush1.bf16.msra.mxu1 %v1896_v10 }
 0x4f8   : > { %1938 = vmatprep.subr.bf16.mxu1 %v1895_v41 }
 0x4fb   : > { %1939 = vmatpush1.bf16.msra.mxu1 %v1894_v46 }
 0x4fe   : > { %4823 = vmatmul.mubr.msk.bf16.vlgmr.msra.gmra.mxu1 %vm995_vm2, %v909_v43 }
 0x4ff   : > { %1966 = vmatprep.mubr.bf16.mxu1 %v6983_v25 }
 0x506   : > { %4824 = vmatmul.mubr.msk.bf16.gmra.mxu1 %vm995_vm2, %v910_v17 }
 0x507   : > { %5201 = vmatprep.mubr.msk.f32.mxu1 %vm995_vm2, %v6987_v47 }
 0x5be   : > { %v1958_v52 = vpop.f32.mrf.mxu1 }
 0x5bf   : > { %v1959_v29 = vadd.f32 %v1958_v52, %v1901_v54 }
 0x5c0   : > { %v1960_v6 = vpop.f32.mrf.mxu1 }
 0x5c1   : > { %v1961_v48 = vadd.f32 %v1960_v6, %v1901_v54  ;;  %v1977_v60 = vadd.f32 %v1959_v29, %v6400_v16 }
 0x5c2   : > { %v1962_v49 = vpop.f32.mrf.mxu1 }
 0x5c3   : > { %v1963_v57 = vadd.f32 %v1962_v49, %v1906_v62  ;;  %v1978_v31 = vadd.f32 %v1961_v48, %v6391_v5 }
 0x5c4   : > { %v1964_v24 = vpop.f32.mrf.mxu1 }
 0x5c5   : > { %v1965_v7 = vadd.f32 %v1964_v24, %v1906_v62  ;;  %v1979_v20 = vadd.f32 %v1963_v57, %v6402_v22 }
 0x5c6   : > { %v1968_v63 = vpop.f32.mrf.mxu1 }
 0x5c7   : > { %v1969_v33 = vadd.f32 %v1968_v63, %v1911_v28  ;;  %v1980_v1 = vadd.f32 %v1965_v7, %v6393_v9  ;;  %v1985_v40 = vadd.f32 %v1979_v20, %v1977_v60 }
 0x5c8   : > { %v1970_v3 = vpop.f32.mrf.mxu1 }
 0x5c9   : > { %v1981_v23 = vadd.f32 %v1969_v33, %v6377_v58  ;;  %v1971_v27 = vadd.f32 %v1970_v3, %v1911_v28  ;;  %v1994_v44 = vadd.f32 %v1980_v1, %v1978_v31 }
 0x5ca   : > { %v1972_v42 = vpop.f32.mrf.mxu1 }
 0x5cb   : > { %v1982_v45 = vadd.f32 %v1971_v27, %v6385_v56  ;;  %v1973_v51 = vadd.f32 %v1972_v42, %v1916_v30  ;;  %v1986_v22 = vadd.f32 %v1985_v40, %v1981_v23 }
 0x5cc   : > { %v1974_v50 = vpop.f32.mrf.mxu1 }
 0x5cd   : > { %v1983_v15 = vadd.f32 %v1973_v51, %v6380_v61  ;;  %v1975_v37 = vadd.f32 %v1974_v50, %v1916_v30  ;;  %v1995_v16 = vadd.f32 %v1994_v44, %v1982_v45  ;;  %v2071_v51 = vpop.permute.xlu1 %2070 }
 0x5cf   : > { %v1987_v59 = vadd.f32 %v1986_v22, %v1983_v15  ;;  %v1984_v9 = vadd.f32 %v1975_v37, %v6388_v53 }
 0x5d1   : > { %v1988_v58 = vrot.slane %v1987_v59, 4  ;;  %v1996_v13 = vadd.f32 %v1995_v16, %v1984_v9  ;;  %v2099_v44 = vpop.permute.xlu1 %2098 }
 0x5d3   : > { %v1989_v2 = vadd.f32 %v1988_v58, %v1987_v59  ;;  %v1997_v8 = vrot.slane %v1996_v13, 4 }
 0x5d5   : > { %v1990_v21 = vrot.slane %v1989_v2, 2  ;;  %v1998_v5 = vadd.f32 %v1997_v8, %v1996_v13  ;;  %v2061_v37 = vpop.permute.xlu1 %2060 }
 0x5d7   : > { %v1991_v38 = vadd.f32 %v1990_v21, %v1989_v2  ;;  %v1999_v0 = vrot.slane %v1998_v5, 2 }
 0x5d9   : > { %v1992_v56 = vrot.slane %v1991_v38, 1  ;;  %v2000_v35 = vadd.f32 %v1999_v0, %v1998_v5 }
 0x5db   : > { %v1993_v18 = vadd.f32 %v1992_v56, %v1991_v38  ;;  %v2001_v39 = vrot.slane %v2000_v35, 1 }
 0x5dd   : > { %v2003_v36 = vmul.f32 0.03125, %v1993_v18  ;;  %v2002_v26 = vadd.f32 %v2001_v39, %v2000_v35 }
 0x5df   : > { %v2005_v61 = vsub.f32 %v1977_v60, %v2003_v36  ;;  %v2007_v19 = vsub.f32 %v1979_v20, %v2003_v36  ;;  %v2009_v14 = vsub.f32 %v1981_v23, %v2003_v36  ;;  %v2004_v55 = vmul.f32 0.03125, %v2002_v26  ;;  %v2089_v26 = vpop.permute.xlu1 %2088 }
 0x5e0   : > { %v2011_v10 = vsub.f32 %v1983_v15, %v2003_v36 }
 0x5e1   : > { %v2013_v53 = vmul.f32 %v2005_v61, %v2005_v61  ;;  %v2015_v41 = vmul.f32 %v2007_v19, %v2007_v19  ;;  %v2006_v32 = vsub.f32 %v1978_v31, %v2004_v55  ;;  %v2008_v34 = vsub.f32 %v1980_v1, %v2004_v55 }
 0x5e2   : > { %v2010_v4 = vsub.f32 %v1982_v45, %v2004_v55  ;;  %v2017_v46 = vmul.f32 %v2009_v14, %v2009_v14  ;;  %v2012_v11 = vsub.f32 %v1984_v9, %v2004_v55  ;;  %v2019_v47 = vmul.f32 %v2011_v10, %v2011_v10  ;;  %v2066_v45 = vpop.permute.xlu0 %2065 }
 0x5e3   : > { %v2021_v43 = vadd.f32 %v2015_v41, %v2013_v53  ;;  %v2014_v12 = vmul.f32 %v2006_v32, %v2006_v32  ;;  %v2016_v17 = vmul.f32 %v2008_v34, %v2008_v34 }
 0x5e4   : > { %v2018_v54 = vmul.f32 %v2010_v4, %v2010_v4  ;;  %v2020_v49 = vmul.f32 %v2012_v11, %v2012_v11 }
 0x5e5   : > { %v2022_v52 = vadd.f32 %v2021_v43, %v2017_v46  ;;  %v2030_v6 = vadd.f32 %v2016_v17, %v2014_v12  ;;  %v4825_v12 = vld [vmem:[%s6934_s4 + $0x60] sm:$0xff]  ;;  %v4826_v17 = vld [vmem:[%s6934_s4 + $0x68] sm:$0xff] }
 0x5e6   : > { %v2094_v50 = vpop.permute.xlu0 %2093 }
 0x5e7   : > { %v2023_v62 = vadd.f32 %v2022_v52, %v2019_v47  ;;  %v2031_v57 = vadd.f32 %v2030_v6, %v2018_v54  ;;  %v2122_v52 = vpack.c.bf16 %v4826_v17, %v4825_v12  ;;  %v4827_v54 = vld [vmem:[%s6934_s4 + $0x70] sm:$0xff]  ;;  %v4828_v6 = vld [vmem:[%s6934_s4 + $0x78] sm:$0xff] }
 0x5e9   : > { %v2024_v24 = vrot.slane %v2023_v62, 4  ;;  %v2032_v29 = vadd.f32 %v2031_v57, %v2020_v49  ;;  %v4829_v49 = vld [vmem:[%s6934_s4 + $0x80] sm:$0xff]  ;;  %v4830_v57 = vld [vmem:[%s6934_s4 + $0x88] sm:$0xff] }
 0x5ea   : > { %v2056_v15 = vpop.permute.xlu0 %2055 }
 0x5eb   : > { %v2025_v7 = vadd.f32 %v2024_v24, %v2023_v62  ;;  %v2033_v28 = vrot.slane %v2032_v29, 4  ;;  %v2123_v62 = vpack.c.bf16 %v4828_v6, %v4827_v54  ;;  %v2124_v24 = vpack.c.bf16 %v4830_v57, %v4829_v49  ;;  %v5520_v49 = vld [vmem:[%s6981_s3 + $0x10] sm:$0xff] }
 0x5ed   : > { %v2026_v63 = vrot.slane %v2025_v7, 2  ;;  %v2034_v48 = vadd.f32 %v2033_v28, %v2032_v29  ;;  %v4831_v29 = vld [vmem:[%s6934_s4 + $0x90] sm:$0xff] }
 0x5ee   : > { %v2084_v36 = vpop.permute.xlu0 %2083 }
 0x5ef   : > { %v2027_v20 = vadd.f32 %v2026_v63, %v2025_v7  ;;  %v2035_v33 = vrot.slane %v2034_v48, 2  ;;  %v4832_v7 = vld [vmem:[%s6934_s4 + $0x98] sm:$0xff]  ;;  %v4833_v63 = vld [vmem:[%s6934_s4 + $0xa0] sm:$0xff] }
 0x5f0   : > { %v2125_v28 = vpack.c.bf16 %v4832_v7, %v4831_v29  ;;  %v5521_v7 = vld [vmem:[%s6981_s3 + $0x18] sm:$0xff] }
 0x5f1   : > { %v2028_v3 = vrot.slane %v2027_v20, 1  ;;  %v2036_v60 = vadd.f32 %v2035_v33, %v2034_v48  ;;  %v4834_v48 = vld [vmem:[%s6934_s4 + $0xa8] sm:$0xff]  ;;  %v4835_v33 = vld [vmem:[%s6934_s4 + $0xb0] sm:$0xff] }
 0x5f3   : > { %v2029_v1 = vadd.f32 %v2028_v3, %v2027_v20  ;;  %v2037_v23 = vrot.slane %v2036_v60, 1  ;;  %v2126_v20 = vpack.c.bf16 %v4834_v48, %v4833_v63  ;;  %v4836_v3 = vld [vmem:[%s6934_s4 + $0xb8] sm:$0xff] }
 0x5f5   : > { %v2039_v27 = vmul.f32 0.03125, %v2029_v1  ;;  %v2038_v30 = vadd.f32 %v2037_v23, %v2036_v60  ;;  %v2127_v60 = vpack.c.bf16 %v4836_v3, %v4835_v33 }
 0x5f7   : > { %v2041_v42 = vadd.f32 1e-05, %v2039_v27  ;;  %v2040_v31 = vmul.f32 0.03125, %v2038_v30 }
 0x5f9   : > { %5403 = vrsqrt.f32 %v2041_v42  ;;  %v2042_v40 = vadd.f32 1e-05, %v2040_v31 }
 0x5fb   : > { %5405 = vrsqrt.f32 %v2042_v40 }
 0x606   : > { %v5404_v22 = vpop.eup %5403 }
 0x607   : > { %v2051_v16 = vmul.f32 %v5404_v22, %v2011_v10  ;;  %v2049_v59 = vmul.f32 %v5404_v22, %v2009_v14  ;;  %v2045_v2 = vmul.f32 %v5404_v22, %v2005_v61  ;;  %v2047_v8 = vmul.f32 %v5404_v22, %v2007_v19 }
 0x608   : > { %v5406_v9 = vpop.eup %5405 }
 0x609   : > { %v2079_v58 = vmul.f32 %v2071_v51, %v2051_v16  ;;  %v2077_v13 = vmul.f32 %v2066_v45, %v2049_v59  ;;  %v2052_v21 = vmul.f32 %v5406_v9, %v2012_v11  ;;  %v2050_v5 = vmul.f32 %v5406_v9, %v2010_v4 }
 0x60a   : > { %v2046_v38 = vmul.f32 %v5406_v9, %v2006_v32  ;;  %v2048_v0 = vmul.f32 %v5406_v9, %v2008_v34  ;;  %v2073_v14 = vmul.f32 %v2056_v15, %v2045_v2  ;;  %v2075_v10 = vmul.f32 %v2061_v37, %v2047_v8 }
 0x60b   : > { %v2078_v56 = vmul.f32 %v2066_v45, %v2050_v5  ;;  %v2080_v35 = vmul.f32 %v2071_v51, %v2052_v21  ;;  %v6449_v55 = vadd.f32 %v2094_v50, %v2077_v13  ;;  %v6451_v53 = vadd.f32 %v2099_v44, %v2079_v58  ;;  %v2239_v45 = vpop.permute.xlu1 %2238 }
 0x60c   : > { %v2074_v18 = vmul.f32 %v2056_v15, %v2046_v38  ;;  %v2076_v39 = vmul.f32 %v2061_v37, %v2048_v0  ;;  %v6465_v46 = vadd.f32 %v2084_v36, %v2073_v14  ;;  %v6467_v43 = vadd.f32 %v2089_v26, %v2075_v10 }
 0x60d   : > { %v6453_v41 = vadd.f32 %v2094_v50, %v2078_v56  ;;  %v6455_v61 = vadd.f32 %v2099_v44, %v2080_v35  ;;  %v2199_v4 = vpack.c.bf16 %v6451_v53, %v6449_v55  ;;  %v2219_v50 = vpop.permute.xlu0 %2218 }
 0x60e   : > { %v6457_v19 = vadd.f32 %v2084_v36, %v2074_v18  ;;  %v6459_v32 = vadd.f32 %v2089_v26, %v2076_v39  ;;  %v2197_v47 = vpack.c.bf16 %v6467_v43, %v6465_v46 }
 0x60f   : > { %v2200_v34 = vpack.c.bf16 %v6455_v61, %v6453_v41  ;;  %v2234_v15 = vpop.permute.xlu1 %2233 }
 0x610   : > { %v2198_v11 = vpack.c.bf16 %v6459_v32, %v6457_v19 }
 0x611   : > { %2291 = vmatprep.subr.bf16.mxu0 %v2200_v34  ;;  %v2214_v16 = vpop.permute.xlu0 %2213 }
 0x612   : > { %2292 = vmatpush1.bf16.msra.mxu0 %v2199_v4 }
 0x613   : > { %2293 = vmatprep.subr.bf16.mxu0 %v2198_v11  ;;  %v2229_v58 = vpop.permute.xlu1 %2228 }
 0x615   : > { %v2209_v2 = vpop.permute.xlu0 %2208 }
 0x616   : > { %2294 = vmatpush1.bf16.msra.mxu0 %v2197_v47 }
 0x617   : > { %v2224_v18 = vpop.permute.xlu1 %2223 }
 0x619   : > { %4889 = vmatmul.mubr.msk.bf16.vlgmr.msra.gmra.mxu0 %vm995_vm2, %v2122_v52  ;;  %v2204_v10 = vpop.permute.xlu0 %2203 }
 0x61a   : > { %2321 = vmatprep.mubr.bf16.mxu0 %v6983_v25 }
 0x621   : > { %4890 = vmatmul.mubr.msk.bf16.gmra.mxu0 %vm995_vm2, %v2123_v62  ;;  %v5519_v62 = vld [vmem:[%s6981_s3 + $0x8] sm:$0xff] }
 0x622   : > { %2331 = vmatprep.mubr.bf16.mxu0 %v6983_v25 }
 0x629   : > { %4891 = vmatmul.mubr.msk.bf16.gmra.mxu0 %vm995_vm2, %v2124_v24 }
 0x62a   : > { %2341 = vmatprep.mubr.bf16.mxu0 %v6983_v25 }
 0x631   : > { %4892 = vmatmul.mubr.msk.bf16.gmra.mxu0 %vm995_vm2, %v2125_v28  ;;  %v6540_v28 = vld [vmem:[%s6981_s3] sm:$0xff] }
 0x632   : > { %2351 = vmatprep.mubr.bf16.mxu0 %v6983_v25 }
 0x639   : > { %4893 = vmatmul.mubr.msk.bf16.gmra.mxu0 %vm995_vm2, %v2126_v20 }
 0x63a   : > { %2361 = vmatprep.mubr.bf16.mxu0 %v6983_v25 }
 0x641   : > { %4894 = vmatmul.mubr.msk.bf16.gmra.mxu0 %vm995_vm2, %v2127_v60 }
 0x642   : > { %3117 = vmatprep.mubr.bf16.mxu0 %v6983_v25 }
 0x6d9   : > { %v2313_v1 = vpop.f32.mrf.mxu0 }
 0x6da   : > { %v2314_v34 = vadd.f32 %v2313_v1, %v2204_v10 }
 0x6db   : > { %v6521_v23 = vpop.f32.mrf.mxu0 }
 0x6dc   : > { %v2316_v3 = vadd.f32 %v6521_v23, %v2204_v10 }
 0x6dd   : > { %v2317_v27 = vpop.f32.mrf.mxu0 }
 0x6de   : > { %v2318_v36 = vadd.f32 %v2317_v27, %v2209_v2 }
 0x6df   : > { %v6523_v30 = vpop.f32.mrf.mxu0 }
 0x6e0   : > { %v2320_v20 = vadd.f32 %v6523_v30, %v2209_v2 }
 0x6e1   : > { %v2323_v42 = vpop.f32.mrf.mxu0 }
 0x6e2   : > { %v2324_v0 = vadd.f32 %v2323_v42, %v2214_v16 }
 0x6e3   : > { %v2325_v31 = vpop.f32.mrf.mxu0 }
 0x6e4   : > { %v2326_v63 = vadd.f32 %v2325_v31, %v2214_v16 }
 0x6e5   : > { %v2327_v40 = vpop.f32.mrf.mxu0 }
 0x6e6   : > { %v2328_v21 = vadd.f32 %v2327_v40, %v2219_v50 }
 0x6e7   : > { %v2329_v51 = vpop.f32.mrf.mxu0 }
 0x6e8   : > { %v2330_v24 = vadd.f32 %v2329_v51, %v2219_v50 }
 0x6e9   : > { %v2333_v44 = vpop.f32.mrf.mxu0 }
 0x6ea   : > { %v2334_v26 = vadd.f32 %v2333_v44, %v2224_v18 }
 0x6eb   : > { %v2335_v22 = vpop.f32.mrf.mxu0 }
 0x6ec   : > { %v2372_v12 = vmul.f32 %v2334_v26, %v2314_v34  ;;  %v2336_v54 = vadd.f32 %v2335_v22, %v2224_v18  ;;  %v2606_v1 = vmul.f32 %v2334_v26, %v2316_v3 }
 0x6ed   : > { %v2337_v37 = vpop.f32.mrf.mxu0 }
 0x6ee   : > { %v2338_v56 = vadd.f32 %v2337_v37, %v2229_v58  ;;  %v2461_v29 = vmul.f32 %v2336_v54, %v2314_v34  ;;  %v2695_v42 = vmul.f32 %v2336_v54, %v2316_v3 }
 0x6ef   : > { %v2339_v59 = vpop.f32.mrf.mxu0 }
 0x6f0   : > { %v2373_v4 = vmul.f32 %v2338_v56, %v2318_v36  ;;  %v2340_v47 = vadd.f32 %v2339_v59, %v2229_v58  ;;  %v2607_v60 = vmul.f32 %v2338_v56, %v2320_v20 }
 0x6f1   : > { %v2343_v9 = vpop.f32.mrf.mxu0 }
 0x6f2   : > { %v2344_v5 = vadd.f32 %v2343_v9, %v2234_v15  ;;  %v2462_v57 = vmul.f32 %v2340_v47, %v2318_v36  ;;  %v2696_v23 = vmul.f32 %v2340_v47, %v2320_v20 }
 0x6f3   : > { %v2345_v13 = vpop.f32.mrf.mxu0 }
 0x6f4   : > { %v2374_v14 = vmul.f32 %v2344_v5, %v2324_v0  ;;  %v2346_v17 = vadd.f32 %v2345_v13, %v2234_v15  ;;  %v2608_v33 = vmul.f32 %v2344_v5, %v2326_v63 }
 0x6f5   : > { %v2347_v8 = vpop.f32.mrf.mxu0 }
 0x6f6   : > { %v2348_v38 = vadd.f32 %v2347_v8, %v2239_v45  ;;  %v2463_v6 = vmul.f32 %v2346_v17, %v2324_v0  ;;  %v2697_v30 = vmul.f32 %v2346_v17, %v2326_v63 }
 0x6f7   : > { %v2349_v39 = vpop.f32.mrf.mxu0 }
 0x6f8   : > { %v2375_v35 = vmul.f32 %v2348_v38, %v2328_v21  ;;  %v2350_v11 = vadd.f32 %v2349_v39, %v2239_v45  ;;  %v2609_v48 = vmul.f32 %v2348_v38, %v2330_v24 }
 0x6fa   : > { %5193 = vmatprep.subr.mxu1 %v2375_v35  ;;  %v2464_v52 = vmul.f32 %v2350_v11, %v2328_v21  ;;  %v2698_v27 = vmul.f32 %v2350_v11, %v2330_v24 }
 0x6fb   : > { %5194 = vmatpush3.msra.mxu1 %v2375_v35 }
 0x6fc   : > { %5195 = vmatprep.subr.mxu1 %v2374_v14 }
 0x6fd   : > { %5196 = vmatpush3.msra.mxu1 %v2374_v14 }
 0x6fe   : > { %5197 = vmatprep.subr.mxu1 %v2373_v4 }
 0x6ff   : > { %5198 = vmatpush3.msra.mxu1 %v2373_v4 }
 0x700   : > { %5199 = vmatprep.subr.mxu1 %v2372_v12 }
 0x701   : > { %5200 = vmatpush3.msra.mxu1 %v2372_v12 }
 0x702   : > { %5202 = vmatmul.mubr.msk.f32.vlgmr.msra.gmra.mxu1 %vm995_vm2, %v5519_v62  ;;  %5207 = vmatprep.subr.mxu1 %v2464_v52 }
 0x703   : > { %5208 = vmatpush3.msra.mxu1 %v2464_v52  ;;  %5204 = vmatprep.mubr.msk.f32.mxu1 %vm995_vm2, %v5520_v49 }
 0x704   : > { %5209 = vmatprep.subr.mxu1 %v2463_v6 }
 0x705   : > { %5210 = vmatpush3.msra.mxu1 %v2463_v6 }
 0x706   : > { %5205 = vmatmul.mubr.msk.f32.gmra.mxu1 %vm995_vm2, %v5521_v7  ;;  %5211 = vmatprep.subr.mxu1 %v2462_v57 }
 0x707   : > { %5212 = vmatpush3.msra.mxu1 %v2462_v57  ;;  %5215 = vmatprep.mubr.msk.f32.mxu1 %vm995_vm2, %v6540_v28 }
 0x708   : > { %5213 = vmatprep.subr.mxu1 %v2461_v29 }
 0x709   : > { %5214 = vmatpush3.msra.mxu1 %v2461_v29 }
 0x70a   : > { %5216 = vmatmul.mubr.msk.f32.vlgmr.msra.gmra.mxu1 %vm995_vm2, %v5519_v62  ;;  %5221 = vmatprep.subr.mxu1 %v2609_v48 }
 0x70b   : > { %5222 = vmatpush3.msra.mxu1 %v2609_v48  ;;  %5218 = vmatprep.mubr.msk.f32.mxu1 %vm995_vm2, %v5520_v49 }
 0x70c   : > { %5223 = vmatprep.subr.mxu1 %v2608_v33 }
 0x70d   : > { %5224 = vmatpush3.msra.mxu1 %v2608_v33 }
 0x70e   : > { %5219 = vmatmul.mubr.msk.f32.gmra.mxu1 %vm995_vm2, %v5521_v7  ;;  %5225 = vmatprep.subr.mxu1 %v2607_v60 }
 0x70f   : > { %5226 = vmatpush3.msra.mxu1 %v2607_v60  ;;  %5229 = vmatprep.mubr.msk.f32.mxu1 %vm995_vm2, %v6540_v28 }
 0x710   : > { %5227 = vmatprep.subr.mxu1 %v2606_v1 }
 0x711   : > { %5228 = vmatpush3.msra.mxu1 %v2606_v1 }
 0x712   : > { %5230 = vmatmul.mubr.msk.f32.vlgmr.msra.gmra.mxu1 %vm995_vm2, %v5519_v62  ;;  %5235 = vmatprep.subr.mxu1 %v2698_v27 }
 0x713   : > { %5236 = vmatpush3.msra.mxu1 %v2698_v27  ;;  %5232 = vmatprep.mubr.msk.f32.mxu1 %vm995_vm2, %v5520_v49 }
 0x714   : > { %5237 = vmatprep.subr.mxu1 %v2697_v30 }
 0x715   : > { %5238 = vmatpush3.msra.mxu1 %v2697_v30 }
 0x716   : > { %5233 = vmatmul.mubr.msk.f32.gmra.mxu1 %vm995_vm2, %v5521_v7  ;;  %5239 = vmatprep.subr.mxu1 %v2696_v23 }
 0x717   : > { %5240 = vmatpush3.msra.mxu1 %v2696_v23  ;;  %5243 = vmatprep.mubr.msk.f32.mxu1 %vm995_vm2, %v6540_v28 }
 0x718   : > { %5241 = vmatprep.subr.mxu1 %v2695_v42 }
 0x719   : > { %5242 = vmatpush3.msra.mxu1 %v2695_v42 }
 0x71a   : > { %5244 = vmatmul.mubr.msk.f32.vlgmr.msra.gmra.mxu1 %vm995_vm2, %v5519_v62 }
 0x71b   : > { %5246 = vmatprep.mubr.msk.f32.mxu1 %vm995_vm2, %v5520_v49 }
 0x71e   : > { %5247 = vmatmul.mubr.msk.f32.gmra.mxu1 %vm995_vm2, %v5521_v7 }
 0x71f   : > { %2902 = vmatprep.mubr.bf16.mxu1 %v6983_v25 }
 0x7c2   : > { %v5203_v31 = vpop.f32.mrf.mxu1 }
 0x7c4   : > { %v2442_v40 = vpop.f32.mrf.mxu1 }
 0x7c6   : > { %v5206_v45 = vpop.f32.mrf.mxu1 }
 0x7c8   : > { %v2452_v51 = vpop.f32.mrf.mxu1 }
 0x7ca   : > { %v5217_v50 = vpop.f32.mrf.mxu1 }
 0x7cb   : > { %v2551_v15 = vmax.f32 %v5203_v31, %v5217_v50 }
 0x7cc   : > { %v2531_v44 = vpop.f32.mrf.mxu1 }
 0x7cd   : > { %v2550_v37 = vmax.f32 %v2442_v40, %v2531_v44  ;;  %v2555_v9 = vsub.f32 %v5203_v31, %v2551_v15  ;;  %v2567_v54 = vsub.f32 %v5217_v50, %v2551_v15  ;;  %v2353_v31 = vpop.f32.mrf.mxu0 }
 0x7ce   : > { %v5220_v22 = vpop.f32.mrf.mxu1 }
 0x7cf   : > { %v2553_v58 = vmax.f32 %v5206_v45, %v5220_v22  ;;  %v2554_v13 = vsub.f32 %v2442_v40, %v2550_v37  ;;  %v2566_v21 = vsub.f32 %v2531_v44, %v2550_v37  ;;  %v2560_v38 = vmul.f32 1.442695, %v2555_v9 }
 0x7d0   : > { %v2541_v16 = vpop.f32.mrf.mxu1  ;;  %v2572_v1 = vmul.f32 1.442695, %v2567_v54 }
 0x7d1   : > { %v2552_v2 = vmax.f32 %v2452_v51, %v2541_v16  ;;  %v2557_v0 = vsub.f32 %v5206_v45, %v2553_v58  ;;  %v2558_v56 = vmul.f32 1.442695, %v2554_v13  ;;  %v2570_v36 = vmul.f32 1.442695, %v2566_v21 }
 0x7d2   : > { %v5231_v59 = vpop.f32.mrf.mxu1  ;;  %v2569_v26 = vsub.f32 %v5220_v22, %v2553_v58  ;;  %5407 = vpow2.f32 %v2560_v38  ;;  %v2355_v22 = vpop.f32.mrf.mxu0 }
 0x7d3   : > { %v2556_v35 = vsub.f32 %v2452_v51, %v2552_v2  ;;  %v2568_v39 = vsub.f32 %v2541_v16, %v2552_v2  ;;  %v2564_v10 = vmul.f32 1.442695, %v2557_v0  ;;  %5409 = vpow2.f32 %v2558_v56 }
 0x7d4   : > { %v2676_v8 = vpop.f32.mrf.mxu1  ;;  %5411 = vpow2.f32 %v2570_v36  ;;  %v2576_v6 = vmul.f32 1.442695, %v2569_v26  ;;  %v2357_v9 = vpop.f32.mrf.mxu0 }
 0x7d5   : > { %v2562_v4 = vmul.f32 1.442695, %v2556_v35  ;;  %v2574_v12 = vmul.f32 1.442695, %v2568_v39  ;;  %5413 = vpow2.f32 %v2564_v10 }
 0x7d6   : > { %v5234_v5 = vpop.f32.mrf.mxu1  ;;  %v2359_v38 = vpop.f32.mrf.mxu0 }
 0x7d7   : > { %5415 = vpow2.f32 %v2562_v4 }
 0x7d8   : > { %v2686_v18 = vpop.f32.mrf.mxu1  ;;  %5417 = vpow2.f32 %v2574_v12  ;;  %v2363_v26 = vpop.f32.mrf.mxu0 }
 0x7d9   : > { %5419 = vpow2.f32 %v2576_v6 }
 0x7da   : > { %v5245_v14 = vpop.f32.mrf.mxu1  ;;  %v2365_v12 = vpop.f32.mrf.mxu0 }
 0x7db   : > { %v2785_v34 = vmax.f32 %v5231_v59, %v5245_v14 }
 0x7dc   : > { %v2765_v11 = vpop.f32.mrf.mxu1 }
 0x7dd   : > { %v2789_v17 = vsub.f32 %v5231_v59, %v2785_v34  ;;  %v2801_v47 = vsub.f32 %v5245_v14, %v2785_v34  ;;  %v2784_v52 = vmax.f32 %v2676_v8, %v2765_v11 }
 0x7de   : > { %v5248_v62 = vpop.f32.mrf.mxu1 }
 0x7df   : > { %v2794_v49 = vmul.f32 1.442695, %v2789_v17  ;;  %v2788_v57 = vsub.f32 %v2676_v8, %v2784_v52  ;;  %v2800_v24 = vsub.f32 %v2765_v11, %v2784_v52  ;;  %v2806_v29 = vmul.f32 1.442695, %v2801_v47  ;;  %v6560_v45 = vpop.eup %5407  ;;  %v2254_v17 = vpop.permute.xlu0 %2253 }
 0x7e0   : > { %v2787_v7 = vmax.f32 %v5234_v5, %v5248_v62  ;;  %v2775_v63 = vpop.f32.mrf.mxu1  ;;  %v6562_v50 = vpop.eup %5409 }
 0x7e1   : > { %v2792_v48 = vmul.f32 1.442695, %v2788_v57  ;;  %v2786_v20 = vmax.f32 %v2686_v18, %v2775_v63  ;;  %v2804_v33 = vmul.f32 1.442695, %v2800_v24  ;;  %5421 = vpow2.f32 %v2794_v49  ;;  %v6564_v44 = vpop.eup %5411  ;;  %v2259_v47 = vpop.permute.xlu1 %2258 }
 0x7e2   : > { %v2791_v3 = vsub.f32 %v5234_v5, %v2787_v7  ;;  %v2803_v60 = vsub.f32 %v5248_v62, %v2787_v7  ;;  %5423 = vpow2.f32 %v2806_v29  ;;  %v5414_v15 = vpop.eup %5413  ;;  %v2578_v13 = vadd.f32 %v6564_v44, %v6562_v50  ;;  %v2367_v52 = vpop.f32.mrf.mxu0 }
 0x7e3   : > { %v2790_v27 = vsub.f32 %v2686_v18, %v2786_v20  ;;  %v2802_v23 = vsub.f32 %v2775_v63, %v2786_v20  ;;  %5425 = vpow2.f32 %v2792_v48  ;;  %v2244_v62 = vpop.permute.xlu0 %2243 }
 0x7e4   : > { %v2798_v30 = vmul.f32 1.442695, %v2791_v3  ;;  %5427 = vpow2.f32 %v2804_v33  ;;  %v2810_v42 = vmul.f32 1.442695, %v2803_v60  ;;  %v5416_v37 = vpop.eup %5415  ;;  %v2369_v24 = vpop.f32.mrf.mxu0  ;;  %v2354_v7 = vadd.f32 %v2353_v31, %v2244_v62 }
 0x7e5   : > { %5429 = vpow2.f32 %v2572_v1  ;;  %v2796_v40 = vmul.f32 1.442695, %v2790_v27  ;;  %v2808_v51 = vmul.f32 1.442695, %v2802_v23  ;;  %v5418_v16 = vpop.eup %5417  ;;  %v2249_v57 = vpop.permute.xlu1 %2248  ;;  %v2356_v63 = vadd.f32 %v2355_v22, %v2244_v62 }
 0x7e6   : > { %5431 = vpow2.f32 %v2798_v30  ;;  %v5420_v59 = vpop.eup %5419  ;;  %v2580_v8 = vadd.f32 %v5418_v16, %v5416_v37  ;;  %v2358_v48 = vadd.f32 %v2357_v9, %v2249_v57  ;;  %v2360_v20 = vadd.f32 %v2359_v38, %v2249_v57 }
 0x7e7   : > { %5433 = vpow2.f32 %v2810_v42  ;;  %v2581_v0 = vadd.f32 %v5420_v59, %v5414_v15  ;;  %v2364_v30 = vadd.f32 %v2363_v26, %v2254_v17  ;;  %v2366_v23 = vadd.f32 %v2365_v12, %v2254_v17 }
 0x7e8   : > { %5435 = vpow2.f32 %v2796_v40  ;;  %v2368_v42 = vadd.f32 %v2367_v52, %v2259_v47  ;;  %v2370_v40 = vadd.f32 %v2369_v24, %v2259_v47 }
 0x7e9   : > { %5437 = vpow2.f32 %v2808_v51 }
 0x7ea   : > { %5439 = vrcp.f32 %v2578_v13 }
 0x7eb   : > { %5441 = vrcp.f32 %v2580_v8 }
 0x7ee   : > { %v5422_v58 = vpop.eup %5421 }
 0x7ef   : > { %v5424_v2 = vpop.eup %5423 }
 0x7f0   : > { %v5426_v21 = vpop.eup %5425  ;;  %v2813_v35 = vadd.f32 %v5424_v2, %v5422_v58 }
 0x7f1   : > { %v5428_v5 = vpop.eup %5427 }
 0x7f2   : > { %v6568_v56 = vpop.eup %5429  ;;  %v2812_v18 = vadd.f32 %v5428_v5, %v5426_v21 }
 0x7f3   : > { %v5432_v39 = vpop.eup %5431  ;;  %v2579_v14 = vadd.f32 %v6568_v56, %v6560_v45 }
 0x7f4   : > { %5443 = vrcp.f32 %v2812_v18  ;;  %v5434_v36 = vpop.eup %5433 }
 0x7f5   : > { %5445 = vrcp.f32 %v2581_v0  ;;  %v5436_v10 = vpop.eup %5435  ;;  %v2815_v34 = vadd.f32 %v5434_v36, %v5432_v39 }
 0x7f6   : > { %5447 = vrcp.f32 %v2813_v35  ;;  %v5438_v4 = vpop.eup %5437 }
 0x7f7   : > { %5449 = vrcp.f32 %v2815_v34  ;;  %v2814_v11 = vadd.f32 %v5438_v4, %v5436_v10  ;;  %v5440_v54 = vpop.eup %5439 }
 0x7f8   : > { %5451 = vrcp.f32 %v2579_v14  ;;  %v5442_v6 = vpop.eup %5441  ;;  %v2586_v0 = vmul.f32 %v5440_v54, %v6562_v50  ;;  %v2594_v35 = vmul.f32 %v5440_v54, %v6564_v44 }
 0x7f9   : > { %5453 = vrcp.f32 %v2814_v11  ;;  %v2588_v3 = vmul.f32 %v5442_v6, %v5416_v37  ;;  %v2596_v60 = vmul.f32 %v5442_v6, %v5418_v16 }
 0x7fa   : > { %v2590_v47 = vmul.f32 %v2586_v0, %v2354_v7  ;;  %v2598_v52 = vmul.f32 %v2594_v35, %v2356_v63 }
 0x7fb   : > { %v2592_v16 = vmul.f32 %v2588_v3, %v2364_v30  ;;  %v4849_v3 = vld [vmem:[%s6936_s6 + $0x20] sm:$0xff] }
 0x801   : > { %v5444_v49 = vpop.eup %5443 }
 0x802   : > { %v5446_v29 = vpop.eup %5445  ;;  %v2820_v1 = vmul.f32 %v5444_v49, %v5426_v21  ;;  %v2828_v27 = vmul.f32 %v5444_v49, %v5428_v5  ;;  %v2600_v21 = vmul.f32 %v2596_v60, %v2366_v23  ;;  %v4852_v60 = vld [vmem:[%s6936_s6 + $0x38] sm:$0xff] }
 0x803   : > { %v5448_v33 = vpop.eup %5447  ;;  %v2589_v13 = vmul.f32 %v5446_v29, %v5414_v15  ;;  %v2597_v8 = vmul.f32 %v5446_v29, %v5420_v59 }
 0x804   : > { %v5450_v51 = vpop.eup %5449  ;;  %v2821_v38 = vmul.f32 %v5448_v33, %v5422_v58  ;;  %v2829_v18 = vmul.f32 %v5448_v33, %v5424_v2  ;;  %v2824_v5 = vmul.f32 %v2820_v1, %v2354_v7  ;;  %v2832_v26 = vmul.f32 %v2828_v27, %v2356_v63  ;;  %v4850_v7 = vld [vmem:[%s6936_s6 + $0x28] sm:$0xff] }
 0x805   : > { %v5452_v31 = vpop.eup %5451  ;;  %v2823_v22 = vmul.f32 %v5450_v51, %v5432_v39  ;;  %v2831_v9 = vmul.f32 %v5450_v51, %v5434_v36  ;;  %v2593_v15 = vmul.f32 %v2589_v13, %v2368_v42  ;;  %v2601_v59 = vmul.f32 %v2597_v8, %v2370_v40 }
 0x806   : > { %v5454_v37 = vpop.eup %5453  ;;  %v2587_v50 = vmul.f32 %v5452_v31, %v6560_v45  ;;  %v2595_v44 = vmul.f32 %v5452_v31, %v6568_v56  ;;  %v2825_v36 = vmul.f32 %v2821_v38, %v2358_v48  ;;  %v2833_v58 = vmul.f32 %v2829_v18, %v2360_v20 }
 0x807   : > { %v2822_v14 = vmul.f32 %v5454_v37, %v5436_v10  ;;  %v2827_v34 = vmul.f32 %v2823_v22, %v2368_v42  ;;  %v2830_v11 = vmul.f32 %v5454_v37, %v5438_v4  ;;  %v2835_v12 = vmul.f32 %v2831_v9, %v2370_v40  ;;  %v2852_v42 = vpop.permute.xlu1 %2851 }
 0x808   : > { %v2604_v2 = vadd.f32 %v2600_v21, %v2592_v16  ;;  %v2836_v62 = vadd.f32 %v2832_v26, %v2824_v5  ;;  %v2605_v10 = vadd.f32 %v2601_v59, %v2593_v15  ;;  %v2591_v49 = vmul.f32 %v2587_v50, %v2358_v48 }
 0x809   : > { %v2826_v17 = vmul.f32 %v2822_v14, %v2364_v30  ;;  %v2834_v39 = vmul.f32 %v2830_v11, %v2366_v23  ;;  %v2839_v6 = vadd.f32 %v2835_v12, %v2827_v34  ;;  %v2599_v4 = vmul.f32 %v2595_v44, %v2360_v20  ;;  %v4851_v20 = vld [vmem:[%s6936_s6 + $0x30] sm:$0xff]  ;;  %v2847_v30 = vpop.permute.xlu0 %2846 }
 0x80a   : > { %v2837_v24 = vadd.f32 %v2833_v58, %v2825_v36  ;;  %v2842_v29 = vpack.c.bf16 %v2605_v10, %v2604_v2  ;;  %v2602_v33 = vadd.f32 %v2598_v52, %v2590_v47  ;;  %v2146_v48 = vpack.c.bf16 %v4850_v7, %v4849_v3 }
 0x80b   : > { %v2838_v54 = vadd.f32 %v2834_v39, %v2826_v17  ;;  %v2603_v56 = vadd.f32 %v2599_v4, %v2591_v49  ;;  %v2147_v1 = vpack.c.bf16 %v4852_v60, %v4851_v20  ;;  %v2862_v26 = vpop.permute.xlu1 %2861 }
 0x80c   : > { %v2841_v45 = vpack.c.bf16 %v2837_v24, %v2836_v62 }
 0x80d   : > { %v2843_v57 = vpack.c.bf16 %v2839_v6, %v2838_v54  ;;  %v2840_v63 = vpack.c.bf16 %v2603_v56, %v2602_v33  ;;  %v2857_v35 = vpop.permute.xlu0 %2856 }
 0x80f   : > { %2882 = vmatprep.subr.bf16.mxu1 %v2843_v57 }
 0x810   : > { %2883 = vmatpush1.bf16.msra.mxu1 %v2842_v29 }
 0x811   : > { %2884 = vmatprep.subr.bf16.mxu1 %v2841_v45 }
 0x814   : > { %2885 = vmatpush1.bf16.msra.mxu1 %v2840_v63 }
 0x817   : > { %4911 = vmatmul.mubr.msk.bf16.vlgmr.msra.gmra.mxu1 %vm995_vm2, %v2146_v48 }
 0x818   : > { %2912 = vmatprep.mubr.bf16.mxu1 %v6983_v25 }
 0x81f   : > { %4912 = vmatmul.mubr.msk.bf16.gmra.mxu1 %vm995_vm2, %v2147_v1 }
 0x820   : > { %3208 = vmatprep.mubr.bf16.mxu1 %v6983_v25 }
 0x8d7   : > { %v2904_v27 = vpop.f32.mrf.mxu1 }
 0x8d8   : > { %v2905_v8 = vadd.f32 %v2904_v27, %v2847_v30 }
 0x8d9   : > { %v2906_v23 = vpop.f32.mrf.mxu1 }
 0x8da   : > { %v2907_v22 = vadd.f32 %v2906_v23, %v2847_v30  ;;  %v2923_v37 = vadd.f32 %v2905_v8, %v6465_v46 }
 0x8db   : > { %v2908_v40 = vpop.f32.mrf.mxu1 }
 0x8dc   : > { %v2909_v51 = vadd.f32 %v2908_v40, %v2852_v42  ;;  %v2924_v34 = vadd.f32 %v2907_v22, %v6457_v19 }
 0x8dd   : > { %v2910_v13 = vpop.f32.mrf.mxu1 }
 0x8de   : > { %v2911_v0 = vadd.f32 %v2910_v13, %v2852_v42  ;;  %v2925_v9 = vadd.f32 %v2909_v51, %v6467_v43 }
 0x8df   : > { %v2914_v31 = vpop.f32.mrf.mxu1 }
 0x8e0   : > { %v2915_v38 = vadd.f32 %v2914_v31, %v2857_v35  ;;  %v2926_v16 = vadd.f32 %v2911_v0, %v6459_v32  ;;  %v2931_v11 = vadd.f32 %v2925_v9, %v2923_v37 }
 0x8e1   : > { %v2916_v18 = vpop.f32.mrf.mxu1 }
 0x8e2   : > { %v2927_v21 = vadd.f32 %v2915_v38, %v6449_v55  ;;  %v2917_v5 = vadd.f32 %v2916_v18, %v2857_v35  ;;  %v2940_v50 = vadd.f32 %v2926_v16, %v2924_v34 }
 0x8e3   : > { %v2918_v14 = vpop.f32.mrf.mxu1 }
 0x8e4   : > { %v2928_v12 = vadd.f32 %v2917_v5, %v6453_v41  ;;  %v2919_v15 = vadd.f32 %v2918_v14, %v2862_v26  ;;  %v2932_v43 = vadd.f32 %v2931_v11, %v2927_v21 }
 0x8e5   : > { %v2920_v59 = vpop.f32.mrf.mxu1 }
 0x8e6   : > { %v2929_v44 = vadd.f32 %v2919_v15, %v6451_v53  ;;  %v2921_v17 = vadd.f32 %v2920_v59, %v2862_v26  ;;  %v2941_v46 = vadd.f32 %v2940_v50, %v2928_v12  ;;  %v3012_v15 = vpop.permute.xlu0 %3011  ;;  %v3017_v59 = vpop.permute.xlu1 %3016 }
 0x8e8   : > { %v2933_v39 = vadd.f32 %v2932_v43, %v2929_v44  ;;  %v2930_v32 = vadd.f32 %v2921_v17, %v6455_v61 }
 0x8ea   : > { %v2934_v55 = vrot.slane %v2933_v39, 4  ;;  %v2942_v36 = vadd.f32 %v2941_v46, %v2930_v32  ;;  %v3040_v50 = vpop.permute.xlu0 %3039  ;;  %v3045_v43 = vpop.permute.xlu1 %3044 }
 0x8ec   : > { %v2935_v58 = vadd.f32 %v2934_v55, %v2933_v39  ;;  %v2943_v2 = vrot.slane %v2942_v36, 4 }
 0x8ee   : > { %v2936_v47 = vrot.slane %v2935_v58, 2  ;;  %v2944_v19 = vadd.f32 %v2943_v2, %v2942_v36  ;;  %v3002_v17 = vpop.permute.xlu0 %3001  ;;  %v3007_v46 = vpop.permute.xlu1 %3006 }
 0x8f0   : > { %v2937_v52 = vadd.f32 %v2936_v47, %v2935_v58  ;;  %v2945_v54 = vrot.slane %v2944_v19, 2 }
 0x8f2   : > { %v2938_v41 = vrot.slane %v2937_v52, 1  ;;  %v2946_v6 = vadd.f32 %v2945_v54, %v2944_v19 }
 0x8f4   : > { %v2939_v62 = vadd.f32 %v2938_v41, %v2937_v52  ;;  %v2947_v10 = vrot.slane %v2946_v6, 1 }
 0x8f6   : > { %v2949_v49 = vmul.f32 0.03125, %v2939_v62  ;;  %v2948_v4 = vadd.f32 %v2947_v10, %v2946_v6 }
 0x8f8   : > { %v2951_v53 = vsub.f32 %v2923_v37, %v2949_v49  ;;  %v2953_v57 = vsub.f32 %v2925_v9, %v2949_v49  ;;  %v2955_v24 = vsub.f32 %v2927_v21, %v2949_v49  ;;  %v2950_v29 = vmul.f32 0.03125, %v2948_v4  ;;  %v3030_v4 = vpop.permute.xlu0 %3029 }
 0x8f9   : > { %v2957_v33 = vsub.f32 %v2929_v44, %v2949_v49 }
 0x8fa   : > { %v2959_v61 = vmul.f32 %v2951_v53, %v2951_v53  ;;  %v2961_v45 = vmul.f32 %v2953_v57, %v2953_v57  ;;  %v2952_v56 = vsub.f32 %v2924_v34, %v2950_v29  ;;  %v2954_v3 = vsub.f32 %v2926_v16, %v2950_v29 }
 0x8fb   : > { %v2956_v7 = vsub.f32 %v2928_v12, %v2950_v29  ;;  %v2963_v63 = vmul.f32 %v2955_v24, %v2955_v24  ;;  %v2958_v20 = vsub.f32 %v2930_v32, %v2950_v29  ;;  %v2965_v27 = vmul.f32 %v2957_v33, %v2957_v33  ;;  %v3035_v29 = vpop.permute.xlu1 %3034 }
 0x8fc   : > { %v2967_v48 = vadd.f32 %v2961_v45, %v2959_v61  ;;  %v2960_v60 = vmul.f32 %v2952_v56, %v2952_v56  ;;  %v2962_v1 = vmul.f32 %v2954_v3, %v2954_v3 }
 0x8fd   : > { %v2964_v23 = vmul.f32 %v2956_v7, %v2956_v7  ;;  %v2966_v51 = vmul.f32 %v2958_v20, %v2958_v20 }
 0x8fe   : > { %v2968_v30 = vadd.f32 %v2967_v48, %v2963_v63  ;;  %v2976_v42 = vadd.f32 %v2962_v1, %v2960_v60  ;;  %v4857_v1 = vld [vmem:[%s6940_s10 + $0x20] sm:$0xff] }
 0x900   : > { %v2969_v40 = vadd.f32 %v2968_v30, %v2965_v27  ;;  %v2977_v13 = vadd.f32 %v2976_v42, %v2964_v23  ;;  %v4858_v27 = vld [vmem:[%s6940_s10 + $0x28] sm:$0xff]  ;;  %v4859_v42 = vld [vmem:[%s6940_s10 + $0x30] sm:$0xff] }
 0x901   : > { %v2158_v23 = vpack.c.bf16 %v4858_v27, %v4857_v1 }
 0x902   : > { %v2970_v8 = vrot.slane %v2969_v40, 4  ;;  %v2978_v0 = vadd.f32 %v2977_v13, %v2966_v51 }
 0x904   : > { %v2971_v35 = vadd.f32 %v2970_v8, %v2969_v40  ;;  %v2979_v31 = vrot.slane %v2978_v0, 4  ;;  %v4860_v40 = vld [vmem:[%s6940_s10 + $0x38] sm:$0xff] }
 0x905   : > { %v2159_v51 = vpack.c.bf16 %v4860_v40, %v4859_v42 }
 0x906   : > { %v2972_v22 = vrot.slane %v2971_v35, 2  ;;  %v2980_v9 = vadd.f32 %v2979_v31, %v2978_v0 }
 0x908   : > { %v2973_v38 = vadd.f32 %v2972_v22, %v2971_v35  ;;  %v2981_v18 = vrot.slane %v2980_v9, 2  ;;  %v3077_v35 = vpop.permute.xlu1 %3076  ;;  %v3072_v22 = vpop.permute.xlu0 %3071 }
 0x90a   : > { %v2974_v37 = vrot.slane %v2973_v38, 1  ;;  %v2982_v16 = vadd.f32 %v2981_v18, %v2980_v9 }
 0x90c   : > { %v2975_v21 = vadd.f32 %v2974_v37, %v2973_v38  ;;  %v2983_v5 = vrot.slane %v2982_v16, 1  ;;  %v3067_v18 = vpop.permute.xlu1 %3066 }
 0x90e   : > { %v2985_v26 = vmul.f32 0.03125, %v2975_v21  ;;  %v2984_v14 = vadd.f32 %v2983_v5, %v2982_v16 }
 0x910   : > { %v2987_v34 = vadd.f32 1e-05, %v2985_v26  ;;  %v2986_v11 = vmul.f32 0.03125, %v2984_v14  ;;  %v3062_v26 = vpop.permute.xlu0 %3061 }
 0x912   : > { %5455 = vrsqrt.f32 %v2987_v34  ;;  %v2988_v12 = vadd.f32 1e-05, %v2986_v11 }
 0x914   : > { %5457 = vrsqrt.f32 %v2988_v12 }
 0x91f   : > { %v5456_v44 = vpop.eup %5455 }
 0x920   : > { %v2997_v39 = vmul.f32 %v5456_v44, %v2957_v33  ;;  %v2995_v32 = vmul.f32 %v5456_v44, %v2955_v24  ;;  %v2991_v2 = vmul.f32 %v5456_v44, %v2951_v53  ;;  %v2993_v47 = vmul.f32 %v5456_v44, %v2953_v57 }
 0x921   : > { %v5458_v55 = vpop.eup %5457 }
 0x922   : > { %v3025_v36 = vmul.f32 %v3017_v59, %v2997_v39  ;;  %v3023_v58 = vmul.f32 %v3012_v15, %v2995_v32  ;;  %v2998_v19 = vmul.f32 %v5458_v55, %v2958_v20  ;;  %v2996_v52 = vmul.f32 %v5458_v55, %v2956_v7 }
 0x923   : > { %v2992_v54 = vmul.f32 %v5458_v55, %v2952_v56  ;;  %v2994_v41 = vmul.f32 %v5458_v55, %v2954_v3  ;;  %v3019_v24 = vmul.f32 %v3002_v17, %v2991_v2  ;;  %v3021_v33 = vmul.f32 %v3007_v46, %v2993_v47  ;;  %v4865_v47 = vld [vmem:[%s6942_s12 + $0x20] sm:$0xff] }
 0x924   : > { %v3024_v6 = vmul.f32 %v3012_v15, %v2996_v52  ;;  %v3026_v62 = vmul.f32 %v3017_v59, %v2998_v19  ;;  %v6600_v61 = vadd.f32 %v3040_v50, %v3023_v58  ;;  %v6602_v45 = vadd.f32 %v3045_v43, %v3025_v36  ;;  %v4866_v19 = vld [vmem:[%s6942_s12 + $0x28] sm:$0xff] }
 0x925   : > { %v3020_v10 = vmul.f32 %v3002_v17, %v2992_v54  ;;  %v3022_v49 = vmul.f32 %v3007_v46, %v2994_v41  ;;  %v6616_v48 = vadd.f32 %v3030_v4, %v3019_v24  ;;  %v6618_v20 = vadd.f32 %v3035_v29, %v3021_v33  ;;  %v4867_v41 = vld [vmem:[%s6942_s12 + $0x30] sm:$0xff] }
 0x926   : > { %v6604_v63 = vadd.f32 %v3040_v50, %v3024_v6  ;;  %v6606_v53 = vadd.f32 %v3045_v43, %v3026_v62  ;;  %v3057_v7 = vpack.c.bf16 %v6602_v45, %v6600_v61  ;;  %v2170_v54 = vpack.c.bf16 %v4866_v19, %v4865_v47  ;;  %v4868_v6 = vld [vmem:[%s6942_s12 + $0x38] sm:$0xff] }
 0x927   : > { %v6608_v57 = vadd.f32 %v3030_v4, %v3020_v10  ;;  %v6610_v56 = vadd.f32 %v3035_v29, %v3022_v49  ;;  %v3055_v30 = vpack.c.bf16 %v6618_v20, %v6616_v48  ;;  %v2171_v62 = vpack.c.bf16 %v4868_v6, %v4867_v41  ;;  %v3153_v49 = vpop.permute.xlu0 %3152  ;;  %v3158_v29 = vpop.permute.xlu1 %3157 }
 0x928   : > { %v3058_v3 = vpack.c.bf16 %v6606_v53, %v6604_v63 }
 0x929   : > { %v3056_v60 = vpack.c.bf16 %v6610_v56, %v6608_v57 }
 0x92a   : > { %3097 = vmatprep.subr.bf16.mxu0 %v3058_v3 }
 0x92b   : > { %3098 = vmatpush1.bf16.msra.mxu0 %v3057_v7  ;;  %v3163_v1 = vpop.permute.xlu0 %3162 }
 0x92c   : > { %3099 = vmatprep.subr.bf16.mxu0 %v3056_v60 }
 0x92f   : > { %3100 = vmatpush1.bf16.msra.mxu0 %v3055_v30 }
 0x932   : > { %4913 = vmatmul.mubr.msk.bf16.vlgmr.msra.gmra.mxu0 %vm995_vm2, %v2158_v23 }
 0x933   : > { %3127 = vmatprep.mubr.bf16.mxu0 %v6983_v25 }
 0x93a   : > { %4914 = vmatmul.mubr.msk.bf16.gmra.mxu0 %vm995_vm2, %v2159_v51 }
 0x93b   : > { %3563 = vmatprep.mubr.bf16.mxu0 %v6983_v25 }
 0x9f2   : > { %v3119_v13 = vpop.f32.mrf.mxu0 }
 0x9f3   : > { %v3120_v17 = vadd.f32 %v3119_v13, %v3062_v26 }
 0x9f4   : > { %v3121_v8 = vpop.f32.mrf.mxu0 }
 0x9f5   : > { %v3122_v11 = vadd.f32 %v3121_v8, %v3062_v26  ;;  %v3138_v2 = vmax.f32 %v3120_v17, 0.0 }
 0x9f6   : > { %v3123_v0 = vpop.f32.mrf.mxu0 }
 0x9f7   : > { %v3124_v15 = vadd.f32 %v3123_v0, %v3067_v18  ;;  %v3139_v39 = vmax.f32 %v3122_v11, 0.0  ;;  %v3168_v0 = vpop.permute.xlu1 %3167 }
 0x9f8   : > { %v3125_v31 = vpop.f32.mrf.mxu0 }
 0x9f9   : > { %v3126_v16 = vadd.f32 %v3125_v31, %v3067_v18  ;;  %v3140_v55 = vmax.f32 %v3124_v15, 0.0 }
 0x9fa   : > { %v3129_v9 = vpop.f32.mrf.mxu0 }
 0x9fb   : > { %v3130_v14 = vadd.f32 %v3129_v9, %v3072_v22  ;;  %v3141_v50 = vmax.f32 %v3126_v16, 0.0  ;;  %v3146_v52 = vpack.c.bf16 %v3140_v55, %v3138_v2 }
 0x9fc   : > { %v3131_v38 = vpop.f32.mrf.mxu0 }
 0x9fd   : > { %v3132_v21 = vadd.f32 %v3131_v38, %v3072_v22  ;;  %v3142_v46 = vmax.f32 %v3130_v14, 0.0  ;;  %v3147_v58 = vpack.c.bf16 %v3141_v50, %v3139_v39 }
 0x9fe   : > { %v3133_v37 = vpop.f32.mrf.mxu0 }
 0x9ff   : > { %v3134_v5 = vadd.f32 %v3133_v37, %v3077_v35  ;;  %v3143_v43 = vmax.f32 %v3132_v21, 0.0 }
 0xa00   : > { %v3135_v34 = vpop.f32.mrf.mxu0 }
 0xa01   : > { %v3136_v12 = vadd.f32 %v3135_v34, %v3077_v35  ;;  %v3144_v59 = vmax.f32 %v3134_v5, 0.0 }
 0xa03   : > { %v3145_v44 = vmax.f32 %v3136_v12, 0.0  ;;  %v3148_v36 = vpack.c.bf16 %v3144_v59, %v3142_v46 }
 0xa05   : > { %v3149_v32 = vpack.c.bf16 %v3145_v44, %v3143_v43 }
 0xa07   : > { %3188 = vmatprep.subr.bf16.mxu1 %v3149_v32 }
 0xa08   : > { %3189 = vmatpush1.bf16.msra.mxu1 %v3148_v36 }
 0xa09   : > { %3190 = vmatprep.subr.bf16.mxu1 %v3147_v58 }
 0xa0c   : > { %3191 = vmatpush1.bf16.msra.mxu1 %v3146_v52 }
 0xa0f   : > { %4915 = vmatmul.mubr.msk.bf16.vlgmr.msra.gmra.mxu1 %vm995_vm2, %v2170_v54 }
 0xa10   : > { %3218 = vmatprep.mubr.bf16.mxu1 %v6983_v25 }
 0xa17   : > { %4916 = vmatmul.mubr.msk.bf16.gmra.mxu1 %vm995_vm2, %v2171_v62 }
 0xa18   : > { %5257 = vmatprep.mubr.msk.f32.mxu1 %vm995_vm2, %v6540_v28 }
 0xacf   : > { %v3210_v10 = vpop.f32.mrf.mxu1 }
 0xad0   : > { %v3211_v7 = vadd.f32 %v3210_v10, %v3153_v49 }
 0xad1   : > { %v3212_v4 = vpop.f32.mrf.mxu1 }
 0xad2   : > { %v3213_v30 = vadd.f32 %v3212_v4, %v3153_v49  ;;  %v3229_v51 = vadd.f32 %v3211_v7, %v6616_v48 }
 0xad3   : > { %v3214_v24 = vpop.f32.mrf.mxu1 }
 0xad4   : > { %v3215_v33 = vadd.f32 %v3214_v24, %v3158_v29  ;;  %v3230_v31 = vadd.f32 %v3213_v30, %v6608_v57 }
 0xad5   : > { %v3216_v3 = vpop.f32.mrf.mxu1 }
 0xad6   : > { %v3217_v60 = vadd.f32 %v3216_v3, %v3158_v29  ;;  %v3231_v23 = vadd.f32 %v3215_v33, %v6618_v20 }
 0xad7   : > { %v3220_v27 = vpop.f32.mrf.mxu1 }
 0xad8   : > { %v3221_v42 = vadd.f32 %v3220_v27, %v3163_v1  ;;  %v3232_v28 = vadd.f32 %v3217_v60, %v6610_v56  ;;  %v3237_v22 = vadd.f32 %v3231_v23, %v3229_v51 }
 0xad9   : > { %v3222_v40 = vpop.f32.mrf.mxu1 }
 0xada   : > { %v3233_v13 = vadd.f32 %v3221_v42, %v6600_v61  ;;  %v3223_v8 = vadd.f32 %v3222_v40, %v3163_v1  ;;  %v3246_v37 = vadd.f32 %v3232_v28, %v3230_v31 }
 0xadb   : > { %v3224_v35 = vpop.f32.mrf.mxu1 }
 0xadc   : > { %v3234_v9 = vadd.f32 %v3223_v8, %v6604_v63  ;;  %v3225_v38 = vadd.f32 %v3224_v35, %v3168_v0  ;;  %v3238_v20 = vadd.f32 %v3237_v22, %v3233_v13 }
 0xadd   : > { %v3226_v18 = vpop.f32.mrf.mxu1 }
 0xade   : > { %v3235_v16 = vadd.f32 %v3225_v38, %v6602_v45  ;;  %v3227_v21 = vadd.f32 %v3226_v18, %v3168_v0  ;;  %v3247_v48 = vadd.f32 %v3246_v37, %v3234_v9  ;;  %v3323_v38 = vpop.permute.xlu1 %3322 }
 0xae0   : > { %v3239_v5 = vadd.f32 %v3238_v20, %v3235_v16  ;;  %v3236_v56 = vadd.f32 %v3227_v21, %v6606_v53 }
 0xae2   : > { %v3240_v61 = vrot.slane %v3239_v5, 4  ;;  %v3248_v26 = vadd.f32 %v3247_v48, %v3236_v56  ;;  %v3351_v37 = vpop.permute.xlu1 %3350 }
 0xae4   : > { %v3241_v14 = vadd.f32 %v3240_v61, %v3239_v5  ;;  %v3249_v34 = vrot.slane %v3248_v26, 4 }
 0xae6   : > { %v3242_v11 = vrot.slane %v3241_v14, 2  ;;  %v3250_v57 = vadd.f32 %v3249_v34, %v3248_v26  ;;  %v3313_v21 = vpop.permute.xlu1 %3312 }
 0xae8   : > { %v3243_v12 = vadd.f32 %v3242_v11, %v3241_v14  ;;  %v3251_v15 = vrot.slane %v3250_v57, 2 }
 0xaea   : > { %v3244_v63 = vrot.slane %v3243_v12, 1  ;;  %v3252_v59 = vadd.f32 %v3251_v15, %v3250_v57 }
 0xaec   : > { %v3245_v50 = vadd.f32 %v3244_v63, %v3243_v12  ;;  %v3253_v43 = vrot.slane %v3252_v59, 1 }
 0xaee   : > { %v3255_v44 = vmul.f32 0.03125, %v3245_v50  ;;  %v3254_v17 = vadd.f32 %v3253_v43, %v3252_v59 }
 0xaf0   : > { %v3257_v45 = vsub.f32 %v3229_v51, %v3255_v44  ;;  %v3259_v46 = vsub.f32 %v3231_v23, %v3255_v44  ;;  %v3261_v39 = vsub.f32 %v3233_v13, %v3255_v44  ;;  %v3256_v32 = vmul.f32 0.03125, %v3254_v17  ;;  %v3341_v17 = vpop.permute.xlu1 %3340 }
 0xaf1   : > { %v3263_v55 = vsub.f32 %v3235_v16, %v3255_v44 }
 0xaf2   : > { %v3265_v53 = vmul.f32 %v3257_v45, %v3257_v45  ;;  %v3267_v36 = vmul.f32 %v3259_v46, %v3259_v46  ;;  %v3258_v58 = vsub.f32 %v3230_v31, %v3256_v32  ;;  %v3260_v2 = vsub.f32 %v3232_v28, %v3256_v32 }
 0xaf3   : > { %v3262_v47 = vsub.f32 %v3234_v9, %v3256_v32  ;;  %v3269_v19 = vmul.f32 %v3261_v39, %v3261_v39  ;;  %v3264_v54 = vsub.f32 %v3236_v56, %v3256_v32  ;;  %v3271_v62 = vmul.f32 %v3263_v55, %v3263_v55  ;;  %v3318_v9 = vpop.permute.xlu0 %3317 }
 0xaf4   : > { %v3273_v52 = vadd.f32 %v3267_v36, %v3265_v53  ;;  %v3266_v41 = vmul.f32 %v3258_v58, %v3258_v58  ;;  %v3268_v6 = vmul.f32 %v3260_v2, %v3260_v2 }
 0xaf5   : > { %v3270_v49 = vmul.f32 %v3262_v47, %v3262_v47  ;;  %v3272_v24 = vmul.f32 %v3264_v54, %v3264_v54 }
 0xaf6   : > { %v3274_v10 = vadd.f32 %v3273_v52, %v3269_v19  ;;  %v3282_v4 = vadd.f32 %v3268_v6, %v3266_v41  ;;  %v4917_v41 = vld [vmem:[%s6934_s4 + $0xc0] sm:$0xff]  ;;  %v4918_v6 = vld [vmem:[%s6934_s4 + $0xc8] sm:$0xff] }
 0xaf7   : > { %v3346_v18 = vpop.permute.xlu0 %3345 }
 0xaf8   : > { %v3275_v29 = vadd.f32 %v3274_v10, %v3271_v62  ;;  %v3283_v33 = vadd.f32 %v3282_v4, %v3270_v49  ;;  %v3374_v10 = vpack.c.bf16 %v4918_v6, %v4917_v41  ;;  %v4919_v49 = vld [vmem:[%s6934_s4 + $0xd0] sm:$0xff]  ;;  %v4920_v4 = vld [vmem:[%s6934_s4 + $0xd8] sm:$0xff] }
 0xafa   : > { %v3276_v3 = vrot.slane %v3275_v29, 4  ;;  %v3284_v7 = vadd.f32 %v3283_v33, %v3272_v24  ;;  %v4921_v24 = vld [vmem:[%s6934_s4 + $0xe0] sm:$0xff]  ;;  %v4922_v33 = vld [vmem:[%s6934_s4 + $0xe8] sm:$0xff] }
 0xafb   : > { %v3308_v16 = vpop.permute.xlu0 %3307 }
 0xafc   : > { %v3277_v60 = vadd.f32 %v3276_v3, %v3275_v29  ;;  %v3285_v1 = vrot.slane %v3284_v7, 4  ;;  %v3375_v29 = vpack.c.bf16 %v4920_v4, %v4919_v49  ;;  %v3376_v3 = vpack.c.bf16 %v4922_v33, %v4921_v24  ;;  %v5524_v24 = vld [vmem:[%s6981_s3 + $0x10] sm:$0xff] }
 0xafe   : > { %v3278_v27 = vrot.slane %v3277_v60, 2  ;;  %v3286_v30 = vadd.f32 %v3285_v1, %v3284_v7  ;;  %v4923_v7 = vld [vmem:[%s6934_s4 + $0xf0] sm:$0xff] }
 0xaff   : > { %v3336_v44 = vpop.permute.xlu0 %3335 }
 0xb00   : > { %v3279_v23 = vadd.f32 %v3278_v27, %v3277_v60  ;;  %v3287_v42 = vrot.slane %v3286_v30, 2  ;;  %v4924_v60 = vld [vmem:[%s6934_s4 + $0xf8] sm:$0xff]  ;;  %v4925_v27 = vld [vmem:[%s6934_s4 + $0x100] sm:$0xff] }
 0xb01   : > { %v3377_v1 = vpack.c.bf16 %v4924_v60, %v4923_v7  ;;  %v5525_v60 = vld [vmem:[%s6981_s3 + $0x18] sm:$0xff] }
 0xb02   : > { %v3280_v40 = vrot.slane %v3279_v23, 1  ;;  %v3288_v51 = vadd.f32 %v3287_v42, %v3286_v30  ;;  %v4926_v30 = vld [vmem:[%s6934_s4 + $0x108] sm:$0xff]  ;;  %v4927_v42 = vld [vmem:[%s6934_s4 + $0x110] sm:$0xff] }
 0xb04   : > { %v3281_v28 = vadd.f32 %v3280_v40, %v3279_v23  ;;  %v3289_v13 = vrot.slane %v3288_v51, 1  ;;  %v3378_v23 = vpack.c.bf16 %v4926_v30, %v4925_v27  ;;  %v4928_v40 = vld [vmem:[%s6934_s4 + $0x118] sm:$0xff] }
 0xb06   : > { %v3291_v8 = vmul.f32 0.03125, %v3281_v28  ;;  %v3290_v0 = vadd.f32 %v3289_v13, %v3288_v51  ;;  %v3379_v51 = vpack.c.bf16 %v4928_v40, %v4927_v42 }
 0xb08   : > { %v3293_v35 = vadd.f32 1e-05, %v3291_v8  ;;  %v3292_v31 = vmul.f32 0.03125, %v3290_v0 }
 0xb0a   : > { %5459 = vrsqrt.f32 %v3293_v35  ;;  %v3294_v22 = vadd.f32 1e-05, %v3292_v31 }
 0xb0c   : > { %5461 = vrsqrt.f32 %v3294_v22 }
 0xb17   : > { %v5460_v20 = vpop.eup %5459 }
 0xb18   : > { %v3303_v48 = vmul.f32 %v5460_v20, %v3263_v55  ;;  %v3301_v5 = vmul.f32 %v5460_v20, %v3261_v39  ;;  %v3297_v14 = vmul.f32 %v5460_v20, %v3257_v45  ;;  %v3299_v34 = vmul.f32 %v5460_v20, %v3259_v46 }
 0xb19   : > { %v5462_v56 = vpop.eup %5461 }
 0xb1a   : > { %v3331_v61 = vmul.f32 %v3323_v38, %v3303_v48  ;;  %v3329_v26 = vmul.f32 %v3318_v9, %v3301_v5  ;;  %v3304_v11 = vmul.f32 %v5462_v56, %v3264_v54  ;;  %v3302_v57 = vmul.f32 %v5462_v56, %v3262_v47 }
 0xb1b   : > { %v3298_v12 = vmul.f32 %v5462_v56, %v3258_v58  ;;  %v3300_v15 = vmul.f32 %v5462_v56, %v3260_v2  ;;  %v3325_v39 = vmul.f32 %v3308_v16, %v3297_v14  ;;  %v3327_v55 = vmul.f32 %v3313_v21, %v3299_v34 }
 0xb1c   : > { %v3330_v63 = vmul.f32 %v3318_v9, %v3302_v57  ;;  %v3332_v59 = vmul.f32 %v3323_v38, %v3304_v11  ;;  %v6665_v32 = vadd.f32 %v3346_v18, %v3329_v26  ;;  %v6667_v53 = vadd.f32 %v3351_v37, %v3331_v61  ;;  %v3491_v9 = vpop.permute.xlu1 %3490 }
 0xb1d   : > { %v3326_v50 = vmul.f32 %v3308_v16, %v3298_v12  ;;  %v3328_v43 = vmul.f32 %v3313_v21, %v3300_v15  ;;  %v6681_v19 = vadd.f32 %v3336_v44, %v3325_v39  ;;  %v6683_v52 = vadd.f32 %v3341_v17, %v3327_v55 }
 0xb1e   : > { %v6669_v36 = vadd.f32 %v3346_v18, %v3330_v63  ;;  %v6671_v45 = vadd.f32 %v3351_v37, %v3332_v59  ;;  %v3451_v47 = vpack.c.bf16 %v6667_v53, %v6665_v32  ;;  %v3471_v18 = vpop.permute.xlu0 %3470 }
 0xb1f   : > { %v6673_v46 = vadd.f32 %v3336_v44, %v3326_v50  ;;  %v6675_v58 = vadd.f32 %v3341_v17, %v3328_v43  ;;  %v3449_v62 = vpack.c.bf16 %v6683_v52, %v6681_v19 }
 0xb20   : > { %v3452_v2 = vpack.c.bf16 %v6671_v45, %v6669_v36  ;;  %v3486_v16 = vpop.permute.xlu1 %3485 }
 0xb21   : > { %v3450_v54 = vpack.c.bf16 %v6675_v58, %v6673_v46 }
 0xb22   : > { %3543 = vmatprep.subr.bf16.mxu0 %v3452_v2  ;;  %v3466_v48 = vpop.permute.xlu0 %3465 }
 0xb23   : > { %3544 = vmatpush1.bf16.msra.mxu0 %v3451_v47 }
 0xb24   : > { %3545 = vmatprep.subr.bf16.mxu0 %v3450_v54  ;;  %v3481_v61 = vpop.permute.xlu1 %3480 }
 0xb26   : > { %v3461_v14 = vpop.permute.xlu0 %3460 }
 0xb27   : > { %3546 = vmatpush1.bf16.msra.mxu0 %v3449_v62 }
 0xb28   : > { %v3476_v50 = vpop.permute.xlu1 %3475 }
 0xb2a   : > { %4981 = vmatmul.mubr.msk.bf16.vlgmr.msra.gmra.mxu0 %vm995_vm2, %v3374_v10  ;;  %v3456_v55 = vpop.permute.xlu0 %3455 }
 0xb2b   : > { %3573 = vmatprep.mubr.bf16.mxu0 %v6983_v25 }
 0xb32   : > { %4982 = vmatmul.mubr.msk.bf16.gmra.mxu0 %vm995_vm2, %v3375_v29  ;;  %v5523_v29 = vld [vmem:[%s6981_s3 + $0x8] sm:$0xff] }
 0xb33   : > { %3583 = vmatprep.mubr.bf16.mxu0 %v6983_v25 }
 0xb3a   : > { %4983 = vmatmul.mubr.msk.bf16.gmra.mxu0 %vm995_vm2, %v3376_v3 }
 0xb3b   : > { %3593 = vmatprep.mubr.bf16.mxu0 %v6983_v25 }
 0xb42   : > { %4984 = vmatmul.mubr.msk.bf16.gmra.mxu0 %vm995_vm2, %v3377_v1  ;;  %v5526_v1 = vld [vmem:[%s6981_s3] sm:$0xff]  ;;  %s5533_s3 = scalar_lea.vmem %s5532_s24, 256 }
 0xb43   : > { %3603 = vmatprep.mubr.bf16.mxu0 %v6983_v25  ;;  %p5535_p3 = scmp.lt.s32.totalorder %s5533_s3, %s5527_s22 }
 0xb45   : > { %p5536_p4 = por %p5535_p3, %p5534_p2 }
 0xb47   : > { %p5537_p5 = pnand %p5536_p4, %p5530_p1 }
 0xb4a   : > { %4985 = vmatmul.mubr.msk.bf16.gmra.mxu0 %vm995_vm2, %v3378_v23 }
 0xb4b   : > { %3613 = vmatprep.mubr.bf16.mxu0 %v6983_v25 }
 0xb52   : > { %4986 = vmatmul.mubr.msk.bf16.gmra.mxu0 %vm995_vm2, %v3379_v51 }
 0xb53   : > { %4369 = vmatprep.mubr.bf16.mxu0 %v6983_v25 }
 0xbea   : > { %v3565_v28 = vpop.f32.mrf.mxu0 }
 0xbeb   : > { %v3566_v2 = vadd.f32 %v3565_v28, %v3456_v55 }
 0xbec   : > { %v6737_v13 = vpop.f32.mrf.mxu0 }
 0xbed   : > { %v3568_v40 = vadd.f32 %v6737_v13, %v3456_v55 }
 0xbee   : > { %v3569_v8 = vpop.f32.mrf.mxu0 }
 0xbef   : > { %v3570_v44 = vadd.f32 %v3569_v8, %v3461_v14 }
 0xbf0   : > { %v6739_v0 = vpop.f32.mrf.mxu0 }
 0xbf1   : > { %v3572_v23 = vadd.f32 %v6739_v0, %v3461_v14 }
 0xbf2   : > { %v3575_v35 = vpop.f32.mrf.mxu0 }
 0xbf3   : > { %v3576_v15 = vadd.f32 %v3575_v35, %v3466_v48 }
 0xbf4   : > { %v3577_v31 = vpop.f32.mrf.mxu0 }
 0xbf5   : > { %v3578_v27 = vadd.f32 %v3577_v31, %v3466_v48 }
 0xbf6   : > { %v3579_v22 = vpop.f32.mrf.mxu0 }
 0xbf7   : > { %v3580_v11 = vadd.f32 %v3579_v22, %v3471_v18 }
 0xbf8   : > { %v3581_v38 = vpop.f32.mrf.mxu0 }
 0xbf9   : > { %v3582_v3 = vadd.f32 %v3581_v38, %v3471_v18 }
 0xbfa   : > { %v3585_v37 = vpop.f32.mrf.mxu0 }
 0xbfb   : > { %v3586_v17 = vadd.f32 %v3585_v37, %v3476_v50 }
 0xbfc   : > { %v3587_v20 = vpop.f32.mrf.mxu0 }
 0xbfd   : > { %v3624_v41 = vmul.f32 %v3586_v17, %v3566_v2  ;;  %v3588_v49 = vadd.f32 %v3587_v20, %v3476_v50  ;;  %v3858_v28 = vmul.f32 %v3586_v17, %v3568_v40 }
 0xbfe   : > { %v3589_v21 = vpop.f32.mrf.mxu0 }
 0xbff   : > { %v3590_v63 = vadd.f32 %v3589_v21, %v3481_v61  ;;  %v3713_v7 = vmul.f32 %v3588_v49, %v3566_v2  ;;  %v3947_v35 = vmul.f32 %v3588_v49, %v3568_v40 }
 0xc00   : > { %v3591_v5 = vpop.f32.mrf.mxu0 }
 0xc01   : > { %v3625_v47 = vmul.f32 %v3590_v63, %v3570_v44  ;;  %v3592_v62 = vadd.f32 %v3591_v5, %v3481_v61  ;;  %v3859_v51 = vmul.f32 %v3590_v63, %v3572_v23 }
 0xc02   : > { %v3595_v56 = vpop.f32.mrf.mxu0 }
 0xc03   : > { %v3596_v57 = vadd.f32 %v3595_v56, %v3486_v16  ;;  %v3714_v33 = vmul.f32 %v3592_v62, %v3570_v44  ;;  %v3948_v13 = vmul.f32 %v3592_v62, %v3572_v23 }
 0xc04   : > { %v3597_v26 = vpop.f32.mrf.mxu0 }
 0xc05   : > { %v3626_v39 = vmul.f32 %v3596_v57, %v3576_v15  ;;  %v3598_v6 = vadd.f32 %v3597_v26, %v3486_v16  ;;  %v3860_v42 = vmul.f32 %v3596_v57, %v3578_v27 }
 0xc06   : > { %v3599_v34 = vpop.f32.mrf.mxu0 }
 0xc07   : > { %v3600_v12 = vadd.f32 %v3599_v34, %v3491_v9  ;;  %v3715_v4 = vmul.f32 %v3598_v6, %v3576_v15  ;;  %v3949_v0 = vmul.f32 %v3598_v6, %v3578_v27 }
 0xc08   : > { %v3601_v43 = vpop.f32.mrf.mxu0 }
 0xc09   : > { %v3627_v59 = vmul.f32 %v3600_v12, %v3580_v11  ;;  %v3602_v54 = vadd.f32 %v3601_v43, %v3491_v9  ;;  %v3861_v30 = vmul.f32 %v3600_v12, %v3582_v3 }
 0xc0b   : > { %5249 = vmatprep.subr.mxu1 %v3627_v59  ;;  %v3716_v10 = vmul.f32 %v3602_v54, %v3580_v11  ;;  %v3950_v8 = vmul.f32 %v3602_v54, %v3582_v3 }
 0xc0c   : > { %5250 = vmatpush3.msra.mxu1 %v3627_v59 }
 0xc0d   : > { %5251 = vmatprep.subr.mxu1 %v3626_v39 }
 0xc0e   : > { %5252 = vmatpush3.msra.mxu1 %v3626_v39 }
 0xc0f   : > { %5253 = vmatprep.subr.mxu1 %v3625_v47 }
 0xc10   : > { %5254 = vmatpush3.msra.mxu1 %v3625_v47 }
 0xc11   : > { %5255 = vmatprep.subr.mxu1 %v3624_v41 }
 0xc12   : > { %5256 = vmatpush3.msra.mxu1 %v3624_v41 }
 0xc13   : > { %5258 = vmatmul.mubr.msk.f32.vlgmr.msra.gmra.mxu1 %vm995_vm2, %v5523_v29  ;;  %5263 = vmatprep.subr.mxu1 %v3716_v10 }
 0xc14   : > { %5264 = vmatpush3.msra.mxu1 %v3716_v10  ;;  %5260 = vmatprep.mubr.msk.f32.mxu1 %vm995_vm2, %v5524_v24 }
 0xc15   : > { %5265 = vmatprep.subr.mxu1 %v3715_v4 }
 0xc16   : > { %5266 = vmatpush3.msra.mxu1 %v3715_v4 }
 0xc17   : > { %5261 = vmatmul.mubr.msk.f32.gmra.mxu1 %vm995_vm2, %v5525_v60  ;;  %5267 = vmatprep.subr.mxu1 %v3714_v33 }
 0xc18   : > { %5268 = vmatpush3.msra.mxu1 %v3714_v33  ;;  %5271 = vmatprep.mubr.msk.f32.mxu1 %vm995_vm2, %v5526_v1 }
 0xc19   : > { %5269 = vmatprep.subr.mxu1 %v3713_v7 }
 0xc1a   : > { %5270 = vmatpush3.msra.mxu1 %v3713_v7 }
 0xc1b   : > { %5272 = vmatmul.mubr.msk.f32.vlgmr.msra.gmra.mxu1 %vm995_vm2, %v5523_v29  ;;  %5277 = vmatprep.subr.mxu1 %v3861_v30 }
 0xc1c   : > { %5278 = vmatpush3.msra.mxu1 %v3861_v30  ;;  %5274 = vmatprep.mubr.msk.f32.mxu1 %vm995_vm2, %v5524_v24 }
 0xc1d   : > { %5279 = vmatprep.subr.mxu1 %v3860_v42 }
 0xc1e   : > { %5280 = vmatpush3.msra.mxu1 %v3860_v42 }
 0xc1f   : > { %5275 = vmatmul.mubr.msk.f32.gmra.mxu1 %vm995_vm2, %v5525_v60  ;;  %5281 = vmatprep.subr.mxu1 %v3859_v51 }
 0xc20   : > { %5282 = vmatpush3.msra.mxu1 %v3859_v51  ;;  %5285 = vmatprep.mubr.msk.f32.mxu1 %vm995_vm2, %v5526_v1 }
 0xc21   : > { %5283 = vmatprep.subr.mxu1 %v3858_v28 }
 0xc22   : > { %5284 = vmatpush3.msra.mxu1 %v3858_v28 }
 0xc23   : > { %5286 = vmatmul.mubr.msk.f32.vlgmr.msra.gmra.mxu1 %vm995_vm2, %v5523_v29  ;;  %5291 = vmatprep.subr.mxu1 %v3950_v8 }
 0xc24   : > { %5292 = vmatpush3.msra.mxu1 %v3950_v8  ;;  %5288 = vmatprep.mubr.msk.f32.mxu1 %vm995_vm2, %v5524_v24 }
 0xc25   : > { %5293 = vmatprep.subr.mxu1 %v3949_v0 }
 0xc26   : > { %5294 = vmatpush3.msra.mxu1 %v3949_v0 }
 0xc27   : > { %5289 = vmatmul.mubr.msk.f32.gmra.mxu1 %vm995_vm2, %v5525_v60  ;;  %5295 = vmatprep.subr.mxu1 %v3948_v13 }
 0xc28   : > { %5296 = vmatpush3.msra.mxu1 %v3948_v13  ;;  %5299 = vmatprep.mubr.msk.f32.mxu1 %vm995_vm2, %v5526_v1 }
 0xc29   : > { %5297 = vmatprep.subr.mxu1 %v3947_v35 }
 0xc2a   : > { %5298 = vmatpush3.msra.mxu1 %v3947_v35  ;;  %v3605_v35 = vpop.f32.mrf.mxu0 }
 0xc2b   : > { %5300 = vmatmul.mubr.msk.f32.vlgmr.msra.gmra.mxu1 %vm995_vm2, %v5523_v29 }
 0xc2c   : > { %5302 = vmatprep.mubr.msk.f32.mxu1 %vm995_vm2, %v5524_v24 }
 0xc2f   : > { %5303 = vmatmul.mubr.msk.f32.gmra.mxu1 %vm995_vm2, %v5525_v60 }
 0xc30   : > { %4154 = vmatprep.mubr.bf16.mxu1 %v6983_v25 }
 0xcd3   : > { %v5259_v31 = vpop.f32.mrf.mxu1 }
 0xcd5   : > { %v3694_v22 = vpop.f32.mrf.mxu1 }
 0xcd7   : > { %v5262_v9 = vpop.f32.mrf.mxu1 }
 0xcd9   : > { %v3704_v38 = vpop.f32.mrf.mxu1 }
 0xcdb   : > { %v5273_v18 = vpop.f32.mrf.mxu1 }
 0xcdc   : > { %v3803_v16 = vmax.f32 %v5259_v31, %v5273_v18 }
 0xcdd   : > { %v3783_v37 = vpop.f32.mrf.mxu1 }
 0xcde   : > { %v3802_v21 = vmax.f32 %v3694_v22, %v3783_v37  ;;  %v3807_v56 = vsub.f32 %v5259_v31, %v3803_v16  ;;  %v3819_v49 = vsub.f32 %v5273_v18, %v3803_v16 }
 0xcdf   : > { %v5276_v20 = vpop.f32.mrf.mxu1 }
 0xce0   : > { %v3805_v61 = vmax.f32 %v5262_v9, %v5276_v20  ;;  %v3806_v26 = vsub.f32 %v3694_v22, %v3802_v21  ;;  %v3818_v11 = vsub.f32 %v3783_v37, %v3802_v21  ;;  %v3812_v12 = vmul.f32 1.442695, %v3807_v56  ;;  %v3607_v37 = vpop.f32.mrf.mxu0 }
 0xce1   : > { %v3793_v48 = vpop.f32.mrf.mxu1  ;;  %v3824_v51 = vmul.f32 1.442695, %v3819_v49 }
 0xce2   : > { %v3804_v14 = vmax.f32 %v3704_v38, %v3793_v48  ;;  %v3809_v15 = vsub.f32 %v5262_v9, %v3805_v61  ;;  %v3810_v63 = vmul.f32 1.442695, %v3806_v26  ;;  %v3822_v44 = vmul.f32 1.442695, %v3818_v11 }
 0xce3   : > { %v5287_v5 = vpop.f32.mrf.mxu1  ;;  %v3821_v17 = vsub.f32 %v5276_v20, %v3805_v61  ;;  %5463 = vpow2.f32 %v3812_v12 }
 0xce4   : > { %v3808_v59 = vsub.f32 %v3704_v38, %v3804_v14  ;;  %v3820_v43 = vsub.f32 %v3793_v48, %v3804_v14  ;;  %v3816_v55 = vmul.f32 1.442695, %v3809_v15  ;;  %5465 = vpow2.f32 %v3810_v63 }
 0xce5   : > { %v3928_v34 = vpop.f32.mrf.mxu1  ;;  %5467 = vpow2.f32 %v3822_v44  ;;  %v3828_v4 = vmul.f32 1.442695, %v3821_v17 }
 0xce6   : > { %v3814_v47 = vmul.f32 1.442695, %v3808_v59  ;;  %v3826_v41 = vmul.f32 1.442695, %v3820_v43  ;;  %5469 = vpow2.f32 %v3816_v55 }
 0xce7   : > { %v5290_v57 = vpop.f32.mrf.mxu1 }
 0xce8   : > { %5471 = vpow2.f32 %v3814_v47 }
 0xce9   : > { %v3938_v50 = vpop.f32.mrf.mxu1  ;;  %5473 = vpow2.f32 %v3826_v41  ;;  %v3506_v41 = vpop.permute.xlu0 %3505 }
 0xcea   : > { %5475 = vpow2.f32 %v3828_v4 }
 0xceb   : > { %v5301_v39 = vpop.f32.mrf.mxu1 }
 0xcec   : > { %v4037_v2 = vmax.f32 %v5287_v5, %v5301_v39 }
 0xced   : > { %v4017_v54 = vpop.f32.mrf.mxu1  ;;  %v3496_v4 = vpop.permute.xlu0 %3495 }
 0xcee   : > { %v4041_v6 = vsub.f32 %v5287_v5, %v4037_v2  ;;  %v4053_v62 = vsub.f32 %v5301_v39, %v4037_v2  ;;  %v4036_v10 = vmax.f32 %v3928_v34, %v4017_v54  ;;  %v3609_v5 = vpop.f32.mrf.mxu0 }
 0xcef   : > { %v5304_v29 = vpop.f32.mrf.mxu1 }
 0xcf0   : > { %v4046_v24 = vmul.f32 1.442695, %v4041_v6  ;;  %v4040_v33 = vsub.f32 %v3928_v34, %v4036_v10  ;;  %v4052_v3 = vsub.f32 %v4017_v54, %v4036_v10  ;;  %v4058_v7 = vmul.f32 1.442695, %v4053_v62  ;;  %v6771_v22 = vpop.eup %5463  ;;  %v3511_v6 = vpop.permute.xlu1 %3510 }
 0xcf1   : > { %v4039_v60 = vmax.f32 %v5290_v57, %v5304_v29  ;;  %v4027_v1 = vpop.f32.mrf.mxu1  ;;  %v6773_v38 = vpop.eup %5465 }
 0xcf2   : > { %v4044_v27 = vmul.f32 1.442695, %v4040_v33  ;;  %v4038_v30 = vmax.f32 %v3938_v50, %v4027_v1  ;;  %v4056_v23 = vmul.f32 1.442695, %v4052_v3  ;;  %5477 = vpow2.f32 %v4046_v24  ;;  %v6775_v18 = vpop.eup %5467 }
 0xcf3   : > { %v4043_v42 = vsub.f32 %v5290_v57, %v4039_v60  ;;  %v4055_v40 = vsub.f32 %v5304_v29, %v4039_v60  ;;  %5479 = vpow2.f32 %v4058_v7  ;;  %v5470_v20 = vpop.eup %5469  ;;  %v3830_v61 = vadd.f32 %v6775_v18, %v6773_v38  ;;  %v3611_v57 = vpop.f32.mrf.mxu0 }
 0xcf4   : > { %v4042_v28 = vsub.f32 %v3938_v50, %v4038_v30  ;;  %v4054_v0 = vsub.f32 %v4027_v1, %v4038_v30  ;;  %5481 = vpow2.f32 %v4044_v27  ;;  %v3501_v24 = vpop.permute.xlu1 %3500  ;;  %v3606_v7 = vadd.f32 %v3605_v35, %v3496_v4 }
 0xcf5   : > { %v4050_v8 = vmul.f32 1.442695, %v4043_v42  ;;  %5483 = vpow2.f32 %v4056_v23  ;;  %v4062_v13 = vmul.f32 1.442695, %v4055_v40  ;;  %v5472_v16 = vpop.eup %5471  ;;  %v3615_v44 = vpop.f32.mrf.mxu0  ;;  %v3608_v60 = vadd.f32 %v3607_v37, %v3496_v4 }
 0xcf6   : > { %5485 = vpow2.f32 %v3824_v51  ;;  %v4048_v31 = vmul.f32 1.442695, %v4042_v28  ;;  %v4060_v9 = vmul.f32 1.442695, %v4054_v0  ;;  %v5474_v21 = vpop.eup %5473  ;;  %v3610_v1 = vadd.f32 %v3609_v5, %v3501_v24 }
 0xcf7   : > { %5487 = vpow2.f32 %v4050_v8  ;;  %v5476_v48 = vpop.eup %5475  ;;  %v3832_v14 = vadd.f32 %v5474_v21, %v5472_v16  ;;  %v3617_v54 = vpop.f32.mrf.mxu0  ;;  %v3612_v27 = vadd.f32 %v3611_v57, %v3501_v24  ;;  %v3616_v28 = vadd.f32 %v3615_v44, %v3506_v41 }
 0xcf8   : > { %5489 = vpow2.f32 %v4062_v13  ;;  %v3833_v12 = vadd.f32 %v5476_v48, %v5470_v20  ;;  %v3618_v8 = vadd.f32 %v3617_v54, %v3506_v41 }
 0xcf9   : > { %5491 = vpow2.f32 %v4048_v31  ;;  %v3619_v62 = vpop.f32.mrf.mxu0 }
 0xcfa   : > { %5493 = vpow2.f32 %v4060_v9  ;;  %v3620_v0 = vadd.f32 %v3619_v62, %v3511_v6 }
 0xcfb   : > { %5495 = vrcp.f32 %v3830_v61  ;;  %v3621_v33 = vpop.f32.mrf.mxu0 }
 0xcfc   : > { %5497 = vrcp.f32 %v3832_v14  ;;  %v3622_v13 = vadd.f32 %v3621_v33, %v3511_v6 }
 0xcff   : > { %v5478_v56 = vpop.eup %5477 }
 0xd00   : > { %v5480_v26 = vpop.eup %5479 }
 0xd01   : > { %v5482_v34 = vpop.eup %5481  ;;  %v4065_v63 = vadd.f32 %v5480_v26, %v5478_v56 }
 0xd02   : > { %v5484_v11 = vpop.eup %5483 }
 0xd03   : > { %v6779_v15 = vpop.eup %5485  ;;  %v4064_v59 = vadd.f32 %v5484_v11, %v5482_v34 }
 0xd04   : > { %v5488_v50 = vpop.eup %5487  ;;  %v3831_v17 = vadd.f32 %v6779_v15, %v6771_v22 }
 0xd05   : > { %5499 = vrcp.f32 %v4064_v59  ;;  %v5490_v43 = vpop.eup %5489 }
 0xd06   : > { %5501 = vrcp.f32 %v3833_v12  ;;  %v5492_v39 = vpop.eup %5491  ;;  %v4067_v55 = vadd.f32 %v5490_v43, %v5488_v50 }
 0xd07   : > { %5503 = vrcp.f32 %v4065_v63  ;;  %v5494_v2 = vpop.eup %5493 }
 0xd08   : > { %5505 = vrcp.f32 %v4067_v55  ;;  %v4066_v47 = vadd.f32 %v5494_v2, %v5492_v39  ;;  %v5496_v10 = vpop.eup %5495 }
 0xd09   : > { %5507 = vrcp.f32 %v3831_v17  ;;  %v5498_v49 = vpop.eup %5497  ;;  %v3838_v14 = vmul.f32 %v5496_v10, %v6773_v38  ;;  %v3846_v12 = vmul.f32 %v5496_v10, %v6775_v18 }
 0xd0a   : > { %5509 = vrcp.f32 %v4066_v47  ;;  %v3840_v23 = vmul.f32 %v5498_v49, %v5472_v16  ;;  %v3848_v42 = vmul.f32 %v5498_v49, %v5474_v21 }
 0xd0b   : > { %v3842_v41 = vmul.f32 %v3838_v14, %v3606_v7  ;;  %v3850_v6 = vmul.f32 %v3846_v12, %v3608_v60 }
 0xd0c   : > { %v3844_v21 = vmul.f32 %v3840_v23, %v3616_v28  ;;  %v4944_v23 = vld [vmem:[%s6936_s6 + $0x58] sm:$0xff] }
 0xd12   : > { %v5500_v29 = vpop.eup %5499 }
 0xd13   : > { %v5502_v3 = vpop.eup %5501  ;;  %v4072_v40 = vmul.f32 %v5500_v29, %v5482_v34  ;;  %v4080_v51 = vmul.f32 %v5500_v29, %v5484_v11  ;;  %v3852_v34 = vmul.f32 %v3848_v42, %v3618_v8 }
 0xd14   : > { %v5504_v30 = vpop.eup %5503  ;;  %v3841_v9 = vmul.f32 %v5502_v3, %v5470_v20  ;;  %v3849_v61 = vmul.f32 %v5502_v3, %v5476_v48  ;;  %v3854_v3 = vadd.f32 %v3850_v6, %v3842_v41 }
 0xd15   : > { %v5506_v31 = vpop.eup %5505  ;;  %v4073_v57 = vmul.f32 %v5504_v30, %v5478_v56  ;;  %v4081_v63 = vmul.f32 %v5504_v30, %v5480_v26  ;;  %v4076_v11 = vmul.f32 %v4072_v40, %v3606_v7  ;;  %v4084_v59 = vmul.f32 %v4080_v51, %v3608_v60  ;;  %v4941_v30 = vld [vmem:[%s6936_s6 + $0x40] sm:$0xff]  ;;  %v4942_v7 = vld [vmem:[%s6936_s6 + $0x48] sm:$0xff]  ;;  %v4099_v51 = vpop.permute.xlu0 %4098 }
 0xd16   : > { %v5508_v35 = vpop.eup %5507  ;;  %v4075_v37 = vmul.f32 %v5506_v31, %v5488_v50  ;;  %v4083_v5 = vmul.f32 %v5506_v31, %v5490_v43  ;;  %v3845_v20 = vmul.f32 %v3841_v9, %v3620_v0  ;;  %v3853_v48 = vmul.f32 %v3849_v61, %v3622_v13 }
 0xd17   : > { %v5510_v16 = vpop.eup %5509  ;;  %v3839_v38 = vmul.f32 %v5508_v35, %v6771_v22  ;;  %v3847_v18 = vmul.f32 %v5508_v35, %v6779_v15  ;;  %v4077_v43 = vmul.f32 %v4073_v57, %v3610_v1  ;;  %v4085_v56 = vmul.f32 %v4081_v63, %v3612_v27 }
 0xd18   : > { %v4074_v44 = vmul.f32 %v5510_v16, %v5492_v39  ;;  %v4079_v17 = vmul.f32 %v4075_v37, %v3620_v0  ;;  %v4082_v55 = vmul.f32 %v5510_v16, %v5494_v2  ;;  %v4087_v47 = vmul.f32 %v4083_v5, %v3622_v13 }
 0xd19   : > { %v3856_v26 = vadd.f32 %v3852_v34, %v3844_v21  ;;  %v4088_v49 = vadd.f32 %v4084_v59, %v4076_v11  ;;  %v3857_v39 = vadd.f32 %v3853_v48, %v3845_v20  ;;  %v3843_v4 = vmul.f32 %v3839_v38, %v3610_v1  ;;  %v4109_v14 = vpop.permute.xlu0 %4108 }
 0xd1a   : > { %v4078_v54 = vmul.f32 %v4074_v44, %v3616_v28  ;;  %v4086_v50 = vmul.f32 %v4082_v55, %v3618_v8  ;;  %v4091_v10 = vadd.f32 %v4087_v47, %v4079_v17  ;;  %v3851_v2 = vmul.f32 %v3847_v18, %v3612_v27  ;;  %v4943_v27 = vld [vmem:[%s6936_s6 + $0x50] sm:$0xff]  ;;  %v4104_v8 = vpop.permute.xlu1 %4103 }
 0xd1b   : > { %v4089_v24 = vadd.f32 %v4085_v56, %v4077_v43  ;;  %v4094_v33 = vpack.c.bf16 %v3857_v39, %v3856_v26  ;;  %v3398_v1 = vpack.c.bf16 %v4942_v7, %v4941_v30  ;;  %v3399_v42 = vpack.c.bf16 %v4944_v23, %v4943_v27 }
 0xd1c   : > { %v4090_v62 = vadd.f32 %v4086_v50, %v4078_v54  ;;  %v3855_v15 = vadd.f32 %v3851_v2, %v3843_v4 }
 0xd1d   : > { %v4093_v22 = vpack.c.bf16 %v4089_v24, %v4088_v49 }
 0xd1e   : > { %v4095_v29 = vpack.c.bf16 %v4091_v10, %v4090_v62  ;;  %v4092_v60 = vpack.c.bf16 %v3855_v15, %v3854_v3  ;;  %v4114_v11 = vpop.permute.xlu1 %4113 }
 0xd20   : > { %4134 = vmatprep.subr.bf16.mxu1 %v4095_v29 }
 0xd21   : > { %4135 = vmatpush1.bf16.msra.mxu1 %v4094_v33 }
 0xd22   : > { %4136 = vmatprep.subr.bf16.mxu1 %v4093_v22 }
 0xd25   : > { %4137 = vmatpush1.bf16.msra.mxu1 %v4092_v60 }
 0xd28   : > { %5003 = vmatmul.mubr.msk.bf16.vlgmr.msra.gmra.mxu1 %vm995_vm2, %v3398_v1 }
 0xd29   : > { %4164 = vmatprep.mubr.bf16.mxu1 %v6983_v25 }
 0xd30   : > { %5004 = vmatmul.mubr.msk.bf16.gmra.mxu1 %vm995_vm2, %v3399_v42 }
 0xd31   : > { %4460 = vmatprep.mubr.bf16.mxu1 %v6983_v25 }
 0xde8   : > { %v4156_v40 = vpop.f32.mrf.mxu1 }
 0xde9   : > { %v4157_v9 = vadd.f32 %v4156_v40, %v4099_v51 }
 0xdea   : > { %v4158_v28 = vpop.f32.mrf.mxu1 }
 0xdeb   : > { %v4159_v35 = vadd.f32 %v4158_v28, %v4099_v51  ;;  %v4175_v63 = vadd.f32 %v4157_v9, %v6681_v19 }
 0xdec   : > { %v4160_v0 = vpop.f32.mrf.mxu1 }
 0xded   : > { %v4161_v13 = vadd.f32 %v4160_v0, %v4104_v8  ;;  %v4176_v44 = vadd.f32 %v4159_v35, %v6673_v46 }
 0xdee   : > { %v4162_v31 = vpop.f32.mrf.mxu1 }
 0xdef   : > { %v4163_v61 = vadd.f32 %v4162_v31, %v4104_v8  ;;  %v4177_v37 = vadd.f32 %v4161_v13, %v6683_v52 }
 0xdf0   : > { %v4166_v12 = vpop.f32.mrf.mxu1 }
 0xdf1   : > { %v4167_v5 = vadd.f32 %v4166_v12, %v4109_v14  ;;  %v4178_v16 = vadd.f32 %v4163_v61, %v6675_v58  ;;  %v4183_v17 = vadd.f32 %v4177_v37, %v4175_v63 }
 0xdf2   : > { %v4168_v57 = vpop.f32.mrf.mxu1 }
 0xdf3   : > { %v4179_v21 = vadd.f32 %v4167_v5, %v6665_v32  ;;  %v4169_v34 = vadd.f32 %v4168_v57, %v4109_v14  ;;  %v4192_v48 = vadd.f32 %v4178_v16, %v4176_v44 }
 0xdf4   : > { %v4170_v59 = vpop.f32.mrf.mxu1 }
 0xdf5   : > { %v4180_v55 = vadd.f32 %v4169_v34, %v6669_v36  ;;  %v4171_v47 = vadd.f32 %v4170_v59, %v4114_v11  ;;  %v4184_v52 = vadd.f32 %v4183_v17, %v4179_v21 }
 0xdf6   : > { %v4172_v20 = vpop.f32.mrf.mxu1 }
 0xdf7   : > { %v4181_v38 = vadd.f32 %v4171_v47, %v6667_v53  ;;  %v4173_v18 = vadd.f32 %v4172_v20, %v4114_v11  ;;  %v4193_v19 = vadd.f32 %v4192_v48, %v4180_v55  ;;  %v4269_v47 = vpop.permute.xlu1 %4268 }
 0xdf9   : > { %v4185_v54 = vadd.f32 %v4184_v52, %v4181_v38  ;;  %v4182_v58 = vadd.f32 %v4173_v18, %v6671_v45 }
 0xdfb   : > { %v4186_v32 = vrot.slane %v4185_v54, 4  ;;  %v4194_v50 = vadd.f32 %v4193_v19, %v4182_v58  ;;  %v4297_v48 = vpop.permute.xlu1 %4296 }
 0xdfd   : > { %v4187_v43 = vadd.f32 %v4186_v32, %v4185_v54  ;;  %v4195_v56 = vrot.slane %v4194_v50, 4 }
 0xdff   : > { %v4188_v26 = vrot.slane %v4187_v43, 2  ;;  %v4196_v46 = vadd.f32 %v4195_v56, %v4194_v50  ;;  %v4259_v18 = vpop.permute.xlu1 %4258 }
 0xe01   : > { %v4189_v41 = vadd.f32 %v4188_v26, %v4187_v43  ;;  %v4197_v6 = vrot.slane %v4196_v46, 2 }
 0xe03   : > { %v4190_v36 = vrot.slane %v4189_v41, 1  ;;  %v4198_v62 = vadd.f32 %v4197_v6, %v4196_v46 }
 0xe05   : > { %v4191_v10 = vadd.f32 %v4190_v36, %v4189_v41  ;;  %v4199_v49 = vrot.slane %v4198_v62, 1 }
 0xe07   : > { %v4201_v39 = vmul.f32 0.03125, %v4191_v10  ;;  %v4200_v4 = vadd.f32 %v4199_v49, %v4198_v62 }
 0xe09   : > { %v4203_v53 = vsub.f32 %v4175_v63, %v4201_v39  ;;  %v4205_v2 = vsub.f32 %v4177_v37, %v4201_v39  ;;  %v4207_v29 = vsub.f32 %v4179_v21, %v4201_v39  ;;  %v4202_v24 = vmul.f32 0.03125, %v4200_v4  ;;  %v4287_v4 = vpop.permute.xlu1 %4286 }
 0xe0a   : > { %v4209_v33 = vsub.f32 %v4181_v38, %v4201_v39 }
 0xe0b   : > { %v4211_v45 = vmul.f32 %v4203_v53, %v4203_v53  ;;  %v4213_v3 = vmul.f32 %v4205_v2, %v4205_v2  ;;  %v4204_v22 = vsub.f32 %v4176_v44, %v4202_v24  ;;  %v4206_v15 = vsub.f32 %v4178_v16, %v4202_v24 }
 0xe0c   : > { %v4208_v30 = vsub.f32 %v4180_v55, %v4202_v24  ;;  %v4215_v7 = vmul.f32 %v4207_v29, %v4207_v29  ;;  %v4210_v1 = vsub.f32 %v4182_v58, %v4202_v24  ;;  %v4217_v42 = vmul.f32 %v4209_v33, %v4209_v33  ;;  %v4264_v55 = vpop.permute.xlu0 %4263 }
 0xe0d   : > { %v4219_v60 = vadd.f32 %v4213_v3, %v4211_v45  ;;  %v4212_v27 = vmul.f32 %v4204_v22, %v4204_v22  ;;  %v4214_v23 = vmul.f32 %v4206_v15, %v4206_v15 }
 0xe0e   : > { %v4216_v51 = vmul.f32 %v4208_v30, %v4208_v30  ;;  %v4218_v0 = vmul.f32 %v4210_v1, %v4210_v1 }
 0xe0f   : > { %v4220_v40 = vadd.f32 %v4219_v60, %v4215_v7  ;;  %v4228_v28 = vadd.f32 %v4214_v23, %v4212_v27  ;;  %v4949_v27 = vld [vmem:[%s6940_s10 + $0x40] sm:$0xff]  ;;  %v4950_v23 = vld [vmem:[%s6940_s10 + $0x48] sm:$0xff] }
 0xe10   : > { %v4292_v20 = vpop.permute.xlu0 %4291 }
 0xe11   : > { %v4221_v8 = vadd.f32 %v4220_v40, %v4217_v42  ;;  %v4229_v13 = vadd.f32 %v4228_v28, %v4216_v51  ;;  %v3410_v40 = vpack.c.bf16 %v4950_v23, %v4949_v27  ;;  %v4951_v51 = vld [vmem:[%s6940_s10 + $0x50] sm:$0xff]  ;;  %v4952_v28 = vld [vmem:[%s6940_s10 + $0x58] sm:$0xff] }
 0xe13   : > { %v4222_v31 = vrot.slane %v4221_v8, 4  ;;  %v4230_v9 = vadd.f32 %v4229_v13, %v4218_v0 }
 0xe14   : > { %v4254_v38 = vpop.permute.xlu0 %4253 }
 0xe15   : > { %v4223_v61 = vadd.f32 %v4222_v31, %v4221_v8  ;;  %v4231_v14 = vrot.slane %v4230_v9, 4  ;;  %v3411_v8 = vpack.c.bf16 %v4952_v28, %v4951_v51 }
 0xe17   : > { %v4224_v12 = vrot.slane %v4223_v61, 2  ;;  %v4232_v35 = vadd.f32 %v4231_v14, %v4230_v9  ;;  %v4329_v9 = vpop.permute.xlu1 %4328 }
 0xe18   : > { %v4282_v39 = vpop.permute.xlu0 %4281 }
 0xe19   : > { %v4225_v37 = vadd.f32 %v4224_v12, %v4223_v61  ;;  %v4233_v5 = vrot.slane %v4232_v35, 2 }
 0xe1b   : > { %v4226_v57 = vrot.slane %v4225_v37, 1  ;;  %v4234_v63 = vadd.f32 %v4233_v5, %v4232_v35 }
 0xe1c   : > { %v4324_v14 = vpop.permute.xlu0 %4323 }
 0xe1d   : > { %v4227_v16 = vadd.f32 %v4226_v57, %v4225_v37  ;;  %v4235_v21 = vrot.slane %v4234_v63, 1  ;;  %v4319_v37 = vpop.permute.xlu1 %4318 }
 0xe1f   : > { %v4237_v34 = vmul.f32 0.03125, %v4227_v16  ;;  %v4236_v11 = vadd.f32 %v4235_v21, %v4234_v63 }
 0xe20   : > { %v4314_v21 = vpop.permute.xlu0 %4313 }
 0xe21   : > { %v4239_v59 = vadd.f32 1e-05, %v4237_v34  ;;  %v4238_v44 = vmul.f32 0.03125, %v4236_v11 }
 0xe23   : > { %5511 = vrsqrt.f32 %v4239_v59  ;;  %v4240_v17 = vadd.f32 1e-05, %v4238_v44 }
 0xe25   : > { %5513 = vrsqrt.f32 %v4240_v17 }
 0xe30   : > { %v5512_v52 = vpop.eup %5511 }
 0xe31   : > { %v4249_v19 = vmul.f32 %v5512_v52, %v4209_v33  ;;  %v4247_v54 = vmul.f32 %v5512_v52, %v4207_v29  ;;  %v4243_v43 = vmul.f32 %v5512_v52, %v4203_v53  ;;  %v4245_v56 = vmul.f32 %v5512_v52, %v4205_v2 }
 0xe32   : > { %v5514_v58 = vpop.eup %5513 }
 0xe33   : > { %v4277_v32 = vmul.f32 %v4269_v47, %v4249_v19  ;;  %v4275_v50 = vmul.f32 %v4264_v55, %v4247_v54  ;;  %v4250_v26 = vmul.f32 %v5514_v58, %v4210_v1  ;;  %v4248_v46 = vmul.f32 %v5514_v58, %v4208_v30 }
 0xe34   : > { %v4244_v41 = vmul.f32 %v5514_v58, %v4204_v22  ;;  %v4246_v6 = vmul.f32 %v5514_v58, %v4206_v15  ;;  %v4271_v29 = vmul.f32 %v4254_v38, %v4243_v43  ;;  %v4273_v33 = vmul.f32 %v4259_v18, %v4245_v56  ;;  %v4957_v43 = vld [vmem:[%s6942_s12 + $0x40] sm:$0xff]  ;;  %v4958_v56 = vld [vmem:[%s6942_s12 + $0x48] sm:$0xff] }
 0xe35   : > { %v4276_v36 = vmul.f32 %v4264_v55, %v4248_v46  ;;  %v4278_v62 = vmul.f32 %v4269_v47, %v4250_v26  ;;  %v6811_v24 = vadd.f32 %v4292_v20, %v4275_v50  ;;  %v6813_v45 = vadd.f32 %v4297_v48, %v4277_v32 }
 0xe36   : > { %v4272_v10 = vmul.f32 %v4254_v38, %v4244_v41  ;;  %v4274_v49 = vmul.f32 %v4259_v18, %v4246_v6  ;;  %v6827_v7 = vadd.f32 %v4282_v39, %v4271_v29  ;;  %v6829_v60 = vadd.f32 %v4287_v4, %v4273_v33  ;;  %v4959_v41 = vld [vmem:[%s6942_s12 + $0x50] sm:$0xff]  ;;  %v4960_v6 = vld [vmem:[%s6942_s12 + $0x58] sm:$0xff] }
 0xe37   : > { %v6815_v3 = vadd.f32 %v4292_v20, %v4276_v36  ;;  %v6817_v53 = vadd.f32 %v4297_v48, %v4278_v62  ;;  %v4309_v30 = vpack.c.bf16 %v6813_v45, %v6811_v24  ;;  %v3422_v46 = vpack.c.bf16 %v4958_v56, %v4957_v43 }
 0xe38   : > { %v6819_v2 = vadd.f32 %v4282_v39, %v4272_v10  ;;  %v6821_v22 = vadd.f32 %v4287_v4, %v4274_v49  ;;  %v4307_v42 = vpack.c.bf16 %v6829_v60, %v6827_v7  ;;  %v3423_v36 = vpack.c.bf16 %v4960_v6, %v4959_v41  ;;  %v4405_v49 = vpop.permute.xlu0 %4404  ;;  %v4410_v4 = vpop.permute.xlu1 %4409 }
 0xe39   : > { %v4310_v15 = vpack.c.bf16 %v6817_v53, %v6815_v3  ;;  %v5590_v62 = vmov 0.0  }
 0xe3a   : > { %v4308_v1 = vpack.c.bf16 %v6821_v22, %v6819_v2 }
 0xe3b   : > { %4349 = vmatprep.subr.bf16.mxu0 %v4310_v15 }
 0xe3c   : > { %4350 = vmatpush1.bf16.msra.mxu0 %v4309_v30 }
 0xe3d   : > { %4351 = vmatprep.subr.bf16.mxu0 %v4308_v1  ;;  %v4415_v1 = vpop.permute.xlu0 %4414 }
 0xe40   : > { %4352 = vmatpush1.bf16.msra.mxu0 %v4307_v42 }
 0xe43   : > { %5005 = vmatmul.mubr.msk.bf16.vlgmr.msra.gmra.mxu0 %vm995_vm2, %v3410_v40 }
 0xe44   : > { %4379 = vmatprep.mubr.bf16.mxu0 %v6983_v25 }
 0xe4b   : > { %5006 = vmatmul.mubr.msk.bf16.gmra.mxu0 %vm995_vm2, %v3411_v8 }
 0xe4c   : > { %4687 = vmatprep.mubr.f32.mxu0 %v5590_v62 }
 0xf03   : > { %v4371_v0 = vpop.f32.mrf.mxu0 }
 0xf04   : > { %v4372_v52 = vadd.f32 %v4371_v0, %v4314_v21 }
 0xf05   : > { %v4373_v13 = vpop.f32.mrf.mxu0 }
 0xf06   : > { %v4374_v59 = vadd.f32 %v4373_v13, %v4314_v21  ;;  %v4390_v50 = vmax.f32 %v4372_v52, 0.0 }
 0xf07   : > { %v4375_v31 = vpop.f32.mrf.mxu0 }
 0xf08   : > { %v4376_v17 = vadd.f32 %v4375_v31, %v4319_v37  ;;  %v4391_v18 = vmax.f32 %v4374_v59, 0.0  ;;  %v4420_v31 = vpop.permute.xlu1 %4419 }
 0xf09   : > { %v4377_v61 = vpop.f32.mrf.mxu0 }
 0xf0a   : > { %v4378_v57 = vadd.f32 %v4377_v61, %v4319_v37  ;;  %v4392_v54 = vmax.f32 %v4376_v17, 0.0 }
 0xf0b   : > { %v4381_v12 = vpop.f32.mrf.mxu0 }
 0xf0c   : > { %v4382_v34 = vadd.f32 %v4381_v12, %v4324_v14  ;;  %v4393_v47 = vmax.f32 %v4378_v57, 0.0  ;;  %v4398_v26 = vpack.c.bf16 %v4392_v54, %v4390_v50 }
 0xf0d   : > { %v4383_v35 = vpop.f32.mrf.mxu0 }
 0xf0e   : > { %v4384_v63 = vadd.f32 %v4383_v35, %v4324_v14  ;;  %v4394_v38 = vmax.f32 %v4382_v34, 0.0  ;;  %v4399_v32 = vpack.c.bf16 %v4393_v47, %v4391_v18 }
 0xf0f   : > { %v4385_v5 = vpop.f32.mrf.mxu0 }
 0xf10   : > { %v4386_v16 = vadd.f32 %v4385_v5, %v4329_v9  ;;  %v4395_v20 = vmax.f32 %v4384_v63, 0.0 }
 0xf11   : > { %v4387_v11 = vpop.f32.mrf.mxu0 }
 0xf12   : > { %v4388_v44 = vadd.f32 %v4387_v11, %v4329_v9  ;;  %v4396_v55 = vmax.f32 %v4386_v16, 0.0 }
 0xf14   : > { %v4397_v48 = vmax.f32 %v4388_v44, 0.0  ;;  %v4400_v58 = vpack.c.bf16 %v4396_v55, %v4394_v38 }
 0xf16   : > { %v4401_v19 = vpack.c.bf16 %v4397_v48, %v4395_v20 }
 0xf18   : > { %4440 = vmatprep.subr.bf16.mxu1 %v4401_v19 }
 0xf19   : > { %4441 = vmatpush1.bf16.msra.mxu1 %v4400_v58 }
 0xf1a   : > { %4442 = vmatprep.subr.bf16.mxu1 %v4399_v32 }
 0xf1d   : > { %4443 = vmatpush1.bf16.msra.mxu1 %v4398_v26 }
 0xf20   : > { %5007 = vmatmul.mubr.msk.bf16.vlgmr.msra.gmra.mxu1 %vm995_vm2, %v3422_v46 }
 0xf21   : > { %4470 = vmatprep.mubr.bf16.mxu1 %v6983_v25 }
 0xf28   : > { %5008 = vmatmul.mubr.msk.bf16.gmra.mxu1 %vm995_vm2, %v3423_v36 }
 0xfe0   : > { %v4462_v10 = vpop.f32.mrf.mxu1 }
 0xfe1   : > { %v4463_v15 = vadd.f32 %v4462_v10, %v4405_v49 }
 0xfe2   : > { %v4464_v39 = vpop.f32.mrf.mxu1 }
 0xfe3   : > { %v4465_v23 = vadd.f32 %v4464_v39, %v4405_v49  ;;  %v4481_v28 = vadd.f32 %v4463_v15, %v6827_v7 }
 0xfe4   : > { %v4466_v29 = vpop.f32.mrf.mxu1 }
 0xfe5   : > { %v4467_v33 = vadd.f32 %v4466_v29, %v4410_v4  ;;  %v4482_v61 = vadd.f32 %v4465_v23, %v6819_v2 }
 0xfe6   : > { %v4468_v25 = vpop.f32.mrf.mxu1 }
 0xfe7   : > { %v4469_v30 = vadd.f32 %v4468_v25, %v4410_v4  ;;  %v4483_v42 = vadd.f32 %v4467_v33, %v6829_v60 }
 0xfe8   : > { %v4472_v27 = vpop.f32.mrf.mxu1 }
 0xfe9   : > { %v4473_v40 = vadd.f32 %v4472_v27, %v4415_v1  ;;  %v4484_v8 = vadd.f32 %v4469_v30, %v6821_v22  ;;  %v4489_v14 = vadd.f32 %v4483_v42, %v4481_v28 }
 0xfea   : > { %v4474_v51 = vpop.f32.mrf.mxu1 }
 0xfeb   : > { %v4485_v0 = vadd.f32 %v4473_v40, %v6811_v24  ;;  %v4475_v13 = vadd.f32 %v4474_v51, %v4415_v1  ;;  %v4498_v5 = vadd.f32 %v4484_v8, %v4482_v61 }
 0xfec   : > { %v4476_v9 = vpop.f32.mrf.mxu1 }
 0xfed   : > { %v4486_v12 = vadd.f32 %v4475_v13, %v6815_v3  ;;  %v4477_v35 = vadd.f32 %v4476_v9, %v4420_v31  ;;  %v4490_v60 = vadd.f32 %v4489_v14, %v4485_v0  ;;  %v4575_v14 = vpop.permute.xlu0 %4574 }
 0xfee   : > { %v4478_v37 = vpop.f32.mrf.mxu1 }
 0xfef   : > { %v4487_v57 = vadd.f32 %v4477_v35, %v6813_v45  ;;  %v4479_v63 = vadd.f32 %v4478_v37, %v4420_v31  ;;  %v4499_v7 = vadd.f32 %v4498_v5, %v4486_v12 }
 0xff1   : > { %v4491_v16 = vadd.f32 %v4490_v60, %v4487_v57  ;;  %v4488_v22 = vadd.f32 %v4479_v63, %v6817_v53  ;;  %v4603_v35 = vpop.permute.xlu0 %4602 }
 0xff3   : > { %v4492_v24 = vrot.slane %v4491_v16, 4  ;;  %v4500_v21 = vadd.f32 %v4499_v7, %v4488_v22 }
 0xff5   : > { %v4493_v34 = vadd.f32 %v4492_v24, %v4491_v16  ;;  %v4501_v11 = vrot.slane %v4500_v21, 4  ;;  %v4598_v24 = vpop.permute.xlu0 %4597 }
 0xff7   : > { %v4494_v59 = vrot.slane %v4493_v34, 2  ;;  %v4502_v2 = vadd.f32 %v4501_v11, %v4500_v21 }
 0xff9   : > { %v4495_v44 = vadd.f32 %v4494_v59, %v4493_v34  ;;  %v4503_v17 = vrot.slane %v4502_v2, 2 }
 0xffb   : > { %v4496_v3 = vrot.slane %v4495_v44, 1  ;;  %v4504_v55 = vadd.f32 %v4503_v17, %v4502_v2 }
 0xffd   : > { %v4497_v47 = vadd.f32 %v4496_v3, %v4495_v44  ;;  %v4505_v20 = vrot.slane %v4504_v55, 1 }
 0xfff   : > { %v4507_v48 = vmul.f32 0.03125, %v4497_v47  ;;  %v4506_v52 = vadd.f32 %v4505_v20, %v4504_v55 }
0x1001   : > { %v4509_v45 = vsub.f32 %v4481_v28, %v4507_v48  ;;  %v4511_v38 = vsub.f32 %v4483_v42, %v4507_v48  ;;  %v4513_v18 = vsub.f32 %v4485_v0, %v4507_v48  ;;  %v4508_v19 = vmul.f32 0.03125, %v4506_v52 }
0x1002   : > { %v4515_v54 = vsub.f32 %v4487_v57, %v4507_v48 }
0x1003   : > { %v4517_v53 = vmul.f32 %v4509_v45, %v4509_v45  ;;  %v4519_v58 = vmul.f32 %v4511_v38, %v4511_v38  ;;  %v4510_v32 = vsub.f32 %v4482_v61, %v4508_v19  ;;  %v4512_v50 = vsub.f32 %v4484_v8, %v4508_v19 }
0x1004   : > { %v4514_v43 = vsub.f32 %v4486_v12, %v4508_v19  ;;  %v4521_v56 = vmul.f32 %v4513_v18, %v4513_v18  ;;  %v4516_v46 = vsub.f32 %v4488_v22, %v4508_v19  ;;  %v4523_v36 = vmul.f32 %v4515_v54, %v4515_v54  ;;  %v4570_v12 = vpop.permute.xlu1 %4569 }
0x1005   : > { %v4525_v26 = vadd.f32 %v4519_v58, %v4517_v53  ;;  %v4518_v41 = vmul.f32 %v4510_v32, %v4510_v32  ;;  %v4520_v6 = vmul.f32 %v4512_v50, %v4512_v50 }
0x1006   : > { %v4522_v10 = vmul.f32 %v4514_v43, %v4514_v43  ;;  %v4524_v4 = vmul.f32 %v4516_v46, %v4516_v46 }
0x1007   : > { %v4526_v62 = vadd.f32 %v4525_v26, %v4521_v56  ;;  %v4534_v49 = vadd.f32 %v4520_v6, %v4518_v41 }
0x1008   : > { %v4565_v5 = vpop.permute.xlu1 %4564 }
0x1009   : > { %v4527_v39 = vadd.f32 %v4526_v62, %v4523_v36  ;;  %v4535_v29 = vadd.f32 %v4534_v49, %v4522_v10 }
0x100b   : > { %v4528_v33 = vrot.slane %v4527_v39, 4  ;;  %v4536_v25 = vadd.f32 %v4535_v29, %v4524_v4 }
0x100c   : > { %v4560_v44 = vpop.permute.xlu1 %4559 }
0x100d   : > { %v4529_v15 = vadd.f32 %v4528_v33, %v4527_v39  ;;  %v4537_v30 = vrot.slane %v4536_v25, 4 }
0x100f   : > { %v4530_v1 = vrot.slane %v4529_v15, 2  ;;  %v4538_v27 = vadd.f32 %v4537_v30, %v4536_v25 }
0x1010   : > { %v4588_v58 = vpop.permute.xlu1 %4587 }
0x1011   : > { %v4531_v23 = vadd.f32 %v4530_v1, %v4529_v15  ;;  %v4539_v42 = vrot.slane %v4538_v27, 2 }
0x1013   : > { %v4532_v40 = vrot.slane %v4531_v23, 1  ;;  %v4540_v51 = vadd.f32 %v4539_v42, %v4538_v27 }
0x1015   : > { %v4533_v28 = vadd.f32 %v4532_v40, %v4531_v23  ;;  %v4541_v8 = vrot.slane %v4540_v51, 1 }
0x1017   : > { %v4543_v0 = vmul.f32 0.03125, %v4533_v28  ;;  %v4542_v13 = vadd.f32 %v4541_v8, %v4540_v51 }
0x1019   : > { %v4545_v31 = vadd.f32 1e-05, %v4543_v0  ;;  %v4544_v9 = vmul.f32 0.03125, %v4542_v13 }
0x101b   : > { %5515 = vrsqrt.f32 %v4545_v31  ;;  %v4546_v61 = vadd.f32 1e-05, %v4544_v9 }
0x101d   : > { %5517 = vrsqrt.f32 %v4546_v61 }
0x1028   : > { %v5516_v37 = vpop.eup %5515 }
0x1029   : > { %v4555_v60 = vmul.f32 %v5516_v37, %v4515_v54  ;;  %v4553_v63 = vmul.f32 %v5516_v37, %v4513_v18  ;;  %v4551_v34 = vmul.f32 %v5516_v37, %v4511_v38  ;;  %v4549_v3 = vmul.f32 %v5516_v37, %v4509_v45  ;;  %v4593_v18 = vpop.permute.xlu0 %4592 }
0x102a   : > { %v5518_v57 = vpop.eup %5517 }
0x102b   : > { %v4556_v7 = vmul.f32 %v5518_v57, %v4516_v46  ;;  %v4554_v16 = vmul.f32 %v5518_v57, %v4514_v43  ;;  %v4552_v22 = vmul.f32 %v5518_v57, %v4512_v50  ;;  %v4583_v21 = vmul.f32 %v4575_v14, %v4555_v60  ;;  %v4613_v43 = vld [vmem:[%s6946_s16] sm:$0xf] }
0x102c   : > { %v4550_v2 = vmul.f32 %v5518_v57, %v4510_v32  ;;  %v4581_v17 = vmul.f32 %v4570_v12, %v4553_v63  ;;  %v4579_v48 = vmul.f32 %v4565_v5, %v4551_v34  ;;  %v4577_v53 = vmul.f32 %v4560_v44, %v4549_v3 }
0x102d   : > { %v4584_v11 = vmul.f32 %v4575_v14, %v4556_v7  ;;  %v4582_v59 = vmul.f32 %v4570_v12, %v4554_v16  ;;  %v4580_v47 = vmul.f32 %v4565_v5, %v4552_v22  ;;  %v4611_v20 = vadd.f32 %v4603_v35, %v4583_v21  ;;  %v4618_v56 = vpop.permute.xlu0 %4617 }
0x102e   : > { %v4578_v19 = vmul.f32 %v4560_v44, %v4550_v2  ;;  %v4609_v54 = vadd.f32 %v4598_v24, %v4581_v17  ;;  %v4607_v32 = vadd.f32 %v4593_v18, %v4579_v48  ;;  %v4605_v50 = vadd.f32 %v4588_v58, %v4577_v53 }
0x102f   : > { %v4612_v55 = vadd.f32 %v4603_v35, %v4584_v11  ;;  %v4610_v52 = vadd.f32 %v4598_v24, %v4582_v59  ;;  %v4608_v38 = vadd.f32 %v4593_v18, %v4580_v47 }
0x1030   : > { %v4606_v45 = vadd.f32 %v4588_v58, %v4578_v19 }
0x1031   : > { %4647 = vmatprep.subr.mxu0 %v4612_v55 }
0x1032   : > { %4648 = vmatpush1.msra.mxu0 %v4611_v20 }
0x1033   : > { %4649 = vmatprep.subr.mxu0 %v4610_v52 }
0x1034   : > { %4650 = vmatpush1.msra.mxu0 %v4609_v54 }
0x1035   : > { %4651 = vmatprep.subr.mxu0 %v4608_v38 }
0x1036   : > { %4652 = vmatpush1.msra.mxu0 %v4607_v32 }
0x1037   : > { %4653 = vmatprep.subr.mxu0 %v4606_v45 }
0x1038   : > { %4654 = vmatpush1.msra.mxu0 %v4605_v50 }
0x1039   : > { %5009 = vmatmul.mubr.msk.f32.vlgmr.msra.gmra.mxu0 %vm995_vm2, %v4613_v43 }
0x10f9   : > { %v4689_v26 = vpop.f32.mrf.mxu0 }
0x10fa   : > { %v4690_v46 = vadd.f32 %v4689_v26, %v4618_v56 }
0x10fb   : > { %v4691_v41 = vpop.f32.mrf.mxu0 }
0x10fc   : > { %4694 = vst [vmem:[%s620_s29] sm:$0xf] %v4690_v46  ;;  %v4692_v6 = vadd.f32 %v4691_v41, %v4618_v56 }
0x10fe   : > { %5010 = vst [vmem:[%s620_s29 + $0x4] sm:$0xf] %v4692_v6 }
0x10ff   : > { %5540 = shalt.err (!%p5537_p5)
}
0x1100   : > { %s5541_s29 = scalar_lea.hbm %s6885_s25, 128  ;;  %s5545_s21 = scalar_lea.hbm %s6948_s18, 256 }
0x1101   : > { %p5542_p7 = scmp.ne.s32.totalorder %s6885_s25, %s5541_s29  ;;  %p5546_p12 = scmp.lt.s32.totalorder %s6885_s25, %s6948_s18 }
0x1102   : > { %p5547_p13 = scmp.lt.s32.totalorder %s5545_s21, %s5541_s29 }
0x1103   : > { %p5543_p10 = pnand %p5542_p7, %p5728_p6 }
0x1104   : > { %p5548_p0 = por %p5547_p13, %p5546_p12 }
0x1105   : > { %p5544_p11 = pneg %p5543_p10 }
0x1107   : > { %p5549_p1 = pnand %p5548_p0, %p5544_p11 }
0x1109   : > { %5552 = shalt.err (!%p5549_p1)
}
0x110a   : > { %s5592_s3 = smov 64   ;;  %s5593_s22 = smov 128  }
0x110b   : > { %s5594_s24 = smov 4  }
0x110c   : > { %5305 = dma.vmem_to_hbm [thread:$0]  (%p5728_p6), %s6880_s1, 128, %s6885_s25, %s6889_s26, %s5592_s3, %s5593_s22, %s5594_s24  }
0x110d PF: > { %s4725_s23 = sand.u32 1, %s5575_s27   ;;  %p5308_p2 = pnand %p4780_p9, %p5732_p8 }
0x110e   : > { %s4726_s29 = scalar_lea.sflag [#allocation4], %s4725_s23 }
0x110f   : > { %p5309_p3 = pneg %p5308_p2 }
0x1111   : > { %5570 = dma.done.wait (%p5309_p3), %s4726_s29, 128  }
0x1112   : > { %5572 = vsyncadd (%p5309_p3), %s4726_s29, 4294967168  ;;  %s6991_s30 = sld [smem:[#allocation7_spill]]  ;;  %s6994_s27 = smov %s5579_s28 }
0x1113   : > { %s6992_s21 = sld [smem:[#allocation6_spill]] }
0x1114   : > { %s6993_s29 = sld [smem:[#allocation8_spill]] }
0x1118   : > { %p28_p4 = scmp.ge.s32.totalorder %s6991_s30, 4  }
0x1119   : > { %s6995_s28 = smov %s6992_s21 }
0x111a   :  { %30 = sbr.rel (!%p28_p4) target bundleno = 8 (0x8), region = 199 }
0x111f   :  { %4731 = vsyncpa [#allocation4], 1 }
0x1120   :  { %4733 = vsyncpa [#allocation4 + $0x1], 1 }

</bundles_post_ra>
